<compile_context>
chip_gen: v5e
topology: v5e:2x2
jax: 0.10.0
libtpu: 0.0.40
codegen_flags: <defaults>
</compile_context>

<pallas_src>
import jax
import jax.numpy as jnp
from jax.experimental import pallas as pl
from jax.experimental.pallas import tpu as pltpu


N_MAPS = 64          # hidden size
INPUT_FEATS = 40     # GRU1 input_size (== x.size(2) in the PyTorch model)
LABEL_NUM = 12
BN_EPS = 1e-5
SUBLANE = 8
LANE = 128           # padded logits width (full-lane output store)


# ----------------------------------------------------------------------------
# Fused Pallas kernel: GRU layer 1 + GRU layer 2 + (reshape/last-slice+bn1+fc)
# ----------------------------------------------------------------------------
def _fused_gru_kernel(x_ref,                              # (T*Bp, F)  time-major, bn0 applied
                      w1_ref, u1rz_ref, u1n_ref,          # (F, 3H), (H, 2H), (H, H)
                      bi1_ref, bh1n_ref,                  # (1, 3H) [bh_r/bh_z folded], (1, H)
                      w2_ref, u2rz_ref, u2n_ref,          # (H, 3H), (H, 2H), (H, H)
                      bi2_ref, bh2n_ref,                  # (1, 3H), (1, H)
                      wsel_ref,                           # (T*H, Lp)  reshape-slice+bn1+fc fold
                      bout_ref,                           # (1, Lp)
                      o_ref,                              # (Bp, Lp)
                      gi1_ref):                           # scratch (T*Bp, 3H)
    f32 = jnp.float32
    H = u1n_ref.shape[-1]
    H2 = 2 * H
    Bp, _ = o_ref.shape
    TB = x_ref.shape[0]
    T = TB // Bp

    # ---- layer-1 input projection, hoisted: one (TB, F) @ (F, 3H) dot ----
    gi1_ref[...] = (jnp.dot(x_ref[...], w1_ref[...], preferred_element_type=f32)
                    + bi1_ref[...])

    def cell(h_prev, gi_rz, gi_n, u_rz, u_n, bh_n):
        # PyTorch GRU cell, gate order [r, z, n]; gi_* already contain
        # bi_r+bh_r, bi_z+bh_z, bi_n.  One fused 128-lane dot + ONE sigmoid
        # for r|z; n-gate dot kept separate (needs r).
        rz = jax.nn.sigmoid(gi_rz + jnp.dot(h_prev, u_rz, preferred_element_type=f32))
        r = rz[:, :H]
        z = rz[:, H:]
        n = jnp.tanh(gi_n + r * (jnp.dot(h_prev, u_n, preferred_element_type=f32) + bh_n))
        return n + z * (h_prev - n)            # == (1-z)*n + z*h_prev

    # Bias broadcasts hoisted out of the unrolled loop (no per-step
    # broadcast_in_dim re-emission).
    bh1n = jnp.broadcast_to(bh1n_ref[...], (Bp, H))
    bh2n = jnp.broadcast_to(bh2n_ref[...], (Bp, H))
    bi2 = jnp.broadcast_to(bi2_ref[...], (Bp, 3 * H))

    h1 = jnp.zeros((Bp, H), f32)
    h2 = jnp.zeros((Bp, H), f32)
    acc = jnp.zeros((Bp, o_ref.shape[1]), f32)

    # Interleaved recurrence for BOTH layers (statically unrolled, T is tiny).
    # Layer-2 cell t is independent of layer-1 cell t+1, so the scheduler can
    # overlap the two chains.
    for t in range(T):
        row = t * Bp                                         # static, sublane aligned
        gi1 = gi1_ref[pl.ds(row, Bp), :]                     # (Bp, 3H), lane aligned
        h1 = cell(h1, gi1[:, :H2], gi1[:, H2:],
                  u1rz_ref[...], u1n_ref[...], bh1n)
        gi2 = jnp.dot(h1, w2_ref[...], preferred_element_type=f32) + bi2
        h2 = cell(h2, gi2[:, :H2], gi2[:, H2:],
                  u2rz_ref[...], u2n_ref[...], bh2n)
        # Selection matmul: rows [t*H, (t+1)*H) of w_sel hold (bn1+fc)-folded
        # weights only for channels whose "last slice" element lives at
        # timestep t; everything else is zero.  Reproduces
        # x.reshape(B, H, T)[:, :, -1] -> bn1 -> fc exactly as a linear map.
        acc = acc + jnp.dot(h2, wsel_ref[pl.ds(t * H, H), :],
                            preferred_element_type=f32)

    o_ref[...] = acc + bout_ref[...]


def fused_gru_pallas(x_flat, kp, Bp):
    TB, _ = x_flat.shape
    H = N_MAPS
    assert kp["w_sel"].shape[0] == (TB // Bp) * H, "w_sel built for a different T"
    return pl.pallas_call(
        _fused_gru_kernel,
        out_shape=jax.ShapeDtypeStruct((Bp, LANE), jnp.float32),
        scratch_shapes=[
            pltpu.VMEM((TB, 3 * H), jnp.float32),   # layer-1 input projections (r|z|n packed)
        ],
    )(x_flat,
      kp["w1"], kp["u1rz"], kp["u1n"], kp["bi1"], kp["bh1n"],
      kp["w2"], kp["u2rz"], kp["u2n"], kp["bi2"], kp["bh2n"],
      kp["w_sel"], kp["b_out"])


# ----------------------------------------------------------------------------
# Parameter initialization (deterministic, PyTorch-like uniform init)
# ----------------------------------------------------------------------------
def init_params(key):
    ks = jax.random.split(key, 16)
    k = 1.0 / jnp.sqrt(jnp.float32(N_MAPS))

    def u(key, shape):
        return jax.random.uniform(key, shape, jnp.float32, -k, k)

    return {
        # bn0 (1 channel)
        "bn0_gamma": jax.random.uniform(ks[0], (1,), jnp.float32, 0.5, 1.5),
        "bn0_beta":  jax.random.uniform(ks[1], (1,), jnp.float32, -0.5, 0.5),
        "bn0_mean":  jnp.zeros((1,), jnp.float32),
        "bn0_var":   jnp.ones((1,), jnp.float32),
        # GRU layer 1: input 40 -> 64
        "gru1_wih": u(ks[2], (3 * N_MAPS, INPUT_FEATS)),
        "gru1_whh": u(ks[3], (3 * N_MAPS, N_MAPS)),
        "gru1_bih": u(ks[4], (3 * N_MAPS,)),
        "gru1_bhh": u(ks[5], (3 * N_MAPS,)),
        # GRU layer 2: 64 -> 64
        "gru2_wih": u(ks[6], (3 * N_MAPS, N_MAPS)),
        "gru2_whh": u(ks[7], (3 * N_MAPS, N_MAPS)),
        "gru2_bih": u(ks[8], (3 * N_MAPS,)),
        "gru2_bhh": u(ks[9], (3 * N_MAPS,)),
        # bn1
        "bn1_gamma": jax.random.uniform(ks[10], (N_MAPS,), jnp.float32, 0.5, 1.5),
        "bn1_beta":  jax.random.uniform(ks[11], (N_MAPS,), jnp.float32, -0.5, 0.5),
        "bn1_mean":  jnp.zeros((N_MAPS,), jnp.float32),
        "bn1_var":   jnp.ones((N_MAPS,), jnp.float32),
        # fc (the original code's `nn.Liner` typo -> nn.Linear(64, label_num))
        "fc_w": u(ks[12], (LABEL_NUM, N_MAPS)),
        "fc_b": u(ks[13], (LABEL_NUM,)),
    }


def prepare_kernel_params(params, seq_len):
    """One-time weight packing / gate fusion / bias & bn1+fc+last-slice folds
    (done once, outside jit)."""
    H = N_MAPS
    T = seq_len
    L = LABEL_NUM

    # bn0 (eval-mode, single channel) -> scalar affine applied in the wrapper
    scale0 = params["bn0_gamma"] / jnp.sqrt(params["bn0_var"] + BN_EPS)
    shift0 = params["bn0_beta"] - params["bn0_mean"] * scale0

    def pack_layer(w_ih, w_hh, b_ih, b_hh):
        # w_ih: (3H, D) rows [r; z; n]  ->  (D, 3H) columns [r|z|n]
        w = jnp.transpose(w_ih)
        u = jnp.transpose(w_hh)                               # (H, 3H)
        u_rz = u[:, :2 * H]                                   # fused r|z (H, 2H)
        u_n = u[:, 2 * H:]                                    # (H, H)
        # bh_r, bh_z fold into bi_r, bi_z (added pre-nonlinearity anyway);
        # bh_n must stay inside r*(...) so it is kept separate.
        bi = jnp.concatenate([b_ih[:2 * H] + b_hh[:2 * H],
                              b_ih[2 * H:]]).reshape(1, 3 * H)
        bh_n = b_hh[2 * H:].reshape(1, H)
        return w, u_rz, u_n, bi, bh_n

    w1, u1rz, u1n, bi1, bh1n = pack_layer(params["gru1_wih"], params["gru1_whh"],
                                          params["gru1_bih"], params["gru1_bhh"])
    w2, u2rz, u2n, bi2, bh2n = pack_layer(params["gru2_wih"], params["gru2_whh"],
                                          params["gru2_bih"], params["gru2_bhh"])

    # bn1 (eval-mode affine) folded exactly into fc ...
    scale1 = params["bn1_gamma"] / jnp.sqrt(params["bn1_var"] + BN_EPS)
    shift1 = params["bn1_beta"] - params["bn1_mean"] * scale1
    w_fc = jnp.transpose(params["fc_w"])                      # (H, L)
    w_fc_eff = scale1[:, None] * w_fc                         # (H, L)
    b_out_l = shift1 @ w_fc + params["fc_b"]                  # (L,)

    # ... and the raw-reshape "last slice" x.reshape(B, H, T)[:, :, -1] folded
    # into a sparse selection matmul: channel i reads flat element i*T + (T-1)
    # of each batch's (T, H) block.  Lane dim padded L -> 128 for a full-lane
    # output store.
    flat_idx = jnp.arange(H) * T + (T - 1)                    # (H,)
    w_sel = jnp.zeros((T * H, LANE), jnp.float32).at[flat_idx, :L].set(w_fc_eff)
    b_out = jnp.zeros((1, LANE), jnp.float32).at[0, :L].set(b_out_l)

    return dict(
        bn0_scale=scale0[0], bn0_shift=shift0[0],
        w1=w1, u1rz=u1rz, u1n=u1n, bi1=bi1, bh1n=bh1n,
        w2=w2, u2rz=u2rz, u2n=u2n, bi2=bi2, bh2n=bh2n,
        w_sel=w_sel, b_out=b_out,
    )


# ----------------------------------------------------------------------------
# Full forward pass
# ----------------------------------------------------------------------------
def gru_model_forward(x, kp):
    B, C, F, T = x.shape                                      # (B, 1, 40, T)

    # bn0 (eval-mode, single channel => scalar affine); XLA fuses this with the
    # layout transform below.
    x = x * kp["bn0_scale"] + kp["bn0_shift"]

    # x.view(B, T, 40): raw row-major reshape, exactly as the PyTorch .view()
    x = jnp.reshape(x, (B, T, F))

    # Time-major layout + pad batch to one sublane tile (8 rows) so every
    # per-timestep slice inside the kernel is tile aligned.
    Bp = max(SUBLANE, ((B + SUBLANE - 1) // SUBLANE) * SUBLANE)
    x = jnp.transpose(x, (1, 0, 2))                           # (T, B, 40)
    if Bp != B:
        x = jnp.pad(x, ((0, 0), (0, Bp - B), (0, 0)))
    x = jnp.reshape(x, (T * Bp, F))                           # (T*Bp, 40)

    out = fused_gru_pallas(x, kp, Bp)                         # (Bp, 128)
    return out[:B, :LABEL_NUM]


# ----------------------------------------------------------------------------
# Pure-JAX reference (literal translation of the PyTorch forward) for checking
# ----------------------------------------------------------------------------
def _reference_forward(x, params):
    B, C, F, T = x.shape
    H = N_MAPS
    scale0 = params["bn0_gamma"] / jnp.sqrt(params["bn0_var"] + BN_EPS)
    shift0 = params["bn0_beta"] - params["bn0_mean"] * scale0
    x = x * scale0.reshape(1, C, 1, 1) + shift0.reshape(1, C, 1, 1)
    x = jnp.reshape(x, (B, T, F))

    def gru(xs, w_ih, w_hh, b_ih, b_hh):
        h = jnp.zeros((B, H), jnp.float32)
        outs = []
        for t in range(xs.shape[1]):
            gi = xs[:, t, :] @ w_ih.T + b_ih
            gh = h @ w_hh.T + b_hh
            r = jax.nn.sigmoid(gi[:, :H] + gh[:, :H])
            z = jax.nn.sigmoid(gi[:, H:2 * H] + gh[:, H:2 * H])
            n = jnp.tanh(gi[:, 2 * H:] + r * gh[:, 2 * H:])
            h = (1.0 - z) * n + z * h
            outs.append(h)
        return jnp.stack(outs, axis=1)                        # (B, T, H)

    h1 = gru(x, params["gru1_wih"], params["gru1_whh"],
             params["gru1_bih"], params["gru1_bhh"])
    h2 = gru(h1, params["gru2_wih"], params["gru2_whh"],
             params["gru2_bih"], params["gru2_bhh"])
    last = jnp.reshape(h2, (B, H, T))[:, :, -1]               # raw reshape + slice
    scale1 = params["bn1_gamma"] / jnp.sqrt(params["bn1_var"] + BN_EPS)
    shift1 = params["bn1_beta"] - params["bn1_mean"] * scale1
    y = last * scale1 + shift1
    return y @ params["fc_w"].T + params["fc_b"]


if __name__ == "__main__":
    key = jax.random.PRNGKey(0)
    pkey, xkey = jax.random.split(key)
    params = init_params(pkey)

    B, T = 2, 8
    x = jax.random.normal(xkey, (B, 1, INPUT_FEATS, T), jnp.float32)   # (2, 1, 40, 8)

    kparams = prepare_kernel_params(params, seq_len=T)        # one-time prep, outside jit
    fwd = jax.jit(gru_model_forward)
    out = jax.block_until_ready(fwd(x, kparams))

    assert out.shape == (B, LABEL_NUM)
    assert bool(jnp.all(jnp.isfinite(out)))

    ref = _reference_forward(x, params)
    max_err = float(jnp.max(jnp.abs(out - ref)))
    # All-f32 path: tight tolerance (per review) so fold/packing bugs are caught.
    assert max_err < 1e-4, f"mismatch vs reference: max_err={max_err}"

    print("KERNEL_OK")
</pallas_src>

<mosaic_0001>
module attributes {stable_mosaic.version = 11 : i64} {
  func.func @_fused_gru_kernel(%arg0: memref<64x40xf32, #tpu.memory_space<vmem>>, %arg1: memref<40x192xf32, #tpu.memory_space<vmem>>, %arg2: memref<64x128xf32, #tpu.memory_space<vmem>>, %arg3: memref<64x64xf32, #tpu.memory_space<vmem>>, %arg4: memref<1x192xf32, #tpu.memory_space<vmem>>, %arg5: memref<1x64xf32, #tpu.memory_space<vmem>>, %arg6: memref<64x192xf32, #tpu.memory_space<vmem>>, %arg7: memref<64x128xf32, #tpu.memory_space<vmem>>, %arg8: memref<64x64xf32, #tpu.memory_space<vmem>>, %arg9: memref<1x192xf32, #tpu.memory_space<vmem>>, %arg10: memref<1x64xf32, #tpu.memory_space<vmem>>, %arg11: memref<512x128xf32, #tpu.memory_space<vmem>>, %arg12: memref<1x128xf32, #tpu.memory_space<vmem>>, %arg13: memref<8x128xf32, #tpu.memory_space<vmem>>, %arg14: memref<64x192xf32, #tpu.memory_space<vmem>>) attributes {dimension_semantics = [], scalar_prefetch = 0 : i64, scratch_operands = 1 : i64, tpu.core_type = #tpu.core_type<tc>} {
    %c0 = arith.constant 0 : index
    %c0_0 = arith.constant 0 : index
    %0 = vector.load %arg0[%c0, %c0_0] : memref<64x40xf32, #tpu.memory_space<vmem>>, vector<64x40xf32>
    %c0_1 = arith.constant 0 : index
    %c0_2 = arith.constant 0 : index
    %1 = vector.load %arg1[%c0_1, %c0_2] : memref<40x192xf32, #tpu.memory_space<vmem>>, vector<40x192xf32>
    %cst = arith.constant dense<0.000000e+00> : vector<64x192xf32>
    %2 = tpu.matmul %0, %1, %cst {dimension_numbers = #tpu.dot_dimension_numbers<[1], [0], [0], [1], [0, 0, 1, 1], [], []>} : vector<64x40xf32>, vector<40x192xf32>, vector<64x192xf32> -> vector<64x192xf32>
    %c0_3 = arith.constant 0 : index
    %c0_4 = arith.constant 0 : index
    %3 = vector.load %arg4[%c0_3, %c0_4] : memref<1x192xf32, #tpu.memory_space<vmem>>, vector<1x192xf32>
    %4 = vector.broadcast %3 : vector<1x192xf32> to vector<64x192xf32>
    %5 = arith.addf %2, %4 : vector<64x192xf32>
    %c0_5 = arith.constant 0 : index
    %c0_6 = arith.constant 0 : index
    %6 = vector.load %arg14[%c0_5, %c0_6] : memref<64x192xf32, #tpu.memory_space<vmem>>, vector<64x192xf32>
    tpu.vector_store %arg14[%c0_5, %c0_6], %5 {strides = array<i32>} : memref<64x192xf32, #tpu.memory_space<vmem>>, vector<64x192xf32>,
    %c0_7 = arith.constant 0 : index
    %c0_8 = arith.constant 0 : index
    %7 = vector.load %arg5[%c0_7, %c0_8] : memref<1x64xf32, #tpu.memory_space<vmem>>, vector<1x64xf32>
    %8 = vector.shape_cast %7 : vector<1x64xf32> to vector<1x64xf32>
    %9 = vector.broadcast %8 : vector<1x64xf32> to vector<8x64xf32>
    %c0_9 = arith.constant 0 : index
    %c0_10 = arith.constant 0 : index
    %10 = vector.load %arg10[%c0_9, %c0_10] : memref<1x64xf32, #tpu.memory_space<vmem>>, vector<1x64xf32>
    %11 = vector.shape_cast %10 : vector<1x64xf32> to vector<1x64xf32>
    %12 = vector.broadcast %11 : vector<1x64xf32> to vector<8x64xf32>
    %c0_11 = arith.constant 0 : index
    %c0_12 = arith.constant 0 : index
    %13 = vector.load %arg9[%c0_11, %c0_12] : memref<1x192xf32, #tpu.memory_space<vmem>>, vector<1x192xf32>
    %14 = vector.shape_cast %13 : vector<1x192xf32> to vector<1x192xf32>
    %15 = vector.broadcast %14 : vector<1x192xf32> to vector<8x192xf32>
    %cst_13 = arith.constant 0.000000e+00 : f32
    %16 = vector.broadcast %cst_13 : f32 to vector<8x64xf32>
    %cst_14 = arith.constant 0.000000e+00 : f32
    %17 = vector.broadcast %cst_14 : f32 to vector<8x64xf32>
    %cst_15 = arith.constant 0.000000e+00 : f32
    %18 = vector.broadcast %cst_15 : f32 to vector<8x128xf32>
    %c0_16 = arith.constant 0 : index
    %c0_17 = arith.constant 0 : index
    %19 = vector.load %arg14[%c0_16, %c0_17] : memref<64x192xf32, #tpu.memory_space<vmem>>, vector<8x192xf32>
    %20 = vector.extract_strided_slice %19 {offsets = [0, 0], sizes = [8, 128], strides = [1, 1]} : vector<8x192xf32> to vector<8x128xf32>
    %21 = vector.extract_strided_slice %19 {offsets = [0, 128], sizes = [8, 64], strides = [1, 1]} : vector<8x192xf32> to vector<8x64xf32>
    %c0_18 = arith.constant 0 : index
    %c0_19 = arith.constant 0 : index
    %22 = vector.load %arg2[%c0_18, %c0_19] : memref<64x128xf32, #tpu.memory_space<vmem>>, vector<64x128xf32>
    %c0_20 = arith.constant 0 : index
    %c0_21 = arith.constant 0 : index
    %23 = vector.load %arg3[%c0_20, %c0_21] : memref<64x64xf32, #tpu.memory_space<vmem>>, vector<64x64xf32>
    %cst_22 = arith.constant dense<0.000000e+00> : vector<8x128xf32>
    %24 = tpu.matmul %16, %22, %cst_22 {dimension_numbers = #tpu.dot_dimension_numbers<[1], [0], [0], [1], [0, 0, 1, 1], [], []>} : vector<8x64xf32>, vector<64x128xf32>, vector<8x128xf32> -> vector<8x128xf32>
    %25 = arith.addf %20, %24 : vector<8x128xf32>
    %26 = arith.negf %25 : vector<8x128xf32>
    %27 = math.exp %26 : vector<8x128xf32>
    %cst_23 = arith.constant 1.000000e+00 : f32
    %28 = vector.broadcast %cst_23 : f32 to vector<8x128xf32>
    %29 = arith.addf %28, %27 : vector<8x128xf32>
    %30 = arith.divf %28, %29 : vector<8x128xf32>
    %31 = vector.extract_strided_slice %30 {offsets = [0, 0], sizes = [8, 64], strides = [1, 1]} : vector<8x128xf32> to vector<8x64xf32>
    %32 = vector.extract_strided_slice %30 {offsets = [0, 64], sizes = [8, 64], strides = [1, 1]} : vector<8x128xf32> to vector<8x64xf32>
    %cst_24 = arith.constant dense<0.000000e+00> : vector<8x64xf32>
    %33 = tpu.matmul %16, %23, %cst_24 {dimension_numbers = #tpu.dot_dimension_numbers<[1], [0], [0], [1], [0, 0, 1, 1], [], []>} : vector<8x64xf32>, vector<64x64xf32>, vector<8x64xf32> -> vector<8x64xf32>
    %34 = arith.addf %33, %9 : vector<8x64xf32>
    %35 = arith.mulf %31, %34 : vector<8x64xf32>
    %36 = arith.addf %21, %35 : vector<8x64xf32>
    %37 = math.tanh %36 : vector<8x64xf32>
    %38 = arith.subf %16, %37 : vector<8x64xf32>
    %39 = arith.mulf %32, %38 : vector<8x64xf32>
    %40 = arith.addf %37, %39 : vector<8x64xf32>
    %c0_25 = arith.constant 0 : index
    %c0_26 = arith.constant 0 : index
    %41 = vector.load %arg6[%c0_25, %c0_26] : memref<64x192xf32, #tpu.memory_space<vmem>>, vector<64x192xf32>
    %cst_27 = arith.constant dense<0.000000e+00> : vector<8x192xf32>
    %42 = tpu.matmul %40, %41, %cst_27 {dimension_numbers = #tpu.dot_dimension_numbers<[1], [0], [0], [1], [0, 0, 1, 1], [], []>} : vector<8x64xf32>, vector<64x192xf32>, vector<8x192xf32> -> vector<8x192xf32>
    %43 = arith.addf %42, %15 : vector<8x192xf32>
    %44 = vector.extract_strided_slice %43 {offsets = [0, 0], sizes = [8, 128], strides = [1, 1]} : vector<8x192xf32> to vector<8x128xf32>
    %45 = vector.extract_strided_slice %43 {offsets = [0, 128], sizes = [8, 64], strides = [1, 1]} : vector<8x192xf32> to vector<8x64xf32>
    %c0_28 = arith.constant 0 : index
    %c0_29 = arith.constant 0 : index
    %46 = vector.load %arg7[%c0_28, %c0_29] : memref<64x128xf32, #tpu.memory_space<vmem>>, vector<64x128xf32>
    %c0_30 = arith.constant 0 : index
    %c0_31 = arith.constant 0 : index
    %47 = vector.load %arg8[%c0_30, %c0_31] : memref<64x64xf32, #tpu.memory_space<vmem>>, vector<64x64xf32>
    %cst_32 = arith.constant dense<0.000000e+00> : vector<8x128xf32>
    %48 = tpu.matmul %17, %46, %cst_32 {dimension_numbers = #tpu.dot_dimension_numbers<[1], [0], [0], [1], [0, 0, 1, 1], [], []>} : vector<8x64xf32>, vector<64x128xf32>, vector<8x128xf32> -> vector<8x128xf32>
    %49 = arith.addf %44, %48 : vector<8x128xf32>
    %50 = arith.negf %49 : vector<8x128xf32>
    %51 = math.exp %50 : vector<8x128xf32>
    %cst_33 = arith.constant 1.000000e+00 : f32
    %52 = vector.broadcast %cst_33 : f32 to vector<8x128xf32>
    %53 = arith.addf %52, %51 : vector<8x128xf32>
    %54 = arith.divf %52, %53 : vector<8x128xf32>
    %55 = vector.extract_strided_slice %54 {offsets = [0, 0], sizes = [8, 64], strides = [1, 1]} : vector<8x128xf32> to vector<8x64xf32>
    %56 = vector.extract_strided_slice %54 {offsets = [0, 64], sizes = [8, 64], strides = [1, 1]} : vector<8x128xf32> to vector<8x64xf32>
    %cst_34 = arith.constant dense<0.000000e+00> : vector<8x64xf32>
    %57 = tpu.matmul %17, %47, %cst_34 {dimension_numbers = #tpu.dot_dimension_numbers<[1], [0], [0], [1], [0, 0, 1, 1], [], []>} : vector<8x64xf32>, vector<64x64xf32>, vector<8x64xf32> -> vector<8x64xf32>
    %58 = arith.addf %57, %12 : vector<8x64xf32>
    %59 = arith.mulf %55, %58 : vector<8x64xf32>
    %60 = arith.addf %45, %59 : vector<8x64xf32>
    %61 = math.tanh %60 : vector<8x64xf32>
    %62 = arith.subf %17, %61 : vector<8x64xf32>
    %63 = arith.mulf %56, %62 : vector<8x64xf32>
    %64 = arith.addf %61, %63 : vector<8x64xf32>
    %c0_35 = arith.constant 0 : index
    %c0_36 = arith.constant 0 : index
    %65 = vector.load %arg11[%c0_35, %c0_36] : memref<512x128xf32, #tpu.memory_space<vmem>>, vector<64x128xf32>
    %cst_37 = arith.constant dense<0.000000e+00> : vector<8x128xf32>
    %66 = tpu.matmul %64, %65, %cst_37 {dimension_numbers = #tpu.dot_dimension_numbers<[1], [0], [0], [1], [0, 0, 1, 1], [], []>} : vector<8x64xf32>, vector<64x128xf32>, vector<8x128xf32> -> vector<8x128xf32>
    %67 = arith.addf %18, %66 : vector<8x128xf32>
    %c8 = arith.constant 8 : index
    %c0_38 = arith.constant 0 : index
    %68 = vector.load %arg14[%c8, %c0_38] : memref<64x192xf32, #tpu.memory_space<vmem>>, vector<8x192xf32>
    %69 = vector.extract_strided_slice %68 {offsets = [0, 0], sizes = [8, 128], strides = [1, 1]} : vector<8x192xf32> to vector<8x128xf32>
    %70 = vector.extract_strided_slice %68 {offsets = [0, 128], sizes = [8, 64], strides = [1, 1]} : vector<8x192xf32> to vector<8x64xf32>
    %c0_39 = arith.constant 0 : index
    %c0_40 = arith.constant 0 : index
    %71 = vector.load %arg2[%c0_39, %c0_40] : memref<64x128xf32, #tpu.memory_space<vmem>>, vector<64x128xf32>
    %c0_41 = arith.constant 0 : index
    %c0_42 = arith.constant 0 : index
    %72 = vector.load %arg3[%c0_41, %c0_42] : memref<64x64xf32, #tpu.memory_space<vmem>>, vector<64x64xf32>
    %cst_43 = arith.constant dense<0.000000e+00> : vector<8x128xf32>
    %73 = tpu.matmul %40, %71, %cst_43 {dimension_numbers = #tpu.dot_dimension_numbers<[1], [0], [0], [1], [0, 0, 1, 1], [], []>} : vector<8x64xf32>, vector<64x128xf32>, vector<8x128xf32> -> vector<8x128xf32>
    %74 = arith.addf %69, %73 : vector<8x128xf32>
    %75 = arith.negf %74 : vector<8x128xf32>
    %76 = math.exp %75 : vector<8x128xf32>
    %cst_44 = arith.constant 1.000000e+00 : f32
    %77 = vector.broadcast %cst_44 : f32 to vector<8x128xf32>
    %78 = arith.addf %77, %76 : vector<8x128xf32>
    %79 = arith.divf %77, %78 : vector<8x128xf32>
    %80 = vector.extract_strided_slice %79 {offsets = [0, 0], sizes = [8, 64], strides = [1, 1]} : vector<8x128xf32> to vector<8x64xf32>
    %81 = vector.extract_strided_slice %79 {offsets = [0, 64], sizes = [8, 64], strides = [1, 1]} : vector<8x128xf32> to vector<8x64xf32>
    %cst_45 = arith.constant dense<0.000000e+00> : vector<8x64xf32>
    %82 = tpu.matmul %40, %72, %cst_45 {dimension_numbers = #tpu.dot_dimension_numbers<[1], [0], [0], [1], [0, 0, 1, 1], [], []>} : vector<8x64xf32>, vector<64x64xf32>, vector<8x64xf32> -> vector<8x64xf32>
    %83 = arith.addf %82, %9 : vector<8x64xf32>
    %84 = arith.mulf %80, %83 : vector<8x64xf32>
    %85 = arith.addf %70, %84 : vector<8x64xf32>
    %86 = math.tanh %85 : vector<8x64xf32>
    %87 = arith.subf %40, %86 : vector<8x64xf32>
    %88 = arith.mulf %81, %87 : vector<8x64xf32>
    %89 = arith.addf %86, %88 : vector<8x64xf32>
    %c0_46 = arith.constant 0 : index
    %c0_47 = arith.constant 0 : index
    %90 = vector.load %arg6[%c0_46, %c0_47] : memref<64x192xf32, #tpu.memory_space<vmem>>, vector<64x192xf32>
    %cst_48 = arith.constant dense<0.000000e+00> : vector<8x192xf32>
    %91 = tpu.matmul %89, %90, %cst_48 {dimension_numbers = #tpu.dot_dimension_numbers<[1], [0], [0], [1], [0, 0, 1, 1], [], []>} : vector<8x64xf32>, vector<64x192xf32>, vector<8x192xf32> -> vector<8x192xf32>
    %92 = arith.addf %91, %15 : vector<8x192xf32>
    %93 = vector.extract_strided_slice %92 {offsets = [0, 0], sizes = [8, 128], strides = [1, 1]} : vector<8x192xf32> to vector<8x128xf32>
    %94 = vector.extract_strided_slice %92 {offsets = [0, 128], sizes = [8, 64], strides = [1, 1]} : vector<8x192xf32> to vector<8x64xf32>
    %c0_49 = arith.constant 0 : index
    %c0_50 = arith.constant 0 : index
    %95 = vector.load %arg7[%c0_49, %c0_50] : memref<64x128xf32, #tpu.memory_space<vmem>>, vector<64x128xf32>
    %c0_51 = arith.constant 0 : index
    %c0_52 = arith.constant 0 : index
    %96 = vector.load %arg8[%c0_51, %c0_52] : memref<64x64xf32, #tpu.memory_space<vmem>>, vector<64x64xf32>
    %cst_53 = arith.constant dense<0.000000e+00> : vector<8x128xf32>
    %97 = tpu.matmul %64, %95, %cst_53 {dimension_numbers = #tpu.dot_dimension_numbers<[1], [0], [0], [1], [0, 0, 1, 1], [], []>} : vector<8x64xf32>, vector<64x128xf32>, vector<8x128xf32> -> vector<8x128xf32>
    %98 = arith.addf %93, %97 : vector<8x128xf32>
    %99 = arith.negf %98 : vector<8x128xf32>
    %100 = math.exp %99 : vector<8x128xf32>
    %cst_54 = arith.constant 1.000000e+00 : f32
    %101 = vector.broadcast %cst_54 : f32 to vector<8x128xf32>
    %102 = arith.addf %101, %100 : vector<8x128xf32>
    %103 = arith.divf %101, %102 : vector<8x128xf32>
    %104 = vector.extract_strided_slice %103 {offsets = [0, 0], sizes = [8, 64], strides = [1, 1]} : vector<8x128xf32> to vector<8x64xf32>
    %105 = vector.extract_strided_slice %103 {offsets = [0, 64], sizes = [8, 64], strides = [1, 1]} : vector<8x128xf32> to vector<8x64xf32>
    %cst_55 = arith.constant dense<0.000000e+00> : vector<8x64xf32>
    %106 = tpu.matmul %64, %96, %cst_55 {dimension_numbers = #tpu.dot_dimension_numbers<[1], [0], [0], [1], [0, 0, 1, 1], [], []>} : vector<8x64xf32>, vector<64x64xf32>, vector<8x64xf32> -> vector<8x64xf32>
    %107 = arith.addf %106, %12 : vector<8x64xf32>
    %108 = arith.mulf %104, %107 : vector<8x64xf32>
    %109 = arith.addf %94, %108 : vector<8x64xf32>
    %110 = math.tanh %109 : vector<8x64xf32>
    %111 = arith.subf %64, %110 : vector<8x64xf32>
    %112 = arith.mulf %105, %111 : vector<8x64xf32>
    %113 = arith.addf %110, %112 : vector<8x64xf32>
    %c64 = arith.constant 64 : index
    %c0_56 = arith.constant 0 : index
    %114 = vector.load %arg11[%c64, %c0_56] : memref<512x128xf32, #tpu.memory_space<vmem>>, vector<64x128xf32>
    %cst_57 = arith.constant dense<0.000000e+00> : vector<8x128xf32>
    %115 = tpu.matmul %113, %114, %cst_57 {dimension_numbers = #tpu.dot_dimension_numbers<[1], [0], [0], [1], [0, 0, 1, 1], [], []>} : vector<8x64xf32>, vector<64x128xf32>, vector<8x128xf32> -> vector<8x128xf32>
    %116 = arith.addf %67, %115 : vector<8x128xf32>
    %c16 = arith.constant 16 : index
    %c0_58 = arith.constant 0 : index
    %117 = vector.load %arg14[%c16, %c0_58] : memref<64x192xf32, #tpu.memory_space<vmem>>, vector<8x192xf32>
    %118 = vector.extract_strided_slice %117 {offsets = [0, 0], sizes = [8, 128], strides = [1, 1]} : vector<8x192xf32> to vector<8x128xf32>
    %119 = vector.extract_strided_slice %117 {offsets = [0, 128], sizes = [8, 64], strides = [1, 1]} : vector<8x192xf32> to vector<8x64xf32>
    %c0_59 = arith.constant 0 : index
    %c0_60 = arith.constant 0 : index
    %120 = vector.load %arg2[%c0_59, %c0_60] : memref<64x128xf32, #tpu.memory_space<vmem>>, vector<64x128xf32>
    %c0_61 = arith.constant 0 : index
    %c0_62 = arith.constant 0 : index
    %121 = vector.load %arg3[%c0_61, %c0_62] : memref<64x64xf32, #tpu.memory_space<vmem>>, vector<64x64xf32>
    %cst_63 = arith.constant dense<0.000000e+00> : vector<8x128xf32>
    %122 = tpu.matmul %89, %120, %cst_63 {dimension_numbers = #tpu.dot_dimension_numbers<[1], [0], [0], [1], [0, 0, 1, 1], [], []>} : vector<8x64xf32>, vector<64x128xf32>, vector<8x128xf32> -> vector<8x128xf32>
    %123 = arith.addf %118, %122 : vector<8x128xf32>
    %124 = arith.negf %123 : vector<8x128xf32>
    %125 = math.exp %124 : vector<8x128xf32>
    %cst_64 = arith.constant 1.000000e+00 : f32
    %126 = vector.broadcast %cst_64 : f32 to vector<8x128xf32>
    %127 = arith.addf %126, %125 : vector<8x128xf32>
    %128 = arith.divf %126, %127 : vector<8x128xf32>
    %129 = vector.extract_strided_slice %128 {offsets = [0, 0], sizes = [8, 64], strides = [1, 1]} : vector<8x128xf32> to vector<8x64xf32>
    %130 = vector.extract_strided_slice %128 {offsets = [0, 64], sizes = [8, 64], strides = [1, 1]} : vector<8x128xf32> to vector<8x64xf32>
    %cst_65 = arith.constant dense<0.000000e+00> : vector<8x64xf32>
    %131 = tpu.matmul %89, %121, %cst_65 {dimension_numbers = #tpu.dot_dimension_numbers<[1], [0], [0], [1], [0, 0, 1, 1], [], []>} : vector<8x64xf32>, vector<64x64xf32>, vector<8x64xf32> -> vector<8x64xf32>
    %132 = arith.addf %131, %9 : vector<8x64xf32>
    %133 = arith.mulf %129, %132 : vector<8x64xf32>
    %134 = arith.addf %119, %133 : vector<8x64xf32>
    %135 = math.tanh %134 : vector<8x64xf32>
    %136 = arith.subf %89, %135 : vector<8x64xf32>
    %137 = arith.mulf %130, %136 : vector<8x64xf32>
    %138 = arith.addf %135, %137 : vector<8x64xf32>
    %c0_66 = arith.constant 0 : index
    %c0_67 = arith.constant 0 : index
    %139 = vector.load %arg6[%c0_66, %c0_67] : memref<64x192xf32, #tpu.memory_space<vmem>>, vector<64x192xf32>
    %cst_68 = arith.constant dense<0.000000e+00> : vector<8x192xf32>
    %140 = tpu.matmul %138, %139, %cst_68 {dimension_numbers = #tpu.dot_dimension_numbers<[1], [0], [0], [1], [0, 0, 1, 1], [], []>} : vector<8x64xf32>, vector<64x192xf32>, vector<8x192xf32> -> vector<8x192xf32>
    %141 = arith.addf %140, %15 : vector<8x192xf32>
    %142 = vector.extract_strided_slice %141 {offsets = [0, 0], sizes = [8, 128], strides = [1, 1]} : vector<8x192xf32> to vector<8x128xf32>
    %143 = vector.extract_strided_slice %141 {offsets = [0, 128], sizes = [8, 64], strides = [1, 1]} : vector<8x192xf32> to vector<8x64xf32>
    %c0_69 = arith.constant 0 : index
    %c0_70 = arith.constant 0 : index
    %144 = vector.load %arg7[%c0_69, %c0_70] : memref<64x128xf32, #tpu.memory_space<vmem>>, vector<64x128xf32>
    %c0_71 = arith.constant 0 : index
    %c0_72 = arith.constant 0 : index
    %145 = vector.load %arg8[%c0_71, %c0_72] : memref<64x64xf32, #tpu.memory_space<vmem>>, vector<64x64xf32>
    %cst_73 = arith.constant dense<0.000000e+00> : vector<8x128xf32>
    %146 = tpu.matmul %113, %144, %cst_73 {dimension_numbers = #tpu.dot_dimension_numbers<[1], [0], [0], [1], [0, 0, 1, 1], [], []>} : vector<8x64xf32>, vector<64x128xf32>, vector<8x128xf32> -> vector<8x128xf32>
    %147 = arith.addf %142, %146 : vector<8x128xf32>
    %148 = arith.negf %147 : vector<8x128xf32>
    %149 = math.exp %148 : vector<8x128xf32>
    %cst_74 = arith.constant 1.000000e+00 : f32
    %150 = vector.broadcast %cst_74 : f32 to vector<8x128xf32>
    %151 = arith.addf %150, %149 : vector<8x128xf32>
    %152 = arith.divf %150, %151 : vector<8x128xf32>
    %153 = vector.extract_strided_slice %152 {offsets = [0, 0], sizes = [8, 64], strides = [1, 1]} : vector<8x128xf32> to vector<8x64xf32>
    %154 = vector.extract_strided_slice %152 {offsets = [0, 64], sizes = [8, 64], strides = [1, 1]} : vector<8x128xf32> to vector<8x64xf32>
    %cst_75 = arith.constant dense<0.000000e+00> : vector<8x64xf32>
    %155 = tpu.matmul %113, %145, %cst_75 {dimension_numbers = #tpu.dot_dimension_numbers<[1], [0], [0], [1], [0, 0, 1, 1], [], []>} : vector<8x64xf32>, vector<64x64xf32>, vector<8x64xf32> -> vector<8x64xf32>
    %156 = arith.addf %155, %12 : vector<8x64xf32>
    %157 = arith.mulf %153, %156 : vector<8x64xf32>
    %158 = arith.addf %143, %157 : vector<8x64xf32>
    %159 = math.tanh %158 : vector<8x64xf32>
    %160 = arith.subf %113, %159 : vector<8x64xf32>
    %161 = arith.mulf %154, %160 : vector<8x64xf32>
    %162 = arith.addf %159, %161 : vector<8x64xf32>
    %c128 = arith.constant 128 : index
    %c0_76 = arith.constant 0 : index
    %163 = vector.load %arg11[%c128, %c0_76] : memref<512x128xf32, #tpu.memory_space<vmem>>, vector<64x128xf32>
    %cst_77 = arith.constant dense<0.000000e+00> : vector<8x128xf32>
    %164 = tpu.matmul %162, %163, %cst_77 {dimension_numbers = #tpu.dot_dimension_numbers<[1], [0], [0], [1], [0, 0, 1, 1], [], []>} : vector<8x64xf32>, vector<64x128xf32>, vector<8x128xf32> -> vector<8x128xf32>
    %165 = arith.addf %116, %164 : vector<8x128xf32>
    %c24 = arith.constant 24 : index
    %c0_78 = arith.constant 0 : index
    %166 = vector.load %arg14[%c24, %c0_78] : memref<64x192xf32, #tpu.memory_space<vmem>>, vector<8x192xf32>
    %167 = vector.extract_strided_slice %166 {offsets = [0, 0], sizes = [8, 128], strides = [1, 1]} : vector<8x192xf32> to vector<8x128xf32>
    %168 = vector.extract_strided_slice %166 {offsets = [0, 128], sizes = [8, 64], strides = [1, 1]} : vector<8x192xf32> to vector<8x64xf32>
    %c0_79 = arith.constant 0 : index
    %c0_80 = arith.constant 0 : index
    %169 = vector.load %arg2[%c0_79, %c0_80] : memref<64x128xf32, #tpu.memory_space<vmem>>, vector<64x128xf32>
    %c0_81 = arith.constant 0 : index
    %c0_82 = arith.constant 0 : index
    %170 = vector.load %arg3[%c0_81, %c0_82] : memref<64x64xf32, #tpu.memory_space<vmem>>, vector<64x64xf32>
    %cst_83 = arith.constant dense<0.000000e+00> : vector<8x128xf32>
    %171 = tpu.matmul %138, %169, %cst_83 {dimension_numbers = #tpu.dot_dimension_numbers<[1], [0], [0], [1], [0, 0, 1, 1], [], []>} : vector<8x64xf32>, vector<64x128xf32>, vector<8x128xf32> -> vector<8x128xf32>
    %172 = arith.addf %167, %171 : vector<8x128xf32>
    %173 = arith.negf %172 : vector<8x128xf32>
    %174 = math.exp %173 : vector<8x128xf32>
    %cst_84 = arith.constant 1.000000e+00 : f32
    %175 = vector.broadcast %cst_84 : f32 to vector<8x128xf32>
    %176 = arith.addf %175, %174 : vector<8x128xf32>
    %177 = arith.divf %175, %176 : vector<8x128xf32>
    %178 = vector.extract_strided_slice %177 {offsets = [0, 0], sizes = [8, 64], strides = [1, 1]} : vector<8x128xf32> to vector<8x64xf32>
    %179 = vector.extract_strided_slice %177 {offsets = [0, 64], sizes = [8, 64], strides = [1, 1]} : vector<8x128xf32> to vector<8x64xf32>
    %cst_85 = arith.constant dense<0.000000e+00> : vector<8x64xf32>
    %180 = tpu.matmul %138, %170, %cst_85 {dimension_numbers = #tpu.dot_dimension_numbers<[1], [0], [0], [1], [0, 0, 1, 1], [], []>} : vector<8x64xf32>, vector<64x64xf32>, vector<8x64xf32> -> vector<8x64xf32>
    %181 = arith.addf %180, %9 : vector<8x64xf32>
    %182 = arith.mulf %178, %181 : vector<8x64xf32>
    %183 = arith.addf %168, %182 : vector<8x64xf32>
    %184 = math.tanh %183 : vector<8x64xf32>
    %185 = arith.subf %138, %184 : vector<8x64xf32>
    %186 = arith.mulf %179, %185 : vector<8x64xf32>
    %187 = arith.addf %184, %186 : vector<8x64xf32>
    %c0_86 = arith.constant 0 : index
    %c0_87 = arith.constant 0 : index
    %188 = vector.load %arg6[%c0_86, %c0_87] : memref<64x192xf32, #tpu.memory_space<vmem>>, vector<64x192xf32>
    %cst_88 = arith.constant dense<0.000000e+00> : vector<8x192xf32>
    %189 = tpu.matmul %187, %188, %cst_88 {dimension_numbers = #tpu.dot_dimension_numbers<[1], [0], [0], [1], [0, 0, 1, 1], [], []>} : vector<8x64xf32>, vector<64x192xf32>, vector<8x192xf32> -> vector<8x192xf32>
    %190 = arith.addf %189, %15 : vector<8x192xf32>
    %191 = vector.extract_strided_slice %190 {offsets = [0, 0], sizes = [8, 128], strides = [1, 1]} : vector<8x192xf32> to vector<8x128xf32>
    %192 = vector.extract_strided_slice %190 {offsets = [0, 128], sizes = [8, 64], strides = [1, 1]} : vector<8x192xf32> to vector<8x64xf32>
    %c0_89 = arith.constant 0 : index
    %c0_90 = arith.constant 0 : index
    %193 = vector.load %arg7[%c0_89, %c0_90] : memref<64x128xf32, #tpu.memory_space<vmem>>, vector<64x128xf32>
    %c0_91 = arith.constant 0 : index
    %c0_92 = arith.constant 0 : index
    %194 = vector.load %arg8[%c0_91, %c0_92] : memref<64x64xf32, #tpu.memory_space<vmem>>, vector<64x64xf32>
    %cst_93 = arith.constant dense<0.000000e+00> : vector<8x128xf32>
    %195 = tpu.matmul %162, %193, %cst_93 {dimension_numbers = #tpu.dot_dimension_numbers<[1], [0], [0], [1], [0, 0, 1, 1], [], []>} : vector<8x64xf32>, vector<64x128xf32>, vector<8x128xf32> -> vector<8x128xf32>
    %196 = arith.addf %191, %195 : vector<8x128xf32>
    %197 = arith.negf %196 : vector<8x128xf32>
    %198 = math.exp %197 : vector<8x128xf32>
    %cst_94 = arith.constant 1.000000e+00 : f32
    %199 = vector.broadcast %cst_94 : f32 to vector<8x128xf32>
    %200 = arith.addf %199, %198 : vector<8x128xf32>
    %201 = arith.divf %199, %200 : vector<8x128xf32>
    %202 = vector.extract_strided_slice %201 {offsets = [0, 0], sizes = [8, 64], strides = [1, 1]} : vector<8x128xf32> to vector<8x64xf32>
    %203 = vector.extract_strided_slice %201 {offsets = [0, 64], sizes = [8, 64], strides = [1, 1]} : vector<8x128xf32> to vector<8x64xf32>
    %cst_95 = arith.constant dense<0.000000e+00> : vector<8x64xf32>
    %204 = tpu.matmul %162, %194, %cst_95 {dimension_numbers = #tpu.dot_dimension_numbers<[1], [0], [0], [1], [0, 0, 1, 1], [], []>} : vector<8x64xf32>, vector<64x64xf32>, vector<8x64xf32> -> vector<8x64xf32>
    %205 = arith.addf %204, %12 : vector<8x64xf32>
    %206 = arith.mulf %202, %205 : vector<8x64xf32>
    %207 = arith.addf %192, %206 : vector<8x64xf32>
    %208 = math.tanh %207 : vector<8x64xf32>
    %209 = arith.subf %162, %208 : vector<8x64xf32>
    %210 = arith.mulf %203, %209 : vector<8x64xf32>
    %211 = arith.addf %208, %210 : vector<8x64xf32>
    %c192 = arith.constant 192 : index
    %c0_96 = arith.constant 0 : index
    %212 = vector.load %arg11[%c192, %c0_96] : memref<512x128xf32, #tpu.memory_space<vmem>>, vector<64x128xf32>
    %cst_97 = arith.constant dense<0.000000e+00> : vector<8x128xf32>
    %213 = tpu.matmul %211, %212, %cst_97 {dimension_numbers = #tpu.dot_dimension_numbers<[1], [0], [0], [1], [0, 0, 1, 1], [], []>} : vector<8x64xf32>, vector<64x128xf32>, vector<8x128xf32> -> vector<8x128xf32>
    %214 = arith.addf %165, %213 : vector<8x128xf32>
    %c32 = arith.constant 32 : index
    %c0_98 = arith.constant 0 : index
    %215 = vector.load %arg14[%c32, %c0_98] : memref<64x192xf32, #tpu.memory_space<vmem>>, vector<8x192xf32>
    %216 = vector.extract_strided_slice %215 {offsets = [0, 0], sizes = [8, 128], strides = [1, 1]} : vector<8x192xf32> to vector<8x128xf32>
    %217 = vector.extract_strided_slice %215 {offsets = [0, 128], sizes = [8, 64], strides = [1, 1]} : vector<8x192xf32> to vector<8x64xf32>
    %c0_99 = arith.constant 0 : index
    %c0_100 = arith.constant 0 : index
    %218 = vector.load %arg2[%c0_99, %c0_100] : memref<64x128xf32, #tpu.memory_space<vmem>>, vector<64x128xf32>
    %c0_101 = arith.constant 0 : index
    %c0_102 = arith.constant 0 : index
    %219 = vector.load %arg3[%c0_101, %c0_102] : memref<64x64xf32, #tpu.memory_space<vmem>>, vector<64x64xf32>
    %cst_103 = arith.constant dense<0.000000e+00> : vector<8x128xf32>
    %220 = tpu.matmul %187, %218, %cst_103 {dimension_numbers = #tpu.dot_dimension_numbers<[1], [0], [0], [1], [0, 0, 1, 1], [], []>} : vector<8x64xf32>, vector<64x128xf32>, vector<8x128xf32> -> vector<8x128xf32>
    %221 = arith.addf %216, %220 : vector<8x128xf32>
    %222 = arith.negf %221 : vector<8x128xf32>
    %223 = math.exp %222 : vector<8x128xf32>
    %cst_104 = arith.constant 1.000000e+00 : f32
    %224 = vector.broadcast %cst_104 : f32 to vector<8x128xf32>
    %225 = arith.addf %224, %223 : vector<8x128xf32>
    %226 = arith.divf %224, %225 : vector<8x128xf32>
    %227 = vector.extract_strided_slice %226 {offsets = [0, 0], sizes = [8, 64], strides = [1, 1]} : vector<8x128xf32> to vector<8x64xf32>
    %228 = vector.extract_strided_slice %226 {offsets = [0, 64], sizes = [8, 64], strides = [1, 1]} : vector<8x128xf32> to vector<8x64xf32>
    %cst_105 = arith.constant dense<0.000000e+00> : vector<8x64xf32>
    %229 = tpu.matmul %187, %219, %cst_105 {dimension_numbers = #tpu.dot_dimension_numbers<[1], [0], [0], [1], [0, 0, 1, 1], [], []>} : vector<8x64xf32>, vector<64x64xf32>, vector<8x64xf32> -> vector<8x64xf32>
    %230 = arith.addf %229, %9 : vector<8x64xf32>
    %231 = arith.mulf %227, %230 : vector<8x64xf32>
    %232 = arith.addf %217, %231 : vector<8x64xf32>
    %233 = math.tanh %232 : vector<8x64xf32>
    %234 = arith.subf %187, %233 : vector<8x64xf32>
    %235 = arith.mulf %228, %234 : vector<8x64xf32>
    %236 = arith.addf %233, %235 : vector<8x64xf32>
    %c0_106 = arith.constant 0 : index
    %c0_107 = arith.constant 0 : index
    %237 = vector.load %arg6[%c0_106, %c0_107] : memref<64x192xf32, #tpu.memory_space<vmem>>, vector<64x192xf32>
    %cst_108 = arith.constant dense<0.000000e+00> : vector<8x192xf32>
    %238 = tpu.matmul %236, %237, %cst_108 {dimension_numbers = #tpu.dot_dimension_numbers<[1], [0], [0], [1], [0, 0, 1, 1], [], []>} : vector<8x64xf32>, vector<64x192xf32>, vector<8x192xf32> -> vector<8x192xf32>
    %239 = arith.addf %238, %15 : vector<8x192xf32>
    %240 = vector.extract_strided_slice %239 {offsets = [0, 0], sizes = [8, 128], strides = [1, 1]} : vector<8x192xf32> to vector<8x128xf32>
    %241 = vector.extract_strided_slice %239 {offsets = [0, 128], sizes = [8, 64], strides = [1, 1]} : vector<8x192xf32> to vector<8x64xf32>
    %c0_109 = arith.constant 0 : index
    %c0_110 = arith.constant 0 : index
    %242 = vector.load %arg7[%c0_109, %c0_110] : memref<64x128xf32, #tpu.memory_space<vmem>>, vector<64x128xf32>
    %c0_111 = arith.constant 0 : index
    %c0_112 = arith.constant 0 : index
    %243 = vector.load %arg8[%c0_111, %c0_112] : memref<64x64xf32, #tpu.memory_space<vmem>>, vector<64x64xf32>
    %cst_113 = arith.constant dense<0.000000e+00> : vector<8x128xf32>
    %244 = tpu.matmul %211, %242, %cst_113 {dimension_numbers = #tpu.dot_dimension_numbers<[1], [0], [0], [1], [0, 0, 1, 1], [], []>} : vector<8x64xf32>, vector<64x128xf32>, vector<8x128xf32> -> vector<8x128xf32>
    %245 = arith.addf %240, %244 : vector<8x128xf32>
    %246 = arith.negf %245 : vector<8x128xf32>
    %247 = math.exp %246 : vector<8x128xf32>
    %cst_114 = arith.constant 1.000000e+00 : f32
    %248 = vector.broadcast %cst_114 : f32 to vector<8x128xf32>
    %249 = arith.addf %248, %247 : vector<8x128xf32>
    %250 = arith.divf %248, %249 : vector<8x128xf32>
    %251 = vector.extract_strided_slice %250 {offsets = [0, 0], sizes = [8, 64], strides = [1, 1]} : vector<8x128xf32> to vector<8x64xf32>
    %252 = vector.extract_strided_slice %250 {offsets = [0, 64], sizes = [8, 64], strides = [1, 1]} : vector<8x128xf32> to vector<8x64xf32>
    %cst_115 = arith.constant dense<0.000000e+00> : vector<8x64xf32>
    %253 = tpu.matmul %211, %243, %cst_115 {dimension_numbers = #tpu.dot_dimension_numbers<[1], [0], [0], [1], [0, 0, 1, 1], [], []>} : vector<8x64xf32>, vector<64x64xf32>, vector<8x64xf32> -> vector<8x64xf32>
    %254 = arith.addf %253, %12 : vector<8x64xf32>
    %255 = arith.mulf %251, %254 : vector<8x64xf32>
    %256 = arith.addf %241, %255 : vector<8x64xf32>
    %257 = math.tanh %256 : vector<8x64xf32>
    %258 = arith.subf %211, %257 : vector<8x64xf32>
    %259 = arith.mulf %252, %258 : vector<8x64xf32>
    %260 = arith.addf %257, %259 : vector<8x64xf32>
    %c256 = arith.constant 256 : index
    %c0_116 = arith.constant 0 : index
    %261 = vector.load %arg11[%c256, %c0_116] : memref<512x128xf32, #tpu.memory_space<vmem>>, vector<64x128xf32>
    %cst_117 = arith.constant dense<0.000000e+00> : vector<8x128xf32>
    %262 = tpu.matmul %260, %261, %cst_117 {dimension_numbers = #tpu.dot_dimension_numbers<[1], [0], [0], [1], [0, 0, 1, 1], [], []>} : vector<8x64xf32>, vector<64x128xf32>, vector<8x128xf32> -> vector<8x128xf32>
    %263 = arith.addf %214, %262 : vector<8x128xf32>
    %c40 = arith.constant 40 : index
    %c0_118 = arith.constant 0 : index
    %264 = vector.load %arg14[%c40, %c0_118] : memref<64x192xf32, #tpu.memory_space<vmem>>, vector<8x192xf32>
    %265 = vector.extract_strided_slice %264 {offsets = [0, 0], sizes = [8, 128], strides = [1, 1]} : vector<8x192xf32> to vector<8x128xf32>
    %266 = vector.extract_strided_slice %264 {offsets = [0, 128], sizes = [8, 64], strides = [1, 1]} : vector<8x192xf32> to vector<8x64xf32>
    %c0_119 = arith.constant 0 : index
    %c0_120 = arith.constant 0 : index
    %267 = vector.load %arg2[%c0_119, %c0_120] : memref<64x128xf32, #tpu.memory_space<vmem>>, vector<64x128xf32>
    %c0_121 = arith.constant 0 : index
    %c0_122 = arith.constant 0 : index
    %268 = vector.load %arg3[%c0_121, %c0_122] : memref<64x64xf32, #tpu.memory_space<vmem>>, vector<64x64xf32>
    %cst_123 = arith.constant dense<0.000000e+00> : vector<8x128xf32>
    %269 = tpu.matmul %236, %267, %cst_123 {dimension_numbers = #tpu.dot_dimension_numbers<[1], [0], [0], [1], [0, 0, 1, 1], [], []>} : vector<8x64xf32>, vector<64x128xf32>, vector<8x128xf32> -> vector<8x128xf32>
    %270 = arith.addf %265, %269 : vector<8x128xf32>
    %271 = arith.negf %270 : vector<8x128xf32>
    %272 = math.exp %271 : vector<8x128xf32>
    %cst_124 = arith.constant 1.000000e+00 : f32
    %273 = vector.broadcast %cst_124 : f32 to vector<8x128xf32>
    %274 = arith.addf %273, %272 : vector<8x128xf32>
    %275 = arith.divf %273, %274 : vector<8x128xf32>
    %276 = vector.extract_strided_slice %275 {offsets = [0, 0], sizes = [8, 64], strides = [1, 1]} : vector<8x128xf32> to vector<8x64xf32>
    %277 = vector.extract_strided_slice %275 {offsets = [0, 64], sizes = [8, 64], strides = [1, 1]} : vector<8x128xf32> to vector<8x64xf32>
    %cst_125 = arith.constant dense<0.000000e+00> : vector<8x64xf32>
    %278 = tpu.matmul %236, %268, %cst_125 {dimension_numbers = #tpu.dot_dimension_numbers<[1], [0], [0], [1], [0, 0, 1, 1], [], []>} : vector<8x64xf32>, vector<64x64xf32>, vector<8x64xf32> -> vector<8x64xf32>
    %279 = arith.addf %278, %9 : vector<8x64xf32>
    %280 = arith.mulf %276, %279 : vector<8x64xf32>
    %281 = arith.addf %266, %280 : vector<8x64xf32>
    %282 = math.tanh %281 : vector<8x64xf32>
    %283 = arith.subf %236, %282 : vector<8x64xf32>
    %284 = arith.mulf %277, %283 : vector<8x64xf32>
    %285 = arith.addf %282, %284 : vector<8x64xf32>
    %c0_126 = arith.constant 0 : index
    %c0_127 = arith.constant 0 : index
    %286 = vector.load %arg6[%c0_126, %c0_127] : memref<64x192xf32, #tpu.memory_space<vmem>>, vector<64x192xf32>
    %cst_128 = arith.constant dense<0.000000e+00> : vector<8x192xf32>
    %287 = tpu.matmul %285, %286, %cst_128 {dimension_numbers = #tpu.dot_dimension_numbers<[1], [0], [0], [1], [0, 0, 1, 1], [], []>} : vector<8x64xf32>, vector<64x192xf32>, vector<8x192xf32> -> vector<8x192xf32>
    %288 = arith.addf %287, %15 : vector<8x192xf32>
    %289 = vector.extract_strided_slice %288 {offsets = [0, 0], sizes = [8, 128], strides = [1, 1]} : vector<8x192xf32> to vector<8x128xf32>
    %290 = vector.extract_strided_slice %288 {offsets = [0, 128], sizes = [8, 64], strides = [1, 1]} : vector<8x192xf32> to vector<8x64xf32>
    %c0_129 = arith.constant 0 : index
    %c0_130 = arith.constant 0 : index
    %291 = vector.load %arg7[%c0_129, %c0_130] : memref<64x128xf32, #tpu.memory_space<vmem>>, vector<64x128xf32>
    %c0_131 = arith.constant 0 : index
    %c0_132 = arith.constant 0 : index
    %292 = vector.load %arg8[%c0_131, %c0_132] : memref<64x64xf32, #tpu.memory_space<vmem>>, vector<64x64xf32>
    %cst_133 = arith.constant dense<0.000000e+00> : vector<8x128xf32>
    %293 = tpu.matmul %260, %291, %cst_133 {dimension_numbers = #tpu.dot_dimension_numbers<[1], [0], [0], [1], [0, 0, 1, 1], [], []>} : vector<8x64xf32>, vector<64x128xf32>, vector<8x128xf32> -> vector<8x128xf32>
    %294 = arith.addf %289, %293 : vector<8x128xf32>
    %295 = arith.negf %294 : vector<8x128xf32>
    %296 = math.exp %295 : vector<8x128xf32>
    %cst_134 = arith.constant 1.000000e+00 : f32
    %297 = vector.broadcast %cst_134 : f32 to vector<8x128xf32>
    %298 = arith.addf %297, %296 : vector<8x128xf32>
    %299 = arith.divf %297, %298 : vector<8x128xf32>
    %300 = vector.extract_strided_slice %299 {offsets = [0, 0], sizes = [8, 64], strides = [1, 1]} : vector<8x128xf32> to vector<8x64xf32>
    %301 = vector.extract_strided_slice %299 {offsets = [0, 64], sizes = [8, 64], strides = [1, 1]} : vector<8x128xf32> to vector<8x64xf32>
    %cst_135 = arith.constant dense<0.000000e+00> : vector<8x64xf32>
    %302 = tpu.matmul %260, %292, %cst_135 {dimension_numbers = #tpu.dot_dimension_numbers<[1], [0], [0], [1], [0, 0, 1, 1], [], []>} : vector<8x64xf32>, vector<64x64xf32>, vector<8x64xf32> -> vector<8x64xf32>
    %303 = arith.addf %302, %12 : vector<8x64xf32>
    %304 = arith.mulf %300, %303 : vector<8x64xf32>
    %305 = arith.addf %290, %304 : vector<8x64xf32>
    %306 = math.tanh %305 : vector<8x64xf32>
    %307 = arith.subf %260, %306 : vector<8x64xf32>
    %308 = arith.mulf %301, %307 : vector<8x64xf32>
    %309 = arith.addf %306, %308 : vector<8x64xf32>
    %c320 = arith.constant 320 : index
    %c0_136 = arith.constant 0 : index
    %310 = vector.load %arg11[%c320, %c0_136] : memref<512x128xf32, #tpu.memory_space<vmem>>, vector<64x128xf32>
    %cst_137 = arith.constant dense<0.000000e+00> : vector<8x128xf32>
    %311 = tpu.matmul %309, %310, %cst_137 {dimension_numbers = #tpu.dot_dimension_numbers<[1], [0], [0], [1], [0, 0, 1, 1], [], []>} : vector<8x64xf32>, vector<64x128xf32>, vector<8x128xf32> -> vector<8x128xf32>
    %312 = arith.addf %263, %311 : vector<8x128xf32>
    %c48 = arith.constant 48 : index
    %c0_138 = arith.constant 0 : index
    %313 = vector.load %arg14[%c48, %c0_138] : memref<64x192xf32, #tpu.memory_space<vmem>>, vector<8x192xf32>
    %314 = vector.extract_strided_slice %313 {offsets = [0, 0], sizes = [8, 128], strides = [1, 1]} : vector<8x192xf32> to vector<8x128xf32>
    %315 = vector.extract_strided_slice %313 {offsets = [0, 128], sizes = [8, 64], strides = [1, 1]} : vector<8x192xf32> to vector<8x64xf32>
    %c0_139 = arith.constant 0 : index
    %c0_140 = arith.constant 0 : index
    %316 = vector.load %arg2[%c0_139, %c0_140] : memref<64x128xf32, #tpu.memory_space<vmem>>, vector<64x128xf32>
    %c0_141 = arith.constant 0 : index
    %c0_142 = arith.constant 0 : index
    %317 = vector.load %arg3[%c0_141, %c0_142] : memref<64x64xf32, #tpu.memory_space<vmem>>, vector<64x64xf32>
    %cst_143 = arith.constant dense<0.000000e+00> : vector<8x128xf32>
    %318 = tpu.matmul %285, %316, %cst_143 {dimension_numbers = #tpu.dot_dimension_numbers<[1], [0], [0], [1], [0, 0, 1, 1], [], []>} : vector<8x64xf32>, vector<64x128xf32>, vector<8x128xf32> -> vector<8x128xf32>
    %319 = arith.addf %314, %318 : vector<8x128xf32>
    %320 = arith.negf %319 : vector<8x128xf32>
    %321 = math.exp %320 : vector<8x128xf32>
    %cst_144 = arith.constant 1.000000e+00 : f32
    %322 = vector.broadcast %cst_144 : f32 to vector<8x128xf32>
    %323 = arith.addf %322, %321 : vector<8x128xf32>
    %324 = arith.divf %322, %323 : vector<8x128xf32>
    %325 = vector.extract_strided_slice %324 {offsets = [0, 0], sizes = [8, 64], strides = [1, 1]} : vector<8x128xf32> to vector<8x64xf32>
    %326 = vector.extract_strided_slice %324 {offsets = [0, 64], sizes = [8, 64], strides = [1, 1]} : vector<8x128xf32> to vector<8x64xf32>
    %cst_145 = arith.constant dense<0.000000e+00> : vector<8x64xf32>
    %327 = tpu.matmul %285, %317, %cst_145 {dimension_numbers = #tpu.dot_dimension_numbers<[1], [0], [0], [1], [0, 0, 1, 1], [], []>} : vector<8x64xf32>, vector<64x64xf32>, vector<8x64xf32> -> vector<8x64xf32>
    %328 = arith.addf %327, %9 : vector<8x64xf32>
    %329 = arith.mulf %325, %328 : vector<8x64xf32>
    %330 = arith.addf %315, %329 : vector<8x64xf32>
    %331 = math.tanh %330 : vector<8x64xf32>
    %332 = arith.subf %285, %331 : vector<8x64xf32>
    %333 = arith.mulf %326, %332 : vector<8x64xf32>
    %334 = arith.addf %331, %333 : vector<8x64xf32>
    %c0_146 = arith.constant 0 : index
    %c0_147 = arith.constant 0 : index
    %335 = vector.load %arg6[%c0_146, %c0_147] : memref<64x192xf32, #tpu.memory_space<vmem>>, vector<64x192xf32>
    %cst_148 = arith.constant dense<0.000000e+00> : vector<8x192xf32>
    %336 = tpu.matmul %334, %335, %cst_148 {dimension_numbers = #tpu.dot_dimension_numbers<[1], [0], [0], [1], [0, 0, 1, 1], [], []>} : vector<8x64xf32>, vector<64x192xf32>, vector<8x192xf32> -> vector<8x192xf32>
    %337 = arith.addf %336, %15 : vector<8x192xf32>
    %338 = vector.extract_strided_slice %337 {offsets = [0, 0], sizes = [8, 128], strides = [1, 1]} : vector<8x192xf32> to vector<8x128xf32>
    %339 = vector.extract_strided_slice %337 {offsets = [0, 128], sizes = [8, 64], strides = [1, 1]} : vector<8x192xf32> to vector<8x64xf32>
    %c0_149 = arith.constant 0 : index
    %c0_150 = arith.constant 0 : index
    %340 = vector.load %arg7[%c0_149, %c0_150] : memref<64x128xf32, #tpu.memory_space<vmem>>, vector<64x128xf32>
    %c0_151 = arith.constant 0 : index
    %c0_152 = arith.constant 0 : index
    %341 = vector.load %arg8[%c0_151, %c0_152] : memref<64x64xf32, #tpu.memory_space<vmem>>, vector<64x64xf32>
    %cst_153 = arith.constant dense<0.000000e+00> : vector<8x128xf32>
    %342 = tpu.matmul %309, %340, %cst_153 {dimension_numbers = #tpu.dot_dimension_numbers<[1], [0], [0], [1], [0, 0, 1, 1], [], []>} : vector<8x64xf32>, vector<64x128xf32>, vector<8x128xf32> -> vector<8x128xf32>
    %343 = arith.addf %338, %342 : vector<8x128xf32>
    %344 = arith.negf %343 : vector<8x128xf32>
    %345 = math.exp %344 : vector<8x128xf32>
    %cst_154 = arith.constant 1.000000e+00 : f32
    %346 = vector.broadcast %cst_154 : f32 to vector<8x128xf32>
    %347 = arith.addf %346, %345 : vector<8x128xf32>
    %348 = arith.divf %346, %347 : vector<8x128xf32>
    %349 = vector.extract_strided_slice %348 {offsets = [0, 0], sizes = [8, 64], strides = [1, 1]} : vector<8x128xf32> to vector<8x64xf32>
    %350 = vector.extract_strided_slice %348 {offsets = [0, 64], sizes = [8, 64], strides = [1, 1]} : vector<8x128xf32> to vector<8x64xf32>
    %cst_155 = arith.constant dense<0.000000e+00> : vector<8x64xf32>
    %351 = tpu.matmul %309, %341, %cst_155 {dimension_numbers = #tpu.dot_dimension_numbers<[1], [0], [0], [1], [0, 0, 1, 1], [], []>} : vector<8x64xf32>, vector<64x64xf32>, vector<8x64xf32> -> vector<8x64xf32>
    %352 = arith.addf %351, %12 : vector<8x64xf32>
    %353 = arith.mulf %349, %352 : vector<8x64xf32>
    %354 = arith.addf %339, %353 : vector<8x64xf32>
    %355 = math.tanh %354 : vector<8x64xf32>
    %356 = arith.subf %309, %355 : vector<8x64xf32>
    %357 = arith.mulf %350, %356 : vector<8x64xf32>
    %358 = arith.addf %355, %357 : vector<8x64xf32>
    %c384 = arith.constant 384 : index
    %c0_156 = arith.constant 0 : index
    %359 = vector.load %arg11[%c384, %c0_156] : memref<512x128xf32, #tpu.memory_space<vmem>>, vector<64x128xf32>
    %cst_157 = arith.constant dense<0.000000e+00> : vector<8x128xf32>
    %360 = tpu.matmul %358, %359, %cst_157 {dimension_numbers = #tpu.dot_dimension_numbers<[1], [0], [0], [1], [0, 0, 1, 1], [], []>} : vector<8x64xf32>, vector<64x128xf32>, vector<8x128xf32> -> vector<8x128xf32>
    %361 = arith.addf %312, %360 : vector<8x128xf32>
    %c56 = arith.constant 56 : index
    %c0_158 = arith.constant 0 : index
    %362 = vector.load %arg14[%c56, %c0_158] : memref<64x192xf32, #tpu.memory_space<vmem>>, vector<8x192xf32>
    %363 = vector.extract_strided_slice %362 {offsets = [0, 0], sizes = [8, 128], strides = [1, 1]} : vector<8x192xf32> to vector<8x128xf32>
    %364 = vector.extract_strided_slice %362 {offsets = [0, 128], sizes = [8, 64], strides = [1, 1]} : vector<8x192xf32> to vector<8x64xf32>
    %c0_159 = arith.constant 0 : index
    %c0_160 = arith.constant 0 : index
    %365 = vector.load %arg2[%c0_159, %c0_160] : memref<64x128xf32, #tpu.memory_space<vmem>>, vector<64x128xf32>
    %c0_161 = arith.constant 0 : index
    %c0_162 = arith.constant 0 : index
    %366 = vector.load %arg3[%c0_161, %c0_162] : memref<64x64xf32, #tpu.memory_space<vmem>>, vector<64x64xf32>
    %cst_163 = arith.constant dense<0.000000e+00> : vector<8x128xf32>
    %367 = tpu.matmul %334, %365, %cst_163 {dimension_numbers = #tpu.dot_dimension_numbers<[1], [0], [0], [1], [0, 0, 1, 1], [], []>} : vector<8x64xf32>, vector<64x128xf32>, vector<8x128xf32> -> vector<8x128xf32>
    %368 = arith.addf %363, %367 : vector<8x128xf32>
    %369 = arith.negf %368 : vector<8x128xf32>
    %370 = math.exp %369 : vector<8x128xf32>
    %cst_164 = arith.constant 1.000000e+00 : f32
    %371 = vector.broadcast %cst_164 : f32 to vector<8x128xf32>
    %372 = arith.addf %371, %370 : vector<8x128xf32>
    %373 = arith.divf %371, %372 : vector<8x128xf32>
    %374 = vector.extract_strided_slice %373 {offsets = [0, 0], sizes = [8, 64], strides = [1, 1]} : vector<8x128xf32> to vector<8x64xf32>
    %375 = vector.extract_strided_slice %373 {offsets = [0, 64], sizes = [8, 64], strides = [1, 1]} : vector<8x128xf32> to vector<8x64xf32>
    %cst_165 = arith.constant dense<0.000000e+00> : vector<8x64xf32>
    %376 = tpu.matmul %334, %366, %cst_165 {dimension_numbers = #tpu.dot_dimension_numbers<[1], [0], [0], [1], [0, 0, 1, 1], [], []>} : vector<8x64xf32>, vector<64x64xf32>, vector<8x64xf32> -> vector<8x64xf32>
    %377 = arith.addf %376, %9 : vector<8x64xf32>
    %378 = arith.mulf %374, %377 : vector<8x64xf32>
    %379 = arith.addf %364, %378 : vector<8x64xf32>
    %380 = math.tanh %379 : vector<8x64xf32>
    %381 = arith.subf %334, %380 : vector<8x64xf32>
    %382 = arith.mulf %375, %381 : vector<8x64xf32>
    %383 = arith.addf %380, %382 : vector<8x64xf32>
    %c0_166 = arith.constant 0 : index
    %c0_167 = arith.constant 0 : index
    %384 = vector.load %arg6[%c0_166, %c0_167] : memref<64x192xf32, #tpu.memory_space<vmem>>, vector<64x192xf32>
    %cst_168 = arith.constant dense<0.000000e+00> : vector<8x192xf32>
    %385 = tpu.matmul %383, %384, %cst_168 {dimension_numbers = #tpu.dot_dimension_numbers<[1], [0], [0], [1], [0, 0, 1, 1], [], []>} : vector<8x64xf32>, vector<64x192xf32>, vector<8x192xf32> -> vector<8x192xf32>
    %386 = arith.addf %385, %15 : vector<8x192xf32>
    %387 = vector.extract_strided_slice %386 {offsets = [0, 0], sizes = [8, 128], strides = [1, 1]} : vector<8x192xf32> to vector<8x128xf32>
    %388 = vector.extract_strided_slice %386 {offsets = [0, 128], sizes = [8, 64], strides = [1, 1]} : vector<8x192xf32> to vector<8x64xf32>
    %c0_169 = arith.constant 0 : index
    %c0_170 = arith.constant 0 : index
    %389 = vector.load %arg7[%c0_169, %c0_170] : memref<64x128xf32, #tpu.memory_space<vmem>>, vector<64x128xf32>
    %c0_171 = arith.constant 0 : index
    %c0_172 = arith.constant 0 : index
    %390 = vector.load %arg8[%c0_171, %c0_172] : memref<64x64xf32, #tpu.memory_space<vmem>>, vector<64x64xf32>
    %cst_173 = arith.constant dense<0.000000e+00> : vector<8x128xf32>
    %391 = tpu.matmul %358, %389, %cst_173 {dimension_numbers = #tpu.dot_dimension_numbers<[1], [0], [0], [1], [0, 0, 1, 1], [], []>} : vector<8x64xf32>, vector<64x128xf32>, vector<8x128xf32> -> vector<8x128xf32>
    %392 = arith.addf %387, %391 : vector<8x128xf32>
    %393 = arith.negf %392 : vector<8x128xf32>
    %394 = math.exp %393 : vector<8x128xf32>
    %cst_174 = arith.constant 1.000000e+00 : f32
    %395 = vector.broadcast %cst_174 : f32 to vector<8x128xf32>
    %396 = arith.addf %395, %394 : vector<8x128xf32>
    %397 = arith.divf %395, %396 : vector<8x128xf32>
    %398 = vector.extract_strided_slice %397 {offsets = [0, 0], sizes = [8, 64], strides = [1, 1]} : vector<8x128xf32> to vector<8x64xf32>
    %399 = vector.extract_strided_slice %397 {offsets = [0, 64], sizes = [8, 64], strides = [1, 1]} : vector<8x128xf32> to vector<8x64xf32>
    %cst_175 = arith.constant dense<0.000000e+00> : vector<8x64xf32>
    %400 = tpu.matmul %358, %390, %cst_175 {dimension_numbers = #tpu.dot_dimension_numbers<[1], [0], [0], [1], [0, 0, 1, 1], [], []>} : vector<8x64xf32>, vector<64x64xf32>, vector<8x64xf32> -> vector<8x64xf32>
    %401 = arith.addf %400, %12 : vector<8x64xf32>
    %402 = arith.mulf %398, %401 : vector<8x64xf32>
    %403 = arith.addf %388, %402 : vector<8x64xf32>
    %404 = math.tanh %403 : vector<8x64xf32>
    %405 = arith.subf %358, %404 : vector<8x64xf32>
    %406 = arith.mulf %399, %405 : vector<8x64xf32>
    %407 = arith.addf %404, %406 : vector<8x64xf32>
    %c448 = arith.constant 448 : index
    %c0_176 = arith.constant 0 : index
    %408 = vector.load %arg11[%c448, %c0_176] : memref<512x128xf32, #tpu.memory_space<vmem>>, vector<64x128xf32>
    %cst_177 = arith.constant dense<0.000000e+00> : vector<8x128xf32>
    %409 = tpu.matmul %407, %408, %cst_177 {dimension_numbers = #tpu.dot_dimension_numbers<[1], [0], [0], [1], [0, 0, 1, 1], [], []>} : vector<8x64xf32>, vector<64x128xf32>, vector<8x128xf32> -> vector<8x128xf32>
    %410 = arith.addf %361, %409 : vector<8x128xf32>
    %c0_178 = arith.constant 0 : index
    %c0_179 = arith.constant 0 : index
    %411 = vector.load %arg12[%c0_178, %c0_179] : memref<1x128xf32, #tpu.memory_space<vmem>>, vector<1x128xf32>
    %412 = vector.broadcast %411 : vector<1x128xf32> to vector<8x128xf32>
    %413 = arith.addf %410, %412 : vector<8x128xf32>
    %c0_180 = arith.constant 0 : index
    %c0_181 = arith.constant 0 : index
    %414 = vector.load %arg13[%c0_180, %c0_181] : memref<8x128xf32, #tpu.memory_space<vmem>>, vector<8x128xf32>
    tpu.vector_store %arg13[%c0_180, %c0_181], %413 {strides = array<i32>} : memref<8x128xf32, #tpu.memory_space<vmem>>, vector<8x128xf32>,
    return
  }
}

</mosaic_0001>

<bundles_post_ra>
// kernel: gru_model_forward.1
= control target key start
LH: loop header
LB: loop body
LE: loop exit
PB: predicated region body
PF: predicated region fallthrough
CT: control target
= control target key end

     0   :  { %18 = vsyncpa [#allocation4], 0  ;;  %s3732_s0 = inlined_call_operand.vmem [shape: f32[64,40], index: 0, kind: input, shape index: {}]   ;;  %s3733_s1 = inlined_call_operand.vmem [shape: f32[40,192], index: 1, kind: input, shape index: {}]   ;;  %s3734_s2 = inlined_call_operand.vmem [shape: f32[64,128], index: 2, kind: input, shape index: {}]   ;;  %s3735_s3 = inlined_call_operand.vmem [shape: f32[64,64], index: 3, kind: input, shape index: {}]   ;;  %s3736_s4 = inlined_call_operand.vmem [shape: f32[1,192], index: 4, kind: input, shape index: {}]   ;;  %s3737_s5 = inlined_call_operand.vmem [shape: f32[1,64], index: 5, kind: input, shape index: {}]   ;;  %s3738_s6 = inlined_call_operand.vmem [shape: f32[64,192], index: 6, kind: input, shape index: {}]   ;;  %s3739_s7 = inlined_call_operand.hbm [shape: f32[64,128], index: 7, kind: input, shape index: {}]   ;;  %s3740_s8 = inlined_call_operand.hbm [shape: f32[64,64], index: 8, kind: input, shape index: {}]   ;;  %s3741_s9 = inlined_call_operand.vmem [shape: f32[1,192], index: 9, kind: input, shape index: {}]   ;;  %s3742_s10 = inlined_call_operand.vmem [shape: f32[1,64], index: 10, kind: input, shape index: {}]   ;;  %s3743_s11 = inlined_call_operand.hbm [shape: f32[512,128], index: 11, kind: input, shape index: {}]   ;;  %s3744_s12 = inlined_call_operand.hbm [shape: f32[1,128], index: 12, kind: input, shape index: {}]   ;;  %s3745_s13 = inlined_call_operand.vmem [shape: f32[8,128], index: 13, kind: output, shape index: {}]  }
   0x1   :  { %19 = vsyncpa [#allocation6], 0 }
   0x2   :  { %20 = vsyncpa [#allocation9], 0  ;;  %s52_s27 = sshll.u32 %s3740_s8, 4  ;;  %s2481_s28 = smov [#allocation5]   ;;  %s53_s27 = int_to_ptr.hbm [resolvable:$true] %s52_s27 }
   0x3   :  { %s54_s29 = sshll.u32 %s2481_s28, 4  ;;  %s39_s15 = sshll.u32 %s3739_s7, 4  ;;  %s55_s29 = int_to_ptr.vmem [resolvable:$true] %s54_s29  ;;  %s40_s15 = int_to_ptr.hbm [resolvable:$true] %s39_s15 }
   0x4   :  { %s2482_s16 = smov 128   ;;  %s2483_s17 = smov 8  }
   0x5   :  { %60 = dma.hbm_to_vmem [thread:$0]  %s53_s27, 1024, %s55_s29, [#allocation6], %s2482_s16, %s2482_s16, %s2483_s17  }
   0x6   :  { %s2484_s18 = smov [#allocation3]   ;;  %s69_s22 = sshll.u32 %s3743_s11, 4  ;;  %s70_s22 = int_to_ptr.hbm [resolvable:$true] %s69_s22 }
   0x7   :  { %s41_s19 = sshll.u32 %s2484_s18, 4  ;;  %s83_s24 = sshll.u32 %s3744_s12, 4  ;;  %s42_s19 = int_to_ptr.vmem [resolvable:$true] %s41_s19  ;;  %s84_s24 = int_to_ptr.hbm [resolvable:$true] %s83_s24 }
   0x8   :  { %47 = dma.hbm_to_vmem [thread:$0]  %s40_s15, 1024, %s42_s19, [#allocation4], %s2482_s16, %s2482_s16, %s2483_s17  }
   0x9   :  { %s2485_s25 = smov [#allocation7]   ;;  %s2486_s7 = smov [#allocation8]  }
   0xa   :  { %s71_s26 = sshll.u32 %s2485_s25, 4  ;;  %s85_s27 = sshll.u32 %s2486_s7, 4  ;;  %s72_s26 = int_to_ptr.vmem [resolvable:$true] %s71_s26  ;;  %s86_s27 = int_to_ptr.vmem [resolvable:$true] %s85_s27 }
   0xb   :  { %77 = dma.hbm_to_vmem [thread:$0]  %s70_s22, 8192, %s72_s26, [#allocation6], %s2482_s16, %s2482_s16, %s2483_s17  }
   0xc   :  { %88 = dma.hbm_to_vmem [thread:$0]  %s84_s24, 16, %s86_s27, [#allocation9]  }
   0xd   :  { %2475 = dma.done.wait [#allocation4], 1024  }
   0xe   :  { %2476 = vsyncadd [#allocation4], 4294966272 }
   0xf   :  { %2477 = dma.done.wait [#allocation6], 9216  }
  0x10   :  { %2478 = vsyncadd [#allocation6], 4294958080 }
  0x11   :  { %2479 = dma.done.wait [#allocation9], 16  }
  0x12   :  { %2480 = vsyncadd [#allocation9], 4294967280  ;;  %v2574_v0 = vld [vmem:[%s3734_s2 + $0x38] sm:$0xff]  ;;  %v121_v1 = vld [vmem:[%s3733_s1 + $0x40] sm:$0xff]  ;;  %vm129_vm0 = vcmask 326656   ;;  %v2487_v26 = vmov 0.0  }
  0x13   :  { %v2582_v2 = vld [vmem:[%s3734_s2 + $0x30] sm:$0xff]  ;;  %296 = vmatpush.msra.mxu2 %v2574_v0  ;;  %165 = vmatpush.msra.mxu0 %v121_v1  ;;  %v2591_v4 = vld [vmem:[%s3734_s2 + $0x28] sm:$0xff]  ;;  %v117_v5 = vld [vmem:[%s3733_s1 + $0x20] sm:$0xff]  ;;  %vm237_vm1 = vcmask 523264   ;;  %s2488_s8 = smov 64  }
  0x14   :  { %v119_v3 = vld [vmem:[%s3733_s1 + $0x30] sm:$0xff]  ;;  %3788 = vst [vmem:[#allocation13_spill] sm:$0xff] %v2591_v4  ;;  %v2600_v6 = vld [vmem:[%s3734_s2 + $0x20] sm:$0xff]  ;;  %v2608_v8 = vld [vmem:[%s3735_s3 + $0x38] sm:$0xff] }
  0x15   :  { %297 = vmatpush.msra.mxu2 %v2582_v2  ;;  %166 = vmatpush.msra.mxu0 %v119_v3  ;;  %3789 = vst [vmem:[#allocation14_spill] sm:$0xff] %v2600_v6  ;;  %v115_v7 = vld [vmem:[%s3733_s1 + $0x10] sm:$0xff]  ;;  %v122_v10 = vld [vmem:[%s3733_s1 + $0x48] sm:$0xff]  ;;  %v2622_v11 = vld [vmem:[%s3734_s2 + $0x18] sm:$0xff] }
  0x16   :  { %v2614_v9 = vld [vmem:[%s3735_s3 + $0x30] sm:$0xff]  ;;  %3790 = vst [vmem:[#allocation15_spill] sm:$0xff] %v2622_v11  ;;  %v113_v12 = vld [vmem:[%s3733_s1] sm:$0xff]  ;;  %336 = vmatpush.msra.mxu3 %v2608_v8  ;;  %206 = vmatpush.msra.mxu1 %v122_v10  ;;  %v120_v13 = vld [vmem:[%s3733_s1 + $0x38] sm:$0xff] }
  0x17   :  { %298 = vmatpush.msra.mxu2 %v2591_v4  ;;  %167 = vmatpush.msra.mxu0 %v117_v5  ;;  %v105_v14 = vld [vmem:[%s3732_s0] sm:$0xff]  ;;  %v2638_v15 = vld [vmem:[%s3735_s3 + $0x28] sm:$0xff]  ;;  %v2643_v16 = vld [vmem:[%s3734_s2 + $0x10] sm:$0xff] }
  0x18   :  { %3791 = vst [vmem:[#allocation16_spill] sm:$0xff] %v2643_v16  ;;  %337 = vmatpush.msra.mxu3 %v2614_v9  ;;  %207 = vmatpush.msra.mxu1 %v120_v13  ;;  %v118_v17 = vld [vmem:[%s3733_s1 + $0x28] sm:$0xff]  ;;  %v2653_v18 = vld [vmem:[%s3735_s3 + $0x20] sm:$0xff]  ;;  %v116_v20 = vld [vmem:[%s3733_s1 + $0x18] sm:$0xff] }
  0x19   :  { %299 = vmatpush.msra.mxu2 %v2600_v6  ;;  %168 = vmatpush.msra.mxu0 %v115_v7  ;;  %v2659_v19 = vld [vmem:[%s3734_s2 + $0x8] sm:$0xff]  ;;  %v2669_v21 = vld [vmem:[%s3735_s3 + $0x18] sm:$0xff]  ;;  %v2674_v22 = vld [vmem:[%s3734_s2] sm:$0xff] }
  0x1a   :  { %3792 = vst [vmem:[#allocation17_spill] sm:$0xff] %v2659_v19  ;;  %338 = vmatpush.msra.mxu3 %v2638_v15  ;;  %208 = vmatpush.msra.mxu1 %v118_v17  ;;  %v114_v23 = vld [vmem:[%s3733_s1 + $0x8] sm:$0xff]  ;;  %v2684_v24 = vld [vmem:[%s3735_s3 + $0x10] sm:$0xff]  ;;  %v2698_v27 = vld [vmem:[%s3735_s3] sm:$0xff] }
  0x1b   :  { %300 = vmatpush.msra.mxu2 %v2622_v11  ;;  %169 = vmatpush.msra.mxu0 %v113_v12  ;;  %3793 = vst [vmem:[#allocation18_spill] sm:$0xff] %v2674_v22  ;;  %v2691_v25 = vld [vmem:[%s3735_s3 + $0x8] sm:$0xff]  ;;  %v123_v28 = vld [vmem:[%s3736_s4] sm:$0x3]  ;;  %v2730_v58 = vld [vmem:[%s3738_s6 + $0x70] sm:$0xff] }
  0x1c   :  { %2129 = vmatmul.msk.f32.vlgmr.msra.gmra.mxu0 %vm129_vm0, %v105_v14  ;;  %339 = vmatpush.msra.mxu3 %v2653_v18  ;;  %3794 = vst [vmem:[#allocation19_spill] sm:$0xff] %v2684_v24  ;;  %v2707_v29 = vperm.slane %v123_v28, 0  ;;  %v2710_v32 = vperm.slane %v123_v28, 1  ;;  %v2717_v42 = vld [vmem:[%s3737_s5] ss:$0 sm:$0xff]  ;;  %v2735_v59 = vld [vmem:[%s3738_s6 + $0x78] sm:$0xff] }
  0x1d   :  { %301 = vmatpush.msra.mxu2 %v2643_v16  ;;  %209 = vmatpush.msra.mxu1 %v116_v20  ;;  %3795 = vst [vmem:[#allocation20_spill] sm:$0xff] %v2691_v25  ;;  %v2740_v60 = vld [vmem:[%s3738_s6 + $0x60] sm:$0xff]  ;;  %v2747_v61 = vld [vmem:[%s3738_s6 + $0x68] sm:$0xff]  ;;  %v2752_v62 = vld [vmem:[%s3738_s6 + $0x50] sm:$0xff] }
  0x1e   :  { %340 = vmatpush.msra.mxu3 %v2669_v21  ;;  %3796 = vst [vmem:[#allocation21_spill] sm:$0xff] %v2698_v27  ;;  %v2757_v63 = vld [vmem:[%s3738_s6 + $0x58] sm:$0xff]  ;;  %606 = vmatpush.msrb.mxu0 %v2730_v58  ;;  %v2766_v1 = vld [vmem:[%s3738_s6 + $0x40] sm:$0xff]  ;;  %v2771_v3 = vld [vmem:[%s3738_s6 + $0x48] sm:$0xff] }
  0x1f   :  { %302 = vmatpush.msra.mxu2 %v2659_v19  ;;  %210 = vmatpush.msra.mxu1 %v114_v23  ;;  %v2780_v5 = vld [vmem:[%s3738_s6 + $0x30] sm:$0xff]  ;;  %v2785_v7 = vld [vmem:[%s3738_s6 + $0x38] sm:$0xff]  ;;  %v2794_v10 = vld [vmem:[%s3738_s6 + $0x20] sm:$0xff] }
  0x20   :  { %341 = vmatpush.msra.mxu3 %v2684_v24  ;;  %2137 = vmatmul.msk.f32.vlgmr.msra.gmra.mxu1 %vm129_vm0, %v105_v14  ;;  %3797 = vst [vmem:[#allocation22_spill] sm:$0xff] %v2794_v10  ;;  %v2799_v12 = vld [vmem:[%s3738_s6 + $0x28] sm:$0xff]  ;;  %v2808_v13 = vld [vmem:[%s3738_s6 + $0x10] sm:$0xff]  ;;  %v2813_v14 = vld [vmem:[%s3738_s6 + $0x18] sm:$0xff] }
  0x21   :  { %303 = vmatpush.msra.mxu2 %v2674_v22  ;;  %626 = vmatpush.msrb.mxu1 %v2735_v59  ;;  %3798 = vst [vmem:[#allocation23_spill] sm:$0xff] %v2808_v13  ;;  %v2822_v17 = vld [vmem:[%s3738_s6] sm:$0xff]  ;;  %v2827_v20 = vld [vmem:[%s3738_s6 + $0x8] sm:$0xff]  ;;  %v2833_v23 = vld [vmem:[#allocation3 + $0x38] sm:$0xff] }
  0x22   :  { %304 = vmatmul.f32.vlgmr.msra.gmra.mxu2 %v2487_v26  ;;  %342 = vmatpush.msra.mxu3 %v2691_v25  ;;  %3799 = vst [vmem:[#allocation24_spill] sm:$0xff] %v2822_v17  ;;  %v2835_v28 = vld [vmem:[#allocation5 + $0x38] sm:$0xff] }
  0x23   :  { %389 = vmatpush.msrb.mxu2 %v2730_v58  ;;  %607 = vmatpush.msrb.mxu0 %v2740_v60 }
  0x24   :  { %343 = vmatpush.msra.mxu3 %v2698_v27  ;;  %627 = vmatpush.msrb.mxu1 %v2747_v61 }
  0x25   :  { %344 = vmatmul.f32.vlgmr.msra.gmra.mxu3 %v2487_v26  ;;  %390 = vmatpush.msrb.mxu2 %v2740_v60 }
  0x26   :  { %409 = vmatpush.msrb.mxu3 %v2735_v59  ;;  %608 = vmatpush.msrb.mxu0 %v2752_v62 }
  0x27   :  { %391 = vmatpush.msrb.mxu2 %v2752_v62  ;;  %628 = vmatpush.msrb.mxu1 %v2757_v63 }
  0x28   :  { %410 = vmatpush.msrb.mxu3 %v2747_v61  ;;  %609 = vmatpush.msrb.mxu0 %v2766_v1 }
  0x29   :  { %392 = vmatpush.msrb.mxu2 %v2766_v1  ;;  %629 = vmatpush.msrb.mxu1 %v2771_v3 }
  0x2a   :  { %411 = vmatpush.msrb.mxu3 %v2757_v63  ;;  %610 = vmatpush.msrb.mxu0 %v2780_v5 }
  0x2b   :  { %393 = vmatpush.msrb.mxu2 %v2780_v5  ;;  %630 = vmatpush.msrb.mxu1 %v2785_v7 }
  0x2c   :  { %412 = vmatpush.msrb.mxu3 %v2771_v3  ;;  %611 = vmatpush.msrb.mxu0 %v2794_v10 }
  0x2d   :  { %394 = vmatpush.msrb.mxu2 %v2794_v10  ;;  %631 = vmatpush.msrb.mxu1 %v2799_v12 }
  0x2e   :  { %413 = vmatpush.msrb.mxu3 %v2785_v7  ;;  %612 = vmatpush.msrb.mxu0 %v2808_v13 }
  0x2f   :  { %395 = vmatpush.msrb.mxu2 %v2808_v13  ;;  %632 = vmatpush.msrb.mxu1 %v2813_v14 }
  0x30   :  { %414 = vmatpush.msrb.mxu3 %v2799_v12  ;;  %613 = vmatpush.msrb.mxu0 %v2822_v17 }
  0x31   :  { %396 = vmatpush.msrb.mxu2 %v2822_v17  ;;  %633 = vmatpush.msrb.mxu1 %v2827_v20 }
  0x32   :  { %415 = vmatpush.msrb.mxu3 %v2813_v14 }
  0x33   :  { %445 = vmatpush.msra.mxu2 %v2833_v23 }
  0x34   :  { %416 = vmatpush.msrb.mxu3 %v2827_v20 }
  0x36   :  { %485 = vmatpush.msra.mxu3 %v2835_v28 }
  0x99   :  { %v171_v30 = vpop.f32.mrf.mxu0 }
  0x9a   :  { %v172_v31 = vadd.f32 %v171_v30, %v2707_v29  ;;  %v2841_v30 = vld [vmem:[#allocation3 + $0x30] sm:$0xff] }
  0x9b   :  { %446 = vmatpush.msra.mxu2 %v2841_v30 }
  0x9d   :  { %v212_v33 = vpop.f32.mrf.mxu1 }
  0x9e   :  { %v213_v34 = vadd.f32 %v212_v33, %v2710_v32  ;;  %v2847_v33 = vld [vmem:[#allocation3 + $0x28] sm:$0xff] }
  0x9f   :  { %447 = vmatpush.msra.mxu2 %v2847_v33 }
  0xa0   :  { %238 = vst.msk [vmem:[#allocation2 + $0x8] sm:$0xff] %vm237_vm1, %v213_v34  ;;  %v2849_v34 = vld [vmem:[#allocation5 + $0x28] sm:$0xff] }
  0xa5   :  { %v305_v35 = vpop.f32.mrf.mxu2 }
  0xa6   :  { %v308_v36 = vadd.f32 %v305_v35, %v172_v31  ;;  %v2843_v31 = vld [vmem:[#allocation5 + $0x30] sm:$0xff]  ;;  %v2855_v35 = vld [vmem:[#allocation3 + $0x20] sm:$0xff] }
  0xa7   :  { %v268_v52 = vld [vmem:[#allocation2 + $0x8] sm:$0xff]  ;;  %486 = vmatpush.msra.mxu3 %v2843_v31  ;;  %448 = vmatpush.msra.mxu2 %v2855_v35 }
  0xa8   :  { %v2145_v37 = vmul.f32 -1.442695, %v308_v36  ;;  %v345_v45 = vpop.f32.mrf.mxu3  ;;  %v2857_v36 = vld [vmem:[#allocation5 + $0x20] sm:$0xff] }
  0xa9   :  { %v346_v49 = vadd.f32 %v2717_v42, %v345_v45  ;;  %487 = vmatpush.msra.mxu3 %v2849_v34  ;;  %v2879_v45 = vld [vmem:[#allocation5 + $0x8] sm:$0xff] }
  0xaa   :  { %2224 = vpow2.f32 %v2145_v37  ;;  %v2861_v37 = vld [vmem:[#allocation3 + $0x18] sm:$0xff] }
  0xab   :  { %488 = vmatpush.msra.mxu3 %v2857_v36  ;;  %449 = vmatpush.msra.mxu2 %v2861_v37 }
  0xb0   :  { %v2225_v38 = vpop.eup %2224 }
  0xb1   :  { %v312_v39 = vadd.f32 1.0, %v2225_v38  ;;  %v2863_v38 = vld [vmem:[#allocation5 + $0x18] sm:$0xff] }
  0xb2   :  { %489 = vmatpush.msra.mxu3 %v2863_v38 }
  0xb3   :  { %2226 = vrcp.f32 %v312_v39  ;;  %v324_v44 = vand.u32 2147483648, %v312_v39  ;;  %v322_v47 = vand.u32 2147483647, %v312_v39  ;;  %vm318_vm3 = vweird.f32 %v312_v39 }
  0xb5   :  { %v325_v50 = vor.u32 1.1754944e-38, %v324_v44  ;;  %vm323_vm5 = vcmp.eq.f32.partialorder %v322_v47, 8.507059e+37  ;;  %v2877_v44 = vld [vmem:[#allocation3 + $0x8] sm:$0xff]  ;;  %v2885_v47 = vld [vmem:[#allocation5] sm:$0xff] }
  0xb9   :  { %v2227_v40 = vpop.eup %2226 }
  0xba   :  { %v314_v41 = vmul.f32 %v2227_v40, %v312_v39  ;;  %vm319_vm2 = vweird.f32 %v2227_v40  ;;  %v2867_v39 = vld [vmem:[#allocation3 + $0x10] sm:$0xff] }
  0xbb   :  { %vm320_vm4 = vmor %vm318_vm3, %vm319_vm2  ;;  %450 = vmatpush.msra.mxu2 %v2867_v39 }
  0xbc   :  { %v315_v43 = vsub.f32 1.0, %v314_v41 }
  0xbd   :  { %451 = vmatpush.msra.mxu2 %v2877_v44 }
  0xbe   :  { %v316_v46 = vmul.f32 %v2227_v40, %v315_v43 }
  0xc0   :  { %v317_v48 = vadd.f32 %v2227_v40, %v316_v46  ;;  %v2883_v46 = vld [vmem:[#allocation3] sm:$0xff] }
  0xc1   :  { %452 = vmatpush.msra.mxu2 %v2883_v46 }
  0xc2   :  { %v321_v51 = vsel %vm320_vm4, %v2227_v40, %v317_v48  ;;  %v2869_v40 = vld [vmem:[#allocation5 + $0x10] sm:$0xff]  ;;  %v106_v48 = vld [vmem:[%s3732_s0 + $0x8] sm:$0xff] }
  0xc3   :  { %v2720_v53 = vsel %vm323_vm5, %v325_v50, %v321_v51  ;;  %490 = vmatpush.msra.mxu3 %v2869_v40  ;;  %2130 = vmatmul.msk.f32.gmra.mxu0 %vm129_vm0, %v106_v48 }
  0xc4   :  { %v348_v54 = vmul.f32 %v346_v49, %v2720_v53  ;;  %2138 = vmatmul.msk.f32.gmra.mxu1 %vm129_vm0, %v106_v48 }
  0xc5   :  { %491 = vmatpush.msra.mxu3 %v2879_v45 }
  0xc6   :  { %v349_v55 = vadd.f32 %v348_v54, %v268_v52  ;;  %v261_v52 = vld [vmem:[%s3741_s9] sm:$0x3] }
  0xc7   :  { %492 = vmatpush.msra.mxu3 %v2885_v47  ;;  %v2959_v54 = vperm.slane %v261_v52, 0 }
  0xc8   :  { %2228 = vtanh.f32 %v349_v55 }
  0xc9   :  { %3800 = vst [vmem:[#allocation25_spill] sm:$0xff] %v2959_v54 }
  0xce   :  { %v2723_v56 = vpop.eup %2228 }
  0xcf   :  { %v351_v57 = vsub.f32 0.0, %v2723_v56 }
  0xd1   :  { %353 = vrot.lane.b32.xlu0 %v351_v57, %s2488_s8 }
 0x141   :  { %v215_v55 = vpop.f32.mrf.mxu1 }
 0x142   :  { %v216_v57 = vadd.f32 %v215_v55, %v2710_v32  ;;  %v2967_v55 = vld [vmem:[%s3742_s10] ss:$0 sm:$0xff] }
 0x143   :  { %v354_v41 = vpop.permute.xlu0 %353 }
 0x144   :  { %v356_v43 = vmul.f32 %v354_v41, %v2720_v53  ;;  %240 = vst.msk [vmem:[#allocation2 + $0x18] sm:$0xff] %vm237_vm1, %v216_v57 }
 0x146   :  { %358 = vrot.lane.b32.xlu0 %v356_v43, %s2488_s8 }
 0x1b8   :  { %v359_v49 = vpop.permute.xlu0 %358 }
 0x1b9   :  { %v2895_v50 = vadd.f32 %v2723_v56, %v359_v49 }
 0x1bb   :  { %2146 = vmatmul.msk.f32.vlgmr.msrb.gmra.mxu2 %vm237_vm1, %v2895_v50  ;;  %2147 = vmatmul.msk.f32.vlgmr.msrb.gmra.mxu3 %vm237_vm1, %v2895_v50 }
 0x1bc   :  { %529 = vmatpush.msrb.mxu2 %v2574_v0  ;;  %569 = vmatpush.msrb.mxu3 %v2608_v8 }
 0x1be   :  { %530 = vmatpush.msrb.mxu2 %v2582_v2  ;;  %570 = vmatpush.msrb.mxu3 %v2614_v9 }
 0x1c0   :  { %531 = vmatpush.msrb.mxu2 %v2591_v4  ;;  %571 = vmatpush.msrb.mxu3 %v2638_v15 }
 0x1c2   :  { %532 = vmatpush.msrb.mxu2 %v2600_v6  ;;  %572 = vmatpush.msrb.mxu3 %v2653_v18 }
 0x1c3   :  { %453 = vmatmul.f32.vlgmr.msra.gmra.mxu2 %v2487_v26  ;;  %493 = vmatmul.f32.vlgmr.msra.gmra.mxu3 %v2487_v26  ;;  %v174_v26 = vpop.f32.mrf.mxu0 }
 0x1c4   :  { %533 = vmatpush.msrb.mxu2 %v2622_v11  ;;  %573 = vmatpush.msrb.mxu3 %v2669_v21  ;;  %v175_v51 = vadd.f32 %v174_v26, %v2707_v29 }
 0x1c6   :  { %534 = vmatpush.msrb.mxu2 %v2643_v16  ;;  %574 = vmatpush.msrb.mxu3 %v2684_v24 }
 0x1c8   :  { %535 = vmatpush.msrb.mxu2 %v2659_v19  ;;  %575 = vmatpush.msrb.mxu3 %v2691_v25 }
 0x1ca   :  { %536 = vmatpush.msrb.mxu2 %v2674_v22  ;;  %576 = vmatpush.msrb.mxu3 %v2698_v27 }
 0x1cb   :  { %2149 = vmatmul.msk.f32.vlgmr.msrb.gmra.mxu2 %vm237_vm1, %v2895_v50  ;;  %2151 = vmatmul.msk.f32.vlgmr.msrb.gmra.mxu3 %vm237_vm1, %v2895_v50 }
 0x1cc   :  { %649 = vmatpush.msra.mxu2 %v2833_v23  ;;  %689 = vmatpush.msra.mxu3 %v2835_v28 }
 0x1ce   :  { %650 = vmatpush.msra.mxu2 %v2841_v30  ;;  %690 = vmatpush.msra.mxu3 %v2843_v31 }
 0x1d0   :  { %651 = vmatpush.msra.mxu2 %v2847_v33  ;;  %691 = vmatpush.msra.mxu3 %v2849_v34 }
 0x1d2   :  { %652 = vmatpush.msra.mxu2 %v2855_v35  ;;  %692 = vmatpush.msra.mxu3 %v2857_v36 }
 0x1d4   :  { %653 = vmatpush.msra.mxu2 %v2861_v37  ;;  %693 = vmatpush.msra.mxu3 %v2863_v38 }
 0x1d6   :  { %654 = vmatpush.msra.mxu2 %v2867_v39  ;;  %694 = vmatpush.msra.mxu3 %v2869_v40 }
 0x1d8   :  { %655 = vmatpush.msra.mxu2 %v2877_v44  ;;  %695 = vmatpush.msra.mxu3 %v2879_v45 }
 0x1da   :  { %656 = vmatpush.msra.mxu2 %v2883_v46  ;;  %696 = vmatpush.msra.mxu3 %v2885_v47 }
 0x1dc   :  { %776 = vmatpush.msrb.mxu2 %v2574_v0  ;;  %816 = vmatpush.msrb.mxu3 %v2608_v8 }
 0x1de   :  { %777 = vmatpush.msrb.mxu2 %v2582_v2  ;;  %817 = vmatpush.msrb.mxu3 %v2614_v9 }
 0x1e0   :  { %778 = vmatpush.msrb.mxu2 %v2591_v4  ;;  %818 = vmatpush.msrb.mxu3 %v2638_v15 }
 0x1e2   :  { %779 = vmatpush.msrb.mxu2 %v2600_v6  ;;  %819 = vmatpush.msrb.mxu3 %v2653_v18 }
 0x1e4   :  { %780 = vmatpush.msrb.mxu2 %v2622_v11  ;;  %820 = vmatpush.msrb.mxu3 %v2669_v21 }
 0x1e6   :  { %781 = vmatpush.msrb.mxu2 %v2643_v16  ;;  %821 = vmatpush.msrb.mxu3 %v2684_v24 }
 0x1e8   :  { %782 = vmatpush.msrb.mxu2 %v2659_v19  ;;  %822 = vmatpush.msrb.mxu3 %v2691_v25 }
 0x1ea   :  { %783 = vmatpush.msrb.mxu2 %v2674_v22  ;;  %823 = vmatpush.msrb.mxu3 %v2698_v27 }
 0x23e   :  { %v398_v53 = vpop.f32.mrf.mxu2  ;;  %v418_v11 = vpop.f32.mrf.mxu3 }
 0x23f   :  { %v399_v56 = vadd.f32 %v398_v53, %v2959_v54 }
 0x246   :  { %v454_v41 = vpop.f32.mrf.mxu2 }
 0x247   :  { %v457_v43 = vadd.f32 %v454_v41, %v399_v56  ;;  %v494_v41 = vpop.f32.mrf.mxu3 }
 0x249   :  { %v2148_v48 = vmul.f32 -1.442695, %v457_v43 }
 0x24b   :  { %2230 = vpow2.f32 %v2148_v48  ;;  %v495_v48 = vadd.f32 %v2967_v55, %v494_v41 }
 0x24e   :  { %v538_v49 = vpop.f32.mrf.mxu2 }
 0x24f   :  { %v541_v26 = vadd.f32 %v538_v49, %v175_v51 }
 0x251   :  { %v2231_v22 = vpop.eup %2230  ;;  %v2150_v19 = vmul.f32 -1.442695, %v541_v26 }
 0x252   :  { %v461_v16 = vadd.f32 1.0, %v2231_v22  ;;  %v2969_v22 = vperm.slane %v261_v52, 1 }
 0x253   :  { %2232 = vpow2.f32 %v2150_v19 }
 0x254   :  { %2234 = vrcp.f32 %v461_v16  ;;  %v473_v57 = vand.u32 2147483648, %v461_v16  ;;  %v471_v43 = vand.u32 2147483647, %v461_v16  ;;  %vm467_vm7 = vweird.f32 %v461_v16 }
 0x256   :  { %v474_v49 = vor.u32 1.1754944e-38, %v473_v57  ;;  %vm472_vm9 = vcmp.eq.f32.partialorder %v471_v43, 8.507059e+37 }
 0x259   :  { %v2233_v17 = vpop.eup %2232 }
 0x25a   :  { %v2235_v27 = vpop.eup %2234  ;;  %v545_v6 = vadd.f32 1.0, %v2233_v17 }
 0x25b   :  { %v463_v53 = vmul.f32 %v2235_v27, %v461_v16  ;;  %vm468_vm6 = vweird.f32 %v2235_v27 }
 0x25c   :  { %2236 = vrcp.f32 %v545_v6  ;;  %vm469_vm8 = vmor %vm467_vm7, %vm468_vm6  ;;  %v555_v52 = vand.u32 2147483647, %v545_v6  ;;  %vm551_vm11 = vweird.f32 %v545_v6 }
 0x25d   :  { %v464_v56 = vsub.f32 1.0, %v463_v53  ;;  %v419_v53 = vadd.f32 %v418_v11, %v2969_v22 }
 0x25e   :  { %vm556_vm13 = vcmp.eq.f32.partialorder %v555_v52, 8.507059e+37  ;;  %v111_v52 = vld [vmem:[%s3732_s0 + $0x30] sm:$0xff] }
 0x25f   :  { %v465_v51 = vmul.f32 %v2235_v27, %v464_v56  ;;  %v557_v56 = vand.u32 2147483648, %v545_v6 }
 0x261   :  { %v466_v19 = vadd.f32 %v2235_v27, %v465_v51  ;;  %v578_v51 = vpop.f32.mrf.mxu3  ;;  %v558_v41 = vor.u32 1.1754944e-38, %v557_v56 }
 0x262   :  { %v2237_v17 = vpop.eup %2236 }
 0x263   :  { %v470_v26 = vsel %vm469_vm8, %v2235_v27, %v466_v19  ;;  %v547_v54 = vmul.f32 %v2237_v17, %v545_v6  ;;  %vm552_vm10 = vweird.f32 %v2237_v17  ;;  %v579_v27 = vadd.f32 %v2717_v42, %v578_v51  ;;  %v520_v19 = vld [vmem:[#allocation2 + $0x18] sm:$0xff]  ;;  %v107_v6 = vld [vmem:[%s3732_s0 + $0x10] sm:$0xff] }
 0x264   :  { %v475_v13 = vsel %vm472_vm9, %v474_v49, %v470_v26  ;;  %vm553_vm12 = vmor %vm551_vm11, %vm552_vm10  ;;  %2131 = vmatmul.msk.f32.gmra.mxu0 %vm129_vm0, %v107_v6  ;;  %2139 = vmatmul.msk.f32.gmra.mxu1 %vm129_vm0, %v107_v6  ;;  %v110_v26 = vld [vmem:[%s3732_s0 + $0x28] sm:$0xff]  ;;  %v518_v51 = vld [vmem:[#allocation7 + $0x38] sm:$0xff] }
 0x265   :  { %v497_v25 = vmul.f32 %v495_v48, %v475_v13  ;;  %v548_v4 = vsub.f32 1.0, %v547_v54  ;;  %754 = vmatpush.msra.mxu1 %v518_v51  ;;  %v3812_v51 = vld [vmem:[#allocation17_spill] sm:$0xff] }
 0x267   :  { %v498_v10 = vadd.f32 %v497_v25, %v419_v53  ;;  %v549_v24 = vmul.f32 %v2237_v17, %v548_v4 }
 0x269   :  { %2238 = vtanh.f32 %v498_v10  ;;  %v550_v16 = vadd.f32 %v2237_v17, %v549_v24  ;;  %v108_v24 = vld [vmem:[%s3732_s0 + $0x18] sm:$0xff]  ;;  %v109_v10 = vld [vmem:[%s3732_s0 + $0x20] sm:$0xff] }
 0x26b   :  { %v554_v57 = vsel %vm553_vm12, %v2237_v17, %v550_v16  ;;  %v517_v16 = vld [vmem:[#allocation7 + $0x30] sm:$0xff] }
 0x26c   :  { %v559_v43 = vsel %vm556_vm13, %v558_v41, %v554_v57  ;;  %2132 = vmatmul.msk.f32.gmra.mxu0 %vm129_vm0, %v108_v24  ;;  %2140 = vmatmul.msk.f32.gmra.mxu1 %vm129_vm0, %v108_v24  ;;  %v516_v41 = vld [vmem:[#allocation7 + $0x28] sm:$0xff]  ;;  %v515_v57 = vld [vmem:[#allocation7 + $0x20] sm:$0xff] }
 0x26d   :  { %v581_v11 = vmul.f32 %v579_v27, %v559_v43  ;;  %755 = vmatpush.msra.mxu1 %v517_v16  ;;  %v514_v27 = vld [vmem:[#allocation7 + $0x18] sm:$0xff]  ;;  %v3813_v16 = vld [vmem:[#allocation18_spill] sm:$0xff] }
 0x26f   :  { %v2239_v48 = vpop.eup %2238  ;;  %v582_v54 = vadd.f32 %v581_v11, %v520_v19  ;;  %756 = vmatpush.msra.mxu1 %v516_v41  ;;  %v512_v19 = vld [vmem:[#allocation7 + $0x8] sm:$0xff]  ;;  %v511_v11 = vld [vmem:[#allocation7] sm:$0xff] }
 0x270   :  { %v500_v49 = vsub.f32 0.0, %v2239_v48 }
 0x271   :  { %2240 = vtanh.f32 %v582_v54  ;;  %757 = vmatpush.msra.mxu1 %v515_v57 }
 0x272   :  { %502 = vrot.lane.b32.xlu1 %v500_v49, %s2488_s8 }
 0x273   :  { %758 = vmatpush.msra.mxu1 %v514_v27 }
 0x274   :  { %2133 = vmatmul.msk.f32.gmra.mxu0 %vm129_vm0, %v109_v10  ;;  %2141 = vmatmul.msk.f32.gmra.mxu1 %vm129_vm0, %v109_v10 }
 0x277   :  { %v2241_v4 = vpop.eup %2240 }
 0x278   :  { %v584_v25 = vsub.f32 %v2895_v50, %v2241_v4 }
 0x27a   :  { %586 = vrot.lane.b32.xlu1 %v584_v25, %s2488_s8 }
 0x27c   :  { %2134 = vmatmul.msk.f32.gmra.mxu0 %vm129_vm0, %v110_v26  ;;  %2142 = vmatmul.msk.f32.gmra.mxu1 %vm129_vm0, %v110_v26 }
 0x284   :  { %2135 = vmatmul.msk.f32.gmra.mxu0 %vm129_vm0, %v111_v52  ;;  %2143 = vmatmul.msk.f32.gmra.mxu1 %vm129_vm0, %v111_v52  ;;  %v3810_v52 = vld [vmem:[#allocation15_spill] sm:$0xff] }
 0x2e1   :  { %v177_v6 = vpop.f32.mrf.mxu0  ;;  %v218_v24 = vpop.f32.mrf.mxu1 }
 0x2e2   :  { %v219_v10 = vadd.f32 %v218_v24, %v2710_v32 }
 0x2e4   :  { %v503_v50 = vpop.permute.xlu1 %502  ;;  %242 = vst.msk [vmem:[#allocation2 + $0x28] sm:$0xff] %vm237_vm1, %v219_v10  ;;  %v3814_v10 = vld [vmem:[#allocation25_spill] sm:$0xff] }
 0x2e5   :  { %v505_v17 = vmul.f32 %v503_v50, %v475_v13  ;;  %v112_v13 = vld [vmem:[%s3732_s0 + $0x38] sm:$0xff] }
 0x2e6   :  { %2136 = vmatmul.msk.f32.gmra.mxu0 %vm129_vm0, %v112_v13  ;;  %2144 = vmatmul.msk.f32.gmra.mxu1 %vm129_vm0, %v112_v13  ;;  %v3811_v13 = vld [vmem:[#allocation16_spill] sm:$0xff] }
 0x2e7   :  { %507 = vrot.lane.b32.xlu2 %v505_v17, %s2488_s8 }
 0x2e9   :  { %v221_v50 = vpop.f32.mrf.mxu1 }
 0x2ec   :  { %v587_v53 = vpop.permute.xlu1 %586 }
 0x2ed   :  { %v589_v56 = vmul.f32 %v587_v53, %v559_v43  ;;  %v513_v43 = vld [vmem:[#allocation7 + $0x10] sm:$0xff]  ;;  %v3808_v53 = vld [vmem:[#allocation24_spill] sm:$0xff] }
 0x2ee   :  { %759 = vmatpush.msra.mxu1 %v513_v43 }
 0x2ef   :  { %591 = vrot.lane.b32.xlu2 %v589_v56, %s2488_s8 }
 0x2f0   :  { %760 = vmatpush.msra.mxu1 %v512_v19 }
 0x2f2   :  { %761 = vmatpush.msra.mxu1 %v511_v11 }
 0x341   :  { %v508_v54 = vpop.permute.xlu2 %507 }
 0x342   :  { %v3009_v49 = vadd.f32 %v2239_v48, %v508_v54 }
 0x344   :  { %2154 = vmatmul.msk.f32.vlgmr.msra.gmra.mxu2 %vm237_vm1, %v3009_v49  ;;  %2156 = vmatmul.msk.f32.vlgmr.msra.gmra.mxu3 %vm237_vm1, %v3009_v49 }
 0x345   :  { %893 = vmatpush.msra.mxu2 %v2833_v23  ;;  %933 = vmatpush.msra.mxu3 %v2835_v28 }
 0x347   :  { %894 = vmatpush.msra.mxu2 %v2841_v30  ;;  %934 = vmatpush.msra.mxu3 %v2843_v31 }
 0x349   :  { %v592_v25 = vpop.permute.xlu2 %591  ;;  %895 = vmatpush.msra.mxu2 %v2847_v33  ;;  %935 = vmatpush.msra.mxu3 %v2849_v34 }
 0x34a   :  { %v3021_v48 = vadd.f32 %v2241_v4, %v592_v25  ;;  %v3034_v4 = vadd.f32 %v177_v6, %v2707_v29 }
 0x34b   :  { %896 = vmatpush.msra.mxu2 %v2855_v35  ;;  %936 = vmatpush.msra.mxu3 %v2857_v36 }
 0x34c   :  { %2152 = vmatmul.msk.f32.vlgmr.msrb.gmra.mxu0 %vm237_vm1, %v3021_v48  ;;  %2153 = vmatmul.msk.f32.vlgmr.msrb.gmra.mxu1 %vm237_vm1, %v3021_v48 }
 0x34d   :  { %2159 = vmatmul.msk.f32.vlgmr.msrb.gmra.mxu2 %vm237_vm1, %v3021_v48  ;;  %2161 = vmatmul.msk.f32.vlgmr.msrb.gmra.mxu3 %vm237_vm1, %v3021_v48 }
 0x34e   :  { %897 = vmatpush.msra.mxu2 %v2861_v37  ;;  %937 = vmatpush.msra.mxu3 %v2863_v38 }
 0x34f   :  { %873 = vmatpush.msrb.mxu1 %v2735_v59  ;;  %v180_v59 = vpop.f32.mrf.mxu0 }
 0x350   :  { %898 = vmatpush.msra.mxu2 %v2867_v39  ;;  %938 = vmatpush.msra.mxu3 %v2869_v40  ;;  %v3053_v17 = vadd.f32 %v180_v59, %v2707_v29 }
 0x351   :  { %874 = vmatpush.msrb.mxu1 %v2747_v61  ;;  %v222_v61 = vadd.f32 %v221_v50, %v2710_v32 }
 0x352   :  { %899 = vmatpush.msra.mxu2 %v2877_v44  ;;  %939 = vmatpush.msra.mxu3 %v2879_v45 }
 0x353   :  { %875 = vmatpush.msrb.mxu1 %v2757_v63  ;;  %244 = vst.msk [vmem:[#allocation2 + $0x38] sm:$0xff] %vm237_vm1, %v222_v61  ;;  %v224_v63 = vpop.f32.mrf.mxu1 }
 0x354   :  { %2158 = vmatmul.msk.f32.vlgmr.msra.gmra.mxu1 %vm237_vm1, %v3009_v49  ;;  %900 = vmatpush.msra.mxu2 %v2883_v46 }
 0x355   :  { %940 = vmatpush.msra.mxu3 %v2885_v47  ;;  %876 = vmatpush.msrb.mxu1 %v2771_v3  ;;  %v225_v3 = vadd.f32 %v224_v63, %v2710_v32 }
 0x356   :  { %1041 = vmatpush.msrb.mxu2 %v2608_v8 }
 0x357   :  { %1078 = vmatpush.msrb.mxu3 %v2730_v58  ;;  %877 = vmatpush.msrb.mxu1 %v2785_v7  ;;  %v183_v8 = vpop.f32.mrf.mxu0  ;;  %246 = vst.msk [vmem:[#allocation2 + $0x48] sm:$0xff] %vm237_vm1, %v225_v3  ;;  %v3803_v7 = vld [vmem:[#allocation13_spill] sm:$0xff] }
 0x358   :  { %1042 = vmatpush.msrb.mxu2 %v2614_v9  ;;  %v3070_v9 = vadd.f32 %v183_v8, %v2707_v29 }
 0x359   :  { %1079 = vmatpush.msrb.mxu3 %v2740_v60  ;;  %878 = vmatpush.msrb.mxu1 %v2799_v12  ;;  %v3804_v12 = vld [vmem:[#allocation20_spill] sm:$0xff] }
 0x35a   :  { %1043 = vmatpush.msrb.mxu2 %v2638_v15  ;;  %v3801_v15 = vld [vmem:[#allocation19_spill] sm:$0xff] }
 0x35b   :  { %1080 = vmatpush.msrb.mxu3 %v2752_v62  ;;  %879 = vmatpush.msrb.mxu1 %v2813_v14  ;;  %v3805_v14 = vld [vmem:[#allocation23_spill] sm:$0xff]  ;;  %v227_v26 = vpop.f32.mrf.mxu1 }
 0x35c   :  { %1044 = vmatpush.msrb.mxu2 %v2653_v18  ;;  %v3802_v18 = vld [vmem:[#allocation22_spill] sm:$0xff]  ;;  %v228_v56 = vadd.f32 %v227_v26, %v2710_v32 }
 0x35d   :  { %1081 = vmatpush.msrb.mxu3 %v2766_v1  ;;  %880 = vmatpush.msrb.mxu1 %v2827_v20  ;;  %v3806_v20 = vld [vmem:[#allocation14_spill] sm:$0xff] }
 0x35e   :  { %1045 = vmatpush.msrb.mxu2 %v2669_v21  ;;  %248 = vst.msk [vmem:[#allocation2 + $0x58] sm:$0xff] %vm237_vm1, %v228_v56 }
 0x35f   :  { %1001 = vmatpush.msra.mxu1 %v2574_v0  ;;  %1082 = vmatpush.msrb.mxu3 %v2780_v5  ;;  %v3807_v0 = vld [vmem:[#allocation21_spill] sm:$0xff]  ;;  %v186_v21 = vpop.f32.mrf.mxu0 }
 0x360   :  { %1046 = vmatpush.msrb.mxu2 %v3801_v15 }
 0x361   :  { %1002 = vmatpush.msra.mxu1 %v2582_v2  ;;  %1083 = vmatpush.msrb.mxu3 %v3802_v18  ;;  %v3087_v2 = vadd.f32 %v186_v21, %v2707_v29 }
 0x362   :  { %1047 = vmatpush.msrb.mxu2 %v3804_v12 }
 0x363   :  { %1003 = vmatpush.msra.mxu1 %v3803_v7  ;;  %1084 = vmatpush.msrb.mxu3 %v3805_v14  ;;  %3809 = vst [vmem:[#allocation19_spill] sm:$0xff] %v3087_v2  ;;  %v230_v57 = vpop.f32.mrf.mxu1 }
 0x364   :  { %1048 = vmatpush.msrb.mxu2 %v3807_v0  ;;  %v231_v43 = vadd.f32 %v230_v57, %v2710_v32 }
 0x365   :  { %1004 = vmatpush.msra.mxu1 %v3806_v20  ;;  %1085 = vmatpush.msrb.mxu3 %v3808_v53 }
 0x366   :  { %250 = vst.msk [vmem:[#allocation2 + $0x68] sm:$0xff] %vm237_vm1, %v231_v43 }
 0x367   :  { %1005 = vmatpush.msra.mxu1 %v3810_v52  ;;  %v189_v41 = vpop.f32.mrf.mxu0 }
 0x368   :  { %v190_v27 = vadd.f32 %v189_v41, %v2707_v29 }
 0x369   :  { %1006 = vmatpush.msra.mxu1 %v3811_v13 }
 0x36a   :  { %249 = vst [vmem:[#allocation2 + $0x60] sm:$0xff] %v190_v27 }
 0x36b   :  { %1007 = vmatpush.msra.mxu1 %v3812_v51  ;;  %v233_v11 = vpop.f32.mrf.mxu1 }
 0x36c   :  { %v234_v25 = vadd.f32 %v233_v11, %v2710_v32 }
 0x36d   :  { %1008 = vmatpush.msra.mxu1 %v3813_v16 }
 0x36e   :  { %252 = vst.msk [vmem:[#allocation2 + $0x78] sm:$0xff] %vm237_vm1, %v234_v25 }
 0x36f   :  { %v192_v19 = vpop.f32.mrf.mxu0 }
 0x370   :  { %v193_v54 = vadd.f32 %v192_v19, %v2707_v29 }
 0x372   :  { %251 = vst [vmem:[#allocation2 + $0x70] sm:$0xff] %v193_v54 }
 0x3c7   :  { %v658_v6 = vpop.f32.mrf.mxu2  ;;  %v698_v20 = vpop.f32.mrf.mxu3 }
 0x3c8   :  { %v699_v27 = vadd.f32 %v2967_v55, %v698_v20 }
 0x3c9   :  { %v615_v24 = vpop.f32.mrf.mxu0 }
 0x3ca   :  { %v616_v59 = vadd.f32 %v615_v24, %v3814_v10 }
 0x3cc   :  { %v661_v50 = vadd.f32 %v658_v6, %v616_v59 }
 0x3ce   :  { %v2155_v61 = vmul.f32 -1.442695, %v661_v50 }
 0x3d0   :  { %2242 = vpow2.f32 %v2155_v61  ;;  %v785_v8 = vpop.f32.mrf.mxu2  ;;  %v825_v59 = vpop.f32.mrf.mxu3 }
 0x3d1   :  { %v788_v63 = vadd.f32 %v785_v8, %v3034_v4  ;;  %v635_v4 = vpop.f32.mrf.mxu1 }
 0x3d2   :  { %v636_v6 = vadd.f32 %v635_v4, %v2969_v22 }
 0x3d3   :  { %v2160_v3 = vmul.f32 -1.442695, %v788_v63 }
 0x3d5   :  { %2244 = vpow2.f32 %v2160_v3  ;;  %v826_v3 = vadd.f32 %v2717_v42, %v825_v59  ;;  %v720_v42 = vld [vmem:[#allocation7 + $0x68] sm:$0xff] }
 0x3d6   :  { %v2243_v15 = vpop.eup %2242 }
 0x3d7   :  { %v665_v7 = vadd.f32 1.0, %v2243_v15 }
 0x3d9   :  { %2246 = vrcp.f32 %v665_v7  ;;  %v677_v26 = vand.u32 2147483648, %v665_v7  ;;  %v675_v13 = vand.u32 2147483647, %v665_v7  ;;  %vm671_vm15 = vweird.f32 %v665_v7 }
 0x3db   :  { %v2245_v29 = vpop.eup %2244  ;;  %v678_v41 = vor.u32 1.1754944e-38, %v677_v26  ;;  %vm676_vm2 = vcmp.eq.f32.partialorder %v675_v13, 8.507059e+37  ;;  %v722_v26 = vld [vmem:[#allocation7 + $0x78] sm:$0xff] }
 0x3dc   :  { %v792_v32 = vadd.f32 1.0, %v2245_v29  ;;  %v767_v29 = vld [vmem:[#allocation2 + $0x28] sm:$0xff]  ;;  %734 = vmatpush.msra.mxu0 %v722_v26  ;;  %v718_v13 = vld [vmem:[#allocation7 + $0x58] sm:$0xff] }
 0x3de   :  { %2248 = vrcp.f32 %v792_v32  ;;  %v804_v19 = vand.u32 2147483648, %v792_v32  ;;  %v802_v25 = vand.u32 2147483647, %v792_v32  ;;  %vm798_vm4 = vweird.f32 %v792_v32 }
 0x3df   :  { %v2247_v12 = vpop.eup %2246 }
 0x3e0   :  { %v667_v0 = vmul.f32 %v2247_v12, %v665_v7  ;;  %vm672_vm14 = vweird.f32 %v2247_v12  ;;  %v805_v8 = vor.u32 1.1754944e-38, %v804_v19  ;;  %vm803_vm6 = vcmp.eq.f32.partialorder %v802_v25, 8.507059e+37 }
 0x3e1   :  { %vm673_vm0 = vmor %vm671_vm15, %vm672_vm14 }
 0x3e2   :  { %v668_v21 = vsub.f32 1.0, %v667_v0 }
 0x3e4   :  { %v2249_v56 = vpop.eup %2248  ;;  %v669_v52 = vmul.f32 %v2247_v12, %v668_v21 }
 0x3e5   :  { %v794_v51 = vmul.f32 %v2249_v56, %v792_v32  ;;  %vm799_vm3 = vweird.f32 %v2249_v56 }
 0x3e6   :  { %v670_v16 = vadd.f32 %v2247_v12, %v669_v52  ;;  %vm800_vm5 = vmor %vm798_vm4, %vm799_vm3  ;;  %v719_v52 = vld [vmem:[#allocation7 + $0x60] sm:$0xff] }
 0x3e7   :  { %v795_v57 = vsub.f32 1.0, %v794_v51  ;;  %v717_v51 = vld [vmem:[#allocation7 + $0x50] sm:$0xff] }
 0x3e8   :  { %v674_v43 = vsel %vm673_vm0, %v2247_v12, %v670_v16  ;;  %v716_v16 = vld [vmem:[#allocation7 + $0x48] sm:$0xff] }
 0x3e9   :  { %v679_v11 = vsel %vm676_vm2, %v678_v41, %v674_v43  ;;  %v796_v54 = vmul.f32 %v2249_v56, %v795_v57  ;;  %v715_v57 = vld [vmem:[#allocation7 + $0x40] sm:$0xff] }
 0x3ea   :  { %v701_v24 = vmul.f32 %v699_v27, %v679_v11 }
 0x3eb   :  { %v797_v50 = vadd.f32 %v2249_v56, %v796_v54 }
 0x3ec   :  { %v702_v61 = vadd.f32 %v701_v24, %v636_v6 }
 0x3ed   :  { %v801_v63 = vsel %vm800_vm5, %v2249_v56, %v797_v50  ;;  %v721_v56 = vld [vmem:[#allocation7 + $0x70] sm:$0xff] }
 0x3ee   :  { %2250 = vtanh.f32 %v702_v61  ;;  %v806_v15 = vsel %vm803_vm6, %v805_v8, %v801_v63  ;;  %735 = vmatpush.msra.mxu0 %v721_v56 }
 0x3ef   :  { %v828_v7 = vmul.f32 %v826_v3, %v806_v15 }
 0x3f0   :  { %736 = vmatpush.msra.mxu0 %v720_v42 }
 0x3f1   :  { %v829_v12 = vadd.f32 %v828_v7, %v767_v29 }
 0x3f2   :  { %737 = vmatpush.msra.mxu0 %v719_v52 }
 0x3f3   :  { %2252 = vtanh.f32 %v829_v12 }
 0x3f4   :  { %v2251_v20 = vpop.eup %2250  ;;  %738 = vmatpush.msra.mxu0 %v718_v13 }
 0x3f5   :  { %v704_v0 = vsub.f32 %v3009_v49, %v2251_v20 }
 0x3f6   :  { %739 = vmatpush.msra.mxu0 %v717_v51  ;;  %v3219_v51 = vld [vmem:[%s3737_s5] ss:$0 sm:$0xff] }
 0x3f7   :  { %706 = vrot.lane.b32.xlu0 %v704_v0, %s2488_s8 }
 0x3f8   :  { %740 = vmatpush.msra.mxu0 %v716_v16 }
 0x3f9   :  { %v2253_v21 = vpop.eup %2252 }
 0x3fa   :  { %v831_v32 = vsub.f32 %v3021_v48, %v2253_v21  ;;  %741 = vmatpush.msra.mxu0 %v715_v57 }
 0x3fc   :  { %833 = vrot.lane.b32.xlu1 %v831_v32, %s2488_s8  ;;  %853 = vmatpush.msrb.mxu0 %v2730_v58 }
 0x3fe   :  { %854 = vmatpush.msrb.mxu0 %v2740_v60 }
 0x400   :  { %855 = vmatpush.msrb.mxu0 %v2752_v62 }
 0x402   :  { %856 = vmatpush.msrb.mxu0 %v2766_v1 }
 0x404   :  { %857 = vmatpush.msrb.mxu0 %v2780_v5 }
 0x406   :  { %858 = vmatpush.msrb.mxu0 %v3802_v18 }
 0x408   :  { %859 = vmatpush.msrb.mxu0 %v3805_v14 }
 0x40a   :  { %860 = vmatpush.msrb.mxu0 %v3808_v53 }
 0x469   :  { %v707_v49 = vpop.permute.xlu0 %706 }
 0x46a   :  { %v709_v4 = vmul.f32 %v707_v49, %v679_v11 }
 0x46c   :  { %711 = vrot.lane.b32.xlu2 %v709_v4, %s2488_s8 }
 0x46e   :  { %v834_v48 = vpop.permute.xlu1 %833 }
 0x46f   :  { %v836_v41 = vmul.f32 %v834_v48, %v806_v15 }
 0x471   :  { %838 = vrot.lane.b32.xlu0 %v836_v41, %s2488_s8  ;;  %v992_v41 = vld [vmem:[#allocation2 + $0x38] sm:$0xff] }
 0x4c6   :  { %v712_v27 = vpop.permute.xlu2 %711 }
 0x4c7   :  { %v3120_v43 = vadd.f32 %v2251_v20, %v712_v27 }
 0x4c9   :  { %2157 = vmatmul.msk.f32.vlgmr.msra.gmra.mxu0 %vm237_vm1, %v3120_v43  ;;  %2164 = vmatmul.msk.f32.vlgmr.msra.gmra.mxu2 %vm237_vm1, %v3120_v43 }
 0x4ca   :  { %2166 = vmatmul.msk.f32.vlgmr.msra.gmra.mxu3 %vm237_vm1, %v3120_v43  ;;  %1158 = vmatpush.msra.mxu2 %v2835_v28  ;;  %v3201_v28 = vld [vmem:[%s3735_s3 + $0x8] sm:$0xff] }
 0x4cb   :  { %3821 = vst [vmem:[#allocation24_spill] sm:$0xff] %v3201_v28 }
 0x4cc   :  { %1159 = vmatpush.msra.mxu2 %v2843_v31  ;;  %v763_v31 = vpop.f32.mrf.mxu1 }
 0x4ce   :  { %1160 = vmatpush.msra.mxu2 %v2849_v34 }
 0x4d0   :  { %1161 = vmatpush.msra.mxu2 %v2857_v36 }
 0x4d2   :  { %1162 = vmatpush.msra.mxu2 %v2863_v38 }
 0x4d4   :  { %1163 = vmatpush.msra.mxu2 %v2869_v40 }
 0x4d6   :  { %1164 = vmatpush.msra.mxu2 %v2879_v45 }
 0x4d8   :  { %1165 = vmatpush.msra.mxu2 %v2885_v47 }
 0x4e3   :  { %v839_v19 = vpop.permute.xlu0 %838 }
 0x4e4   :  { %v3136_v11 = vadd.f32 %v2253_v21, %v839_v19 }
 0x4e6   :  { %2162 = vmatmul.msk.f32.vlgmr.msrb.gmra.mxu0 %vm237_vm1, %v3136_v11  ;;  %2163 = vmatmul.msk.f32.vlgmr.msrb.gmra.mxu1 %vm237_vm1, %v3136_v11 }
 0x4e7   :  { %2170 = vmatmul.msk.f32.vlgmr.msrb.gmra.mxu2 %vm237_vm1, %v3136_v11  ;;  %1118 = vmatpush.msrb.mxu1 %v2833_v23  ;;  %v3195_v23 = vld [vmem:[%s3735_s3 + $0x10] sm:$0xff] }
 0x4e8   :  { %1303 = vmatpush.msrb.mxu2 %v2730_v58  ;;  %v3164_v58 = vld [vmem:[%s3735_s3 + $0x38] sm:$0xff]  ;;  %3820 = vst [vmem:[#allocation21_spill] sm:$0xff] %v3195_v23 }
 0x4e9   :  { %1119 = vmatpush.msrb.mxu1 %v2841_v30  ;;  %3815 = vst [vmem:[#allocation22_spill] sm:$0xff] %v3164_v58  ;;  %v3207_v30 = vld [vmem:[%s3735_s3] sm:$0xff] }
 0x4ea   :  { %1304 = vmatpush.msrb.mxu2 %v2740_v60  ;;  %v3171_v60 = vld [vmem:[%s3735_s3 + $0x30] sm:$0xff]  ;;  %3822 = vst [vmem:[#allocation15_spill] sm:$0xff] %v3207_v30 }
 0x4eb   :  { %1120 = vmatpush.msrb.mxu1 %v2847_v33  ;;  %3816 = vst [vmem:[#allocation13_spill] sm:$0xff] %v3171_v60 }
 0x4ec   :  { %1305 = vmatpush.msrb.mxu2 %v2752_v62  ;;  %v3177_v62 = vld [vmem:[%s3735_s3 + $0x28] sm:$0xff] }
 0x4ed   :  { %1121 = vmatpush.msrb.mxu1 %v2855_v35  ;;  %3817 = vst [vmem:[#allocation20_spill] sm:$0xff] %v3177_v62 }
 0x4ee   :  { %2168 = vmatmul.msk.f32.vlgmr.msra.gmra.mxu1 %vm237_vm1, %v3136_v11  ;;  %1306 = vmatpush.msrb.mxu2 %v2766_v1  ;;  %v3183_v1 = vld [vmem:[%s3735_s3 + $0x20] sm:$0xff] }
 0x4ef   :  { %1122 = vmatpush.msrb.mxu1 %v2861_v37  ;;  %3818 = vst [vmem:[#allocation23_spill] sm:$0xff] %v3183_v1 }
 0x4f0   :  { %1307 = vmatpush.msrb.mxu2 %v2780_v5  ;;  %v3189_v5 = vld [vmem:[%s3735_s3 + $0x18] sm:$0xff] }
 0x4f1   :  { %1123 = vmatpush.msrb.mxu1 %v2867_v39  ;;  %3819 = vst [vmem:[#allocation14_spill] sm:$0xff] %v3189_v5 }
 0x4f2   :  { %1308 = vmatpush.msrb.mxu2 %v3802_v18 }
 0x4f3   :  { %1124 = vmatpush.msrb.mxu1 %v2877_v44 }
 0x4f4   :  { %1309 = vmatpush.msrb.mxu2 %v3805_v14 }
 0x4f5   :  { %1125 = vmatpush.msrb.mxu1 %v2883_v46 }
 0x4f6   :  { %1310 = vmatpush.msrb.mxu2 %v3808_v53 }
 0x4f7   :  { %1266 = vmatpush.msra.mxu1 %v3164_v58 }
 0x4f9   :  { %1267 = vmatpush.msra.mxu1 %v3171_v60 }
 0x4fb   :  { %1268 = vmatpush.msra.mxu1 %v3177_v62 }
 0x4fd   :  { %1269 = vmatpush.msra.mxu1 %v3183_v1 }
 0x4ff   :  { %1270 = vmatpush.msra.mxu1 %v3189_v5 }
 0x501   :  { %1271 = vmatpush.msra.mxu1 %v3195_v23 }
 0x503   :  { %1272 = vmatpush.msra.mxu1 %v3201_v28 }
 0x505   :  { %1273 = vmatpush.msra.mxu1 %v3207_v30 }
 0x546   :  { %v743_v33 = vpop.f32.mrf.mxu0 }
 0x547   :  { %v3210_v34 = vadd.f32 %v763_v31, %v743_v33 }
 0x54c   :  { %v902_v38 = vpop.f32.mrf.mxu2 }
 0x54d   :  { %v942_v8 = vpop.f32.mrf.mxu3 }
 0x54e   :  { %v943_v15 = vadd.f32 %v2967_v55, %v942_v8 }
 0x563   :  { %v862_v35 = vpop.f32.mrf.mxu0  ;;  %v882_v36 = vpop.f32.mrf.mxu1 }
 0x564   :  { %v863_v37 = vadd.f32 %v862_v35, %v3814_v10  ;;  %v883_v12 = vadd.f32 %v882_v36, %v2969_v22  ;;  %v966_v35 = vld [vmem:[#allocation7 + $0xb8] sm:$0xff]  ;;  %v965_v36 = vld [vmem:[#allocation7 + $0xb0] sm:$0xff] }
 0x565   :  { %978 = vmatpush.msra.mxu0 %v966_v35  ;;  %v3408_v35 = vld [vmem:[%s3738_s6 + $0x30] sm:$0xff] }
 0x566   :  { %v905_v39 = vadd.f32 %v902_v38, %v863_v37  ;;  %v964_v37 = vld [vmem:[#allocation7 + $0xa8] sm:$0xff]  ;;  %v963_v38 = vld [vmem:[#allocation7 + $0xa0] sm:$0xff] }
 0x567   :  { %979 = vmatpush.msra.mxu0 %v965_v36  ;;  %v3411_v36 = vld [vmem:[#allocation3 + $0x10] sm:$0xff] }
 0x568   :  { %v2165_v40 = vmul.f32 -1.442695, %v905_v39  ;;  %v962_v39 = vld [vmem:[#allocation7 + $0x98] sm:$0xff] }
 0x569   :  { %980 = vmatpush.msra.mxu0 %v964_v37  ;;  %v3417_v37 = vld [vmem:[%s3738_s6 + $0x20] sm:$0xff] }
 0x56a   :  { %2254 = vpow2.f32 %v2165_v40  ;;  %v1050_v56 = vpop.f32.mrf.mxu2 }
 0x56b   :  { %v1010_v44 = vpop.f32.mrf.mxu1  ;;  %v1051_v16 = vadd.f32 %v3219_v51, %v1050_v56  ;;  %981 = vmatpush.msra.mxu0 %v963_v38  ;;  %v3346_v56 = vld [vmem:[%s3734_s2 + $0x8] sm:$0xff] }
 0x56c   :  { %v1013_v45 = vadd.f32 %v1010_v44, %v3053_v17  ;;  %v3420_v38 = vld [vmem:[#allocation3 + $0x8] sm:$0xff] }
 0x56d   :  { %982 = vmatpush.msra.mxu0 %v962_v39  ;;  %3823 = vst [vmem:[#allocation16_spill] sm:$0xff] %v3420_v38  ;;  %v3426_v39 = vld [vmem:[%s3738_s6 + $0x10] sm:$0xff] }
 0x56e   :  { %v2169_v46 = vmul.f32 -1.442695, %v1013_v45  ;;  %3824 = vst [vmem:[#allocation17_spill] sm:$0xff] %v3426_v39 }
 0x570   :  { %v2255_v47 = vpop.eup %2254  ;;  %2256 = vpow2.f32 %v2169_v46  ;;  %v960_v46 = vld [vmem:[#allocation7 + $0x88] sm:$0xff] }
 0x571   :  { %v909_v18 = vadd.f32 1.0, %v2255_v47  ;;  %v959_v47 = vld [vmem:[#allocation7 + $0x80] sm:$0xff] }
 0x573   :  { %2258 = vrcp.f32 %v909_v18  ;;  %v921_v24 = vand.u32 2147483648, %v909_v18  ;;  %v919_v50 = vand.u32 2147483647, %v909_v18  ;;  %vm915_vm8 = vweird.f32 %v909_v18 }
 0x575   :  { %v922_v3 = vor.u32 1.1754944e-38, %v921_v24  ;;  %vm920_vm10 = vcmp.eq.f32.partialorder %v919_v50, 8.507059e+37  ;;  %v3267_v24 = vld [vmem:[%s3738_s6 + $0x18] sm:$0xff] }
 0x576   :  { %v2257_v14 = vpop.eup %2256 }
 0x577   :  { %v1017_v53 = vadd.f32 1.0, %v2257_v14  ;;  %v3237_v14 = vld [vmem:[%s3738_s6 + $0x68] sm:$0xff] }
 0x579   :  { %v2259_v54 = vpop.eup %2258  ;;  %2260 = vrcp.f32 %v1017_v53  ;;  %v1029_v0 = vand.u32 2147483648, %v1017_v53  ;;  %v1027_v26 = vand.u32 2147483647, %v1017_v53  ;;  %vm1023_vm12 = vweird.f32 %v1017_v53 }
 0x57a   :  { %v911_v25 = vmul.f32 %v2259_v54, %v909_v18  ;;  %vm916_vm7 = vweird.f32 %v2259_v54  ;;  %v3231_v18 = vld [vmem:[%s3738_s6 + $0x78] sm:$0xff] }
 0x57b   :  { %vm917_vm9 = vmor %vm915_vm8, %vm916_vm7  ;;  %v1030_v13 = vor.u32 1.1754944e-38, %v1029_v0  ;;  %vm1028_vm14 = vcmp.eq.f32.partialorder %v1027_v26, 8.507059e+37  ;;  %v3328_v0 = vld [vmem:[%s3734_s2 + $0x18] sm:$0xff] }
 0x57c   :  { %v912_v6 = vsub.f32 1.0, %v911_v25  ;;  %v3255_v25 = vld [vmem:[%s3738_s6 + $0x38] sm:$0xff] }
 0x57d   :  { %v3340_v26 = vld [vmem:[#allocation5 + $0x18] sm:$0xff] }
 0x57e   :  { %v913_v59 = vmul.f32 %v2259_v54, %v912_v6  ;;  %v3261_v6 = vld [vmem:[%s3738_s6 + $0x28] sm:$0xff] }
 0x57f   :  { %v2261_v61 = vpop.eup %2260 }
 0x580   :  { %v914_v63 = vadd.f32 %v2259_v54, %v913_v59  ;;  %v1019_v17 = vmul.f32 %v2261_v61, %v1017_v53  ;;  %vm1024_vm11 = vweird.f32 %v2261_v61  ;;  %v3243_v53 = vld [vmem:[%s3738_s6 + $0x58] sm:$0xff]  ;;  %v3273_v59 = vld [vmem:[%s3738_s6 + $0x8] sm:$0xff] }
 0x581   :  { %vm1025_vm13 = vmor %vm1023_vm12, %vm1024_vm11 }
 0x582   :  { %v918_v7 = vsel %vm917_vm9, %v2259_v54, %v914_v63  ;;  %v1020_v29 = vsub.f32 1.0, %v1019_v17  ;;  %v3249_v54 = vld [vmem:[%s3738_s6 + $0x48] sm:$0xff]  ;;  %v3291_v17 = vld [vmem:[%s3734_s2 + $0x38] sm:$0xff] }
 0x583   :  { %v923_v20 = vsel %vm920_vm10, %v922_v3, %v918_v7  ;;  %v3294_v3 = vld [vmem:[#allocation5 + $0x38] sm:$0xff]  ;;  %v3303_v7 = vld [vmem:[#allocation5 + $0x30] sm:$0xff] }
 0x584   :  { %v945_v21 = vmul.f32 %v943_v15, %v923_v20  ;;  %v1021_v32 = vmul.f32 %v2261_v61, %v1020_v29  ;;  %v3300_v15 = vld [vmem:[%s3734_s2 + $0x30] sm:$0xff]  ;;  %v3309_v29 = vld [vmem:[%s3734_s2 + $0x28] sm:$0xff] }
 0x586   :  { %v946_v42 = vadd.f32 %v945_v21, %v883_v12  ;;  %v1022_v52 = vadd.f32 %v2261_v61, %v1021_v32  ;;  %v3312_v12 = vld [vmem:[#allocation5 + $0x28] sm:$0xff]  ;;  %v3331_v21 = vld [vmem:[#allocation5 + $0x20] sm:$0xff]  ;;  %v3337_v32 = vld [vmem:[%s3734_s2 + $0x10] sm:$0xff] }
 0x588   :  { %2262 = vtanh.f32 %v946_v42  ;;  %v1026_v49 = vsel %vm1025_vm13, %v2261_v61, %v1022_v52  ;;  %v3349_v42 = vld [vmem:[#allocation5 + $0x10] sm:$0xff]  ;;  %v3355_v52 = vld [vmem:[%s3734_s2] sm:$0xff] }
 0x589   :  { %v1031_v4 = vsel %vm1028_vm14, %v1030_v13, %v1026_v49  ;;  %v3358_v13 = vld [vmem:[#allocation5 + $0x8] sm:$0xff]  ;;  %v3366_v49 = vld [vmem:[#allocation5] sm:$0xff] }
 0x58a   :  { %v1053_v48 = vmul.f32 %v1051_v16, %v1031_v4  ;;  %v3363_v16 = vld [vmem:[#allocation3 + $0x38] sm:$0xff] }
 0x58c   :  { %v1054_v57 = vadd.f32 %v1053_v48, %v992_v41  ;;  %v3375_v48 = vld [vmem:[#allocation3 + $0x30] sm:$0xff]  ;;  %v3381_v41 = vld [vmem:[%s3738_s6 + $0x60] sm:$0xff] }
 0x58e   :  { %v2263_v27 = vpop.eup %2262  ;;  %2264 = vtanh.f32 %v1054_v57  ;;  %v3384_v57 = vld [vmem:[#allocation3 + $0x28] sm:$0xff] }
 0x58f   :  { %v948_v19 = vsub.f32 %v3120_v43, %v2263_v27 }
 0x591   :  { %950 = vrot.lane.b32.xlu1 %v948_v19, %s2488_s8  ;;  %v3393_v19 = vld [vmem:[#allocation3 + $0x20] sm:$0xff] }
 0x594   :  { %v2265_v31 = vpop.eup %2264 }
 0x595   :  { %v1056_v33 = vsub.f32 %v3136_v11, %v2265_v31  ;;  %v961_v11 = vld [vmem:[#allocation7 + $0x90] sm:$0xff] }
 0x596   :  { %983 = vmatpush.msra.mxu0 %v961_v11 }
 0x597   :  { %1058 = vrot.lane.b32.xlu2 %v1056_v33, %s2488_s8  ;;  %v3402_v33 = vld [vmem:[#allocation3 + $0x18] sm:$0xff] }
 0x598   :  { %984 = vmatpush.msra.mxu0 %v960_v46 }
 0x59a   :  { %985 = vmatpush.msra.mxu0 %v959_v47 }
 0x59c   :  { %1098 = vmatpush.msrb.mxu0 %v3231_v18 }
 0x59e   :  { %1099 = vmatpush.msrb.mxu0 %v3237_v14 }
 0x5a0   :  { %1100 = vmatpush.msrb.mxu0 %v3243_v53 }
 0x5a2   :  { %1101 = vmatpush.msrb.mxu0 %v3249_v54 }
 0x5a4   :  { %1102 = vmatpush.msrb.mxu0 %v3255_v25 }
 0x5a6   :  { %1103 = vmatpush.msrb.mxu0 %v3261_v6 }
 0x5a8   :  { %1104 = vmatpush.msrb.mxu0 %v3267_v24 }
 0x5aa   :  { %1105 = vmatpush.msrb.mxu0 %v3273_v59 }
 0x5f1   :  { %v1059_v40 = vpop.permute.xlu2 %1058 }
 0x5f2   :  { %v1061_v44 = vmul.f32 %v1059_v40, %v1031_v4  ;;  %v3372_v4 = vld [vmem:[%s3738_s6 + $0x70] sm:$0xff]  ;;  %v3429_v40 = vld [vmem:[#allocation3] sm:$0xff] }
 0x5f3   :  { %3825 = vst [vmem:[#allocation18_spill] sm:$0xff] %v3429_v40 }
 0x5f4   :  { %1063 = vrot.lane.b32.xlu1 %v1061_v44, %s2488_s8  ;;  %v3436_v44 = vld [vmem:[%s3738_s6] sm:$0xff] }
 0x5f5   :  { %3826 = vst [vmem:[#allocation26_spill] sm:$0xff] %v3436_v44 }
 0x603   :  { %v951_v43 = vpop.permute.xlu1 %950 }
 0x604   :  { %v953_v45 = vmul.f32 %v951_v43, %v923_v20  ;;  %v3318_v20 = vld [vmem:[%s3734_s2 + $0x20] sm:$0xff] }
 0x606   :  { %955 = vrot.lane.b32.xlu0 %v953_v45, %s2488_s8 }
 0x666   :  { %v1064_v50 = vpop.permute.xlu1 %1063 }
 0x667   :  { %v3276_v61 = vadd.f32 %v2265_v31, %v1064_v50  ;;  %v3399_v31 = vld [vmem:[%s3738_s6 + $0x40] sm:$0xff] }
 0x669   :  { %2171 = vmatmul.msk.f32.vlgmr.msrb.gmra.mxu3 %vm237_vm1, %v3276_v61 }
 0x678   :  { %v956_v8 = vpop.permute.xlu0 %955 }
 0x679   :  { %v3280_v63 = vadd.f32 %v2263_v27, %v956_v8  ;;  %v3390_v27 = vld [vmem:[%s3738_s6 + $0x50] sm:$0xff] }
 0x67b   :  { %2167 = vmatmul.msk.f32.vlgmr.msra.gmra.mxu0 %vm237_vm1, %v3280_v63  ;;  %2173 = vmatmul.msk.f32.vlgmr.msrb.gmra.mxu1 %vm237_vm1, %v3280_v63 }
 0x67c   :  { %2175 = vmatmul.msk.f32.vlgmr.msra.gmra.mxu2 %vm237_vm1, %v3280_v63  ;;  %1226 = vmatpush.msra.mxu0 %v3291_v17 }
 0x67d   :  { %1383 = vmatpush.msrb.mxu1 %v3294_v3 }
 0x67e   :  { %1227 = vmatpush.msra.mxu0 %v3300_v15 }
 0x67f   :  { %1384 = vmatpush.msrb.mxu1 %v3303_v7 }
 0x680   :  { %1228 = vmatpush.msra.mxu0 %v3309_v29 }
 0x681   :  { %1385 = vmatpush.msrb.mxu1 %v3312_v12 }
 0x682   :  { %1229 = vmatpush.msra.mxu0 %v3318_v20 }
 0x683   :  { %2172 = vmatmul.msk.f32.vlgmr.msrb.gmra.mxu0 %vm237_vm1, %v3276_v61  ;;  %2179 = vmatmul.msk.f32.vlgmr.msra.gmra.mxu1 %vm237_vm1, %v3276_v61 }
 0x684   :  { %1230 = vmatpush.msra.mxu0 %v3328_v0  ;;  %1386 = vmatpush.msrb.mxu1 %v3331_v21 }
 0x686   :  { %1231 = vmatpush.msra.mxu0 %v3337_v32  ;;  %1387 = vmatpush.msrb.mxu1 %v3340_v26 }
 0x688   :  { %1232 = vmatpush.msra.mxu0 %v3346_v56  ;;  %1388 = vmatpush.msrb.mxu1 %v3349_v42 }
 0x68a   :  { %1233 = vmatpush.msra.mxu0 %v3355_v52  ;;  %1389 = vmatpush.msrb.mxu1 %v3358_v13 }
 0x68b   :  { %2177 = vmatmul.msk.f32.vlgmr.msra.gmra.mxu0 %vm237_vm1, %v3276_v61 }
 0x68c   :  { %1343 = vmatpush.msrb.mxu0 %v3363_v16  ;;  %1390 = vmatpush.msrb.mxu1 %v3366_v49 }
 0x68e   :  { %1528 = vmatpush.msra.mxu1 %v3372_v4  ;;  %1344 = vmatpush.msrb.mxu0 %v3375_v48 }
 0x690   :  { %1529 = vmatpush.msra.mxu1 %v3381_v41  ;;  %1345 = vmatpush.msrb.mxu0 %v3384_v57 }
 0x692   :  { %1530 = vmatpush.msra.mxu1 %v3390_v27  ;;  %1346 = vmatpush.msrb.mxu0 %v3393_v19 }
 0x694   :  { %1531 = vmatpush.msra.mxu1 %v3399_v31  ;;  %1347 = vmatpush.msrb.mxu0 %v3402_v33 }
 0x696   :  { %1532 = vmatpush.msra.mxu1 %v3408_v35  ;;  %1348 = vmatpush.msrb.mxu0 %v3411_v36 }
 0x698   :  { %1533 = vmatpush.msra.mxu1 %v3417_v37  ;;  %1349 = vmatpush.msrb.mxu0 %v3420_v38 }
 0x69a   :  { %1534 = vmatpush.msra.mxu1 %v3426_v39  ;;  %1350 = vmatpush.msrb.mxu0 %v3429_v40 }
 0x69c   :  { %1491 = vmatpush.msra.mxu0 %v3164_v58  ;;  %1535 = vmatpush.msra.mxu1 %v3436_v44 }
 0x69e   :  { %1492 = vmatpush.msra.mxu0 %v3171_v60 }
 0x6a0   :  { %1493 = vmatpush.msra.mxu0 %v3177_v62 }
 0x6a2   :  { %1494 = vmatpush.msra.mxu0 %v3183_v1 }
 0x6a4   :  { %1495 = vmatpush.msra.mxu0 %v3189_v5 }
 0x6a6   :  { %1496 = vmatpush.msra.mxu0 %v3195_v23 }
 0x6a8   :  { %1497 = vmatpush.msra.mxu0 %v3201_v28 }
 0x6aa   :  { %1498 = vmatpush.msra.mxu0 %v3207_v30 }
 0x6ec   :  { %v1087_v43 = vpop.f32.mrf.mxu3 }
 0x6ed   :  { %v1088_v45 = vadd.f32 %v1087_v43, %v3814_v10 }
 0x6f8   :  { %v987_v11 = vpop.f32.mrf.mxu0  ;;  %v1127_v46 = vpop.f32.mrf.mxu1 }
 0x6f9   :  { %v3448_v47 = vadd.f32 %v987_v11, %v3210_v34  ;;  %v1130_v50 = vadd.f32 %v1127_v46, %v1088_v45 }
 0x6fb   :  { %3827 = vst [vmem:[#allocation27_spill] sm:$0xff] %v3448_v47  ;;  %v2174_v8 = vmul.f32 -1.442695, %v1130_v50 }
 0x6fd   :  { %2266 = vpow2.f32 %v2174_v8 }
 0x6ff   :  { %v1167_v11 = vpop.f32.mrf.mxu2 }
 0x700   :  { %v1107_v2 = vpop.f32.mrf.mxu0 }
 0x703   :  { %v2267_v1 = vpop.eup %2266 }
 0x704   :  { %v1134_v5 = vadd.f32 1.0, %v2267_v1 }
 0x706   :  { %2268 = vrcp.f32 %v1134_v5  ;;  %v1146_v10 = vand.u32 2147483648, %v1134_v5  ;;  %v1144_v34 = vand.u32 2147483647, %v1134_v5  ;;  %vm1140_vm0 = vweird.f32 %v1134_v5 }
 0x708   :  { %v1235_v23 = vpop.f32.mrf.mxu0  ;;  %v1147_v50 = vor.u32 1.1754944e-38, %v1146_v10  ;;  %vm1145_vm3 = vcmp.eq.f32.partialorder %v1144_v34, 8.507059e+37 }
 0x709   :  { %v1238_v28 = vadd.f32 %v1235_v23, %v3070_v9  ;;  %v1168_v9 = vadd.f32 %v2967_v55, %v1167_v11 }
 0x70b   :  { %v2178_v62 = vmul.f32 -1.442695, %v1238_v28 }
 0x70c   :  { %v2269_v30 = vpop.eup %2268 }
 0x70d   :  { %v1136_v60 = vmul.f32 %v2269_v30, %v1134_v5  ;;  %2270 = vpow2.f32 %v2178_v62  ;;  %vm1141_vm15 = vweird.f32 %v2269_v30 }
 0x70e   :  { %vm1142_vm2 = vmor %vm1140_vm0, %vm1141_vm15 }
 0x70f   :  { %v1137_v43 = vsub.f32 1.0, %v1136_v60  ;;  %v1108_v60 = vadd.f32 %v1107_v2, %v2969_v22 }
 0x711   :  { %v1138_v44 = vmul.f32 %v2269_v30, %v1137_v43 }
 0x713   :  { %v2271_v45 = vpop.eup %2270  ;;  %v1139_v46 = vadd.f32 %v2269_v30, %v1138_v44 }
 0x714   :  { %v1242_v1 = vadd.f32 1.0, %v2271_v45  ;;  %v1275_v45 = vpop.f32.mrf.mxu1 }
 0x715   :  { %v1143_v8 = vsel %vm1142_vm2, %v2269_v30, %v1139_v46  ;;  %v1276_v2 = vadd.f32 %v3219_v51, %v1275_v45 }
 0x716   :  { %v1148_v23 = vsel %vm1145_vm3, %v1147_v50, %v1143_v8  ;;  %2272 = vrcp.f32 %v1242_v1  ;;  %v1254_v39 = vand.u32 2147483648, %v1242_v1  ;;  %v1252_v10 = vand.u32 2147483647, %v1242_v1  ;;  %v1217_v50 = vld [vmem:[#allocation2 + $0x48] sm:$0xff] }
 0x717   :  { %v1170_v28 = vmul.f32 %v1168_v9, %v1148_v23  ;;  %vm1248_vm5 = vweird.f32 %v1242_v1 }
 0x718   :  { %v1255_v55 = vor.u32 1.1754944e-38, %v1254_v39  ;;  %vm1253_vm7 = vcmp.eq.f32.partialorder %v1252_v10, 8.507059e+37  ;;  %v1191_v39 = vld [vmem:[#allocation7 + $0xf8] sm:$0xff]  ;;  %v1185_v10 = vld [vmem:[#allocation7 + $0xc8] sm:$0xff] }
 0x719   :  { %v1171_v62 = vadd.f32 %v1170_v28, %v1108_v60  ;;  %v1190_v28 = vld [vmem:[#allocation7 + $0xf0] sm:$0xff]  ;;  %1203 = vmatpush.msra.mxu3 %v1191_v39  ;;  %v1189_v60 = vld [vmem:[#allocation7 + $0xe8] sm:$0xff] }
 0x71b   :  { %2274 = vtanh.f32 %v1171_v62  ;;  %1204 = vmatpush.msra.mxu3 %v1190_v28  ;;  %v1188_v62 = vld [vmem:[#allocation7 + $0xe0] sm:$0xff]  ;;  %v3838_v28 = vld [vmem:[#allocation27_spill] sm:$0xff] }
 0x71c   :  { %v2273_v43 = vpop.eup %2272 }
 0x71d   :  { %v1244_v47 = vmul.f32 %v2273_v43, %v1242_v1  ;;  %vm1249_vm4 = vweird.f32 %v2273_v43  ;;  %1205 = vmatpush.msra.mxu3 %v1189_v60 }
 0x71e   :  { %vm1250_vm6 = vmor %vm1248_vm5, %vm1249_vm4 }
 0x71f   :  { %v1245_v58 = vsub.f32 1.0, %v1244_v47  ;;  %1206 = vmatpush.msra.mxu3 %v1188_v62 }
 0x721   :  { %v2275_v44 = vpop.eup %2274  ;;  %v1246_v5 = vmul.f32 %v2273_v43, %v1245_v58 }
 0x722   :  { %v1173_v30 = vsub.f32 %v3280_v63, %v2275_v44 }
 0x723   :  { %v1247_v34 = vadd.f32 %v2273_v43, %v1246_v5  ;;  %v1186_v5 = vld [vmem:[#allocation7 + $0xd0] sm:$0xff] }
 0x724   :  { %1175 = vrot.lane.b32.xlu2 %v1173_v30, %s2488_s8 }
 0x725   :  { %v1251_v11 = vsel %vm1250_vm6, %v2273_v43, %v1247_v34  ;;  %v1187_v43 = vld [vmem:[#allocation7 + $0xd8] sm:$0xff] }
 0x726   :  { %v1256_v46 = vsel %vm1253_vm7, %v1255_v55, %v1251_v11  ;;  %1207 = vmatpush.msra.mxu3 %v1187_v43  ;;  %v3829_v11 = vld [vmem:[#allocation22_spill] sm:$0xff] }
 0x727   :  { %v1278_v47 = vmul.f32 %v1276_v2, %v1256_v46  ;;  %v3828_v2 = vld [vmem:[#allocation17_spill] sm:$0xff] }
 0x728   :  { %1208 = vmatpush.msra.mxu3 %v1186_v5  ;;  %v3840_v5 = vld [vmem:[#allocation25_spill] sm:$0xff] }
 0x729   :  { %v1279_v8 = vadd.f32 %v1278_v47, %v1217_v50  ;;  %v3831_v47 = vld [vmem:[#allocation13_spill] sm:$0xff]  ;;  %v3832_v50 = vld [vmem:[#allocation20_spill] sm:$0xff] }
 0x72a   :  { %1209 = vmatpush.msra.mxu3 %v1185_v10 }
 0x72b   :  { %2276 = vtanh.f32 %v1279_v8  ;;  %v3833_v8 = vld [vmem:[#allocation23_spill] sm:$0xff] }
 0x731   :  { %v2277_v58 = vpop.eup %2276 }
 0x732   :  { %v1281_v9 = vsub.f32 %v3276_v61, %v2277_v58  ;;  %v1184_v61 = vld [vmem:[#allocation7 + $0xc0] sm:$0xff] }
 0x733   :  { %1210 = vmatpush.msra.mxu3 %v1184_v61 }
 0x734   :  { %1283 = vrot.lane.b32.xlu0 %v1281_v9, %s2488_s8  ;;  %v3835_v9 = vld [vmem:[#allocation21_spill] sm:$0xff] }
 0x735   :  { %1323 = vmatpush.msrb.mxu3 %v3231_v18 }
 0x737   :  { %1324 = vmatpush.msrb.mxu3 %v3237_v14 }
 0x739   :  { %1325 = vmatpush.msrb.mxu3 %v3243_v53 }
 0x73b   :  { %1326 = vmatpush.msrb.mxu3 %v3249_v54 }
 0x73d   :  { %1327 = vmatpush.msrb.mxu3 %v3255_v25 }
 0x73f   :  { %1328 = vmatpush.msrb.mxu3 %v3261_v6 }
 0x741   :  { %1329 = vmatpush.msrb.mxu3 %v3267_v24 }
 0x743   :  { %1330 = vmatpush.msrb.mxu3 %v3273_v59 }
 0x77e   :  { %v1176_v63 = vpop.permute.xlu2 %1175 }
 0x77f   :  { %v1178_v1 = vmul.f32 %v1176_v63, %v1148_v23  ;;  %v3836_v63 = vld [vmem:[#allocation24_spill] sm:$0xff] }
 0x781   :  { %1180 = vrot.lane.b32.xlu1 %v1178_v1, %s2488_s8  ;;  %v3837_v1 = vld [vmem:[#allocation15_spill] sm:$0xff] }
 0x7a6   :  { %v1284_v23 = vpop.permute.xlu0 %1283 }
 0x7a7   :  { %v1286_v45 = vmul.f32 %v1284_v23, %v1256_v46  ;;  %v3830_v46 = vld [vmem:[#allocation26_spill] sm:$0xff] }
 0x7a9   :  { %1288 = vrot.lane.b32.xlu2 %v1286_v45, %s2488_s8 }
 0x7f3   :  { %v1181_v30 = vpop.permute.xlu1 %1180 }
 0x7f4   :  { %v3468_v34 = vadd.f32 %v2275_v44, %v1181_v30 }
 0x7f6   :  { %2176 = vmatmul.msk.f32.vlgmr.msra.gmra.mxu3 %vm237_vm1, %v3468_v34  ;;  %2182 = vmatmul.msk.f32.vlgmr.msrb.gmra.mxu0 %vm237_vm1, %v3468_v34 }
 0x7f7   :  { %2184 = vmatmul.msk.f32.vlgmr.msrb.gmra.mxu1 %vm237_vm1, %v3468_v34  ;;  %1451 = vmatpush.msra.mxu3 %v3291_v17 }
 0x7f8   :  { %1608 = vmatpush.msrb.mxu0 %v3294_v3 }
 0x7f9   :  { %1452 = vmatpush.msra.mxu3 %v3300_v15 }
 0x7fa   :  { %1609 = vmatpush.msrb.mxu0 %v3303_v7 }
 0x7fb   :  { %1453 = vmatpush.msra.mxu3 %v3309_v29 }
 0x7fc   :  { %1610 = vmatpush.msrb.mxu0 %v3312_v12 }
 0x7fd   :  { %1454 = vmatpush.msra.mxu3 %v3318_v20 }
 0x7fe   :  { %1611 = vmatpush.msrb.mxu0 %v3331_v21 }
 0x7ff   :  { %1455 = vmatpush.msra.mxu3 %v3328_v0 }
 0x800   :  { %1612 = vmatpush.msrb.mxu0 %v3340_v26 }
 0x801   :  { %1456 = vmatpush.msra.mxu3 %v3337_v32 }
 0x802   :  { %1613 = vmatpush.msrb.mxu0 %v3349_v42 }
 0x803   :  { %v1289_v44 = vpop.permute.xlu2 %1288  ;;  %1457 = vmatpush.msra.mxu3 %v3346_v56 }
 0x804   :  { %v3489_v55 = vadd.f32 %v2277_v58, %v1289_v44  ;;  %1614 = vmatpush.msrb.mxu0 %v3358_v13  ;;  %v3834_v58 = vld [vmem:[#allocation14_spill] sm:$0xff]  ;;  %v3841_v44 = vld [vmem:[#allocation19_spill] sm:$0xff] }
 0x805   :  { %1458 = vmatpush.msra.mxu3 %v3355_v52 }
 0x806   :  { %2180 = vmatmul.msk.f32.vlgmr.msrb.gmra.mxu2 %vm237_vm1, %v3489_v55  ;;  %2181 = vmatmul.msk.f32.vlgmr.msrb.gmra.mxu3 %vm237_vm1, %v3489_v55 }
 0x807   :  { %2188 = vmatmul.msk.f32.vlgmr.msra.gmra.mxu0 %vm237_vm1, %v3489_v55  ;;  %1568 = vmatpush.msrb.mxu3 %v3363_v16 }
 0x808   :  { %1615 = vmatpush.msrb.mxu0 %v3366_v49 }
 0x809   :  { %1569 = vmatpush.msrb.mxu3 %v3375_v48 }
 0x80a   :  { %1753 = vmatpush.msra.mxu0 %v3372_v4 }
 0x80b   :  { %1570 = vmatpush.msrb.mxu3 %v3384_v57 }
 0x80c   :  { %1754 = vmatpush.msra.mxu0 %v3381_v41 }
 0x80d   :  { %1571 = vmatpush.msrb.mxu3 %v3393_v19 }
 0x80e   :  { %1755 = vmatpush.msra.mxu0 %v3390_v27  ;;  %2186 = vmatmul.msk.f32.vlgmr.msra.gmra.mxu3 %vm237_vm1, %v3489_v55 }
 0x80f   :  { %1572 = vmatpush.msrb.mxu3 %v3402_v33 }
 0x810   :  { %1756 = vmatpush.msra.mxu0 %v3399_v31 }
 0x811   :  { %1573 = vmatpush.msrb.mxu3 %v3411_v36 }
 0x812   :  { %1757 = vmatpush.msra.mxu0 %v3408_v35 }
 0x813   :  { %1574 = vmatpush.msrb.mxu3 %v3420_v38 }
 0x814   :  { %1758 = vmatpush.msra.mxu0 %v3417_v37 }
 0x815   :  { %1575 = vmatpush.msrb.mxu3 %v3429_v40 }
 0x816   :  { %1759 = vmatpush.msra.mxu0 %v3828_v2 }
 0x817   :  { %1716 = vmatpush.msra.mxu3 %v3829_v11 }
 0x818   :  { %1760 = vmatpush.msra.mxu0 %v3830_v46 }
 0x819   :  { %1717 = vmatpush.msra.mxu3 %v3831_v47 }
 0x81b   :  { %1718 = vmatpush.msra.mxu3 %v3832_v50 }
 0x81d   :  { %1719 = vmatpush.msra.mxu3 %v3833_v8 }
 0x81f   :  { %1720 = vmatpush.msra.mxu3 %v3834_v58 }
 0x821   :  { %1721 = vmatpush.msra.mxu3 %v3835_v9 }
 0x823   :  { %1722 = vmatpush.msra.mxu3 %v3836_v63 }
 0x825   :  { %1723 = vmatpush.msra.mxu3 %v3837_v1 }
 0x873   :  { %v1352_v61 = vpop.f32.mrf.mxu0 }
 0x879   :  { %v1212_v39 = vpop.f32.mrf.mxu3 }
 0x87a   :  { %v3527_v60 = vadd.f32 %v1212_v39, %v3838_v28 }
 0x87c   :  { %3839 = vst [vmem:[#allocation27_spill] sm:$0xff] %v3527_v60 }
 0x884   :  { %v1500_v11 = vpop.f32.mrf.mxu0 }
 0x885   :  { %v1501_v38 = vadd.f32 %v3219_v51, %v1500_v11  ;;  %v1415_v11 = vld [vmem:[#allocation7 + $0x130] sm:$0xff] }
 0x889   :  { %v1312_v62 = vpop.f32.mrf.mxu2  ;;  %v1332_v43 = vpop.f32.mrf.mxu3 }
 0x88a   :  { %v1313_v10 = vadd.f32 %v1312_v62, %v3840_v5 }
 0x88c   :  { %v1355_v23 = vadd.f32 %v1352_v61, %v1313_v10 }
 0x88e   :  { %v2183_v45 = vmul.f32 -1.442695, %v1355_v23  ;;  %v1392_v23 = vpop.f32.mrf.mxu1 }
 0x890   :  { %2278 = vpow2.f32 %v2183_v45 }
 0x891   :  { %v1460_v30 = vpop.f32.mrf.mxu3 }
 0x892   :  { %v1463_v58 = vadd.f32 %v1460_v30, %v3841_v44 }
 0x894   :  { %v2187_v9 = vmul.f32 -1.442695, %v1463_v58 }
 0x896   :  { %v2279_v8 = vpop.eup %2278  ;;  %2280 = vpow2.f32 %v2187_v9 }
 0x897   :  { %v1359_v63 = vadd.f32 1.0, %v2279_v8  ;;  %v3534_v8 = vld [vmem:[%s3742_s10] ss:$0 sm:$0xff] }
 0x898   :  { %v1393_v9 = vadd.f32 %v3534_v8, %v1392_v23 }
 0x899   :  { %2282 = vrcp.f32 %v1359_v63  ;;  %v1371_v47 = vand.u32 2147483648, %v1359_v63  ;;  %v1369_v10 = vand.u32 2147483647, %v1359_v63  ;;  %vm1365_vm9 = vweird.f32 %v1359_v63 }
 0x89b   :  { %v1372_v58 = vor.u32 1.1754944e-38, %v1371_v47  ;;  %vm1370_vm11 = vcmp.eq.f32.partialorder %v1369_v10, 8.507059e+37 }
 0x89c   :  { %v2281_v1 = vpop.eup %2280 }
 0x89d   :  { %v1467_v50 = vadd.f32 1.0, %v2281_v1 }
 0x89f   :  { %v2283_v39 = vpop.eup %2282  ;;  %2284 = vrcp.f32 %v1467_v50  ;;  %v1479_v5 = vand.u32 2147483648, %v1467_v50  ;;  %vm1473_vm13 = vweird.f32 %v1467_v50 }
 0x8a0   :  { %v1361_v28 = vmul.f32 %v2283_v39, %v1359_v63  ;;  %vm1366_vm8 = vweird.f32 %v2283_v39  ;;  %v1477_v63 = vand.u32 2147483647, %v1467_v50 }
 0x8a1   :  { %vm1367_vm10 = vmor %vm1365_vm9, %vm1366_vm8  ;;  %v1480_v2 = vor.u32 1.1754944e-38, %v1479_v5  ;;  %v1416_v5 = vld [vmem:[#allocation7 + $0x138] sm:$0xff] }
 0x8a2   :  { %v1362_v60 = vsub.f32 1.0, %v1361_v28  ;;  %vm1478_vm15 = vcmp.eq.f32.partialorder %v1477_v63, 8.507059e+37  ;;  %1428 = vmatpush.msra.mxu2 %v1416_v5 }
 0x8a4   :  { %v1363_v62 = vmul.f32 %v2283_v39, %v1362_v60  ;;  %v1333_v60 = vadd.f32 %v1332_v43, %v2969_v22  ;;  %v1442_v43 = vld [vmem:[#allocation2 + $0x58] sm:$0xff]  ;;  %1429 = vmatpush.msra.mxu2 %v1415_v11  ;;  %v3855_v11 = vld [vmem:[#allocation25_spill] sm:$0xff] }
 0x8a5   :  { %v2285_v61 = vpop.eup %2284 }
 0x8a6   :  { %v1364_v45 = vadd.f32 %v2283_v39, %v1363_v62  ;;  %v1469_v30 = vmul.f32 %v2285_v61, %v1467_v50  ;;  %vm1474_vm12 = vweird.f32 %v2285_v61 }
 0x8a7   :  { %vm1475_vm14 = vmor %vm1473_vm13, %vm1474_vm12 }
 0x8a8   :  { %v1368_v1 = vsel %vm1367_vm10, %v2283_v39, %v1364_v45  ;;  %v1470_v44 = vsub.f32 1.0, %v1469_v30 }
 0x8a9   :  { %v1373_v28 = vsel %vm1370_vm11, %v1372_v58, %v1368_v1 }
 0x8aa   :  { %v1395_v46 = vmul.f32 %v1393_v9, %v1373_v28  ;;  %v1471_v62 = vmul.f32 %v2285_v61, %v1470_v44  ;;  %v1414_v9 = vld [vmem:[#allocation7 + $0x128] sm:$0xff] }
 0x8ab   :  { %1430 = vmatpush.msra.mxu2 %v1414_v9 }
 0x8ac   :  { %v1396_v47 = vadd.f32 %v1395_v46, %v1333_v60  ;;  %v1472_v40 = vadd.f32 %v2285_v61, %v1471_v62  ;;  %v1409_v60 = vld [vmem:[#allocation7 + $0x100] sm:$0xff] }
 0x8ae   :  { %2286 = vtanh.f32 %v1396_v47  ;;  %v1476_v39 = vsel %vm1475_vm14, %v2285_v61, %v1472_v40  ;;  %v1413_v40 = vld [vmem:[#allocation7 + $0x120] sm:$0xff]  ;;  %v1410_v61 = vld [vmem:[#allocation7 + $0x108] sm:$0xff] }
 0x8af   :  { %v1481_v10 = vsel %vm1478_vm15, %v1480_v2, %v1476_v39  ;;  %1431 = vmatpush.msra.mxu2 %v1413_v40  ;;  %v1411_v2 = vld [vmem:[#allocation7 + $0x110] sm:$0xff] }
 0x8b0   :  { %v1503_v23 = vmul.f32 %v1501_v38, %v1481_v10  ;;  %v1412_v38 = vld [vmem:[#allocation7 + $0x118] sm:$0xff]  ;;  %v3845_v39 = vld [vmem:[#allocation22_spill] sm:$0xff] }
 0x8b1   :  { %1432 = vmatpush.msra.mxu2 %v1412_v38 }
 0x8b2   :  { %v1504_v45 = vadd.f32 %v1503_v23, %v1442_v43  ;;  %v3847_v23 = vld [vmem:[#allocation13_spill] sm:$0xff]  ;;  %v3849_v43 = vld [vmem:[#allocation23_spill] sm:$0xff] }
 0x8b3   :  { %1433 = vmatpush.msra.mxu2 %v1411_v2 }
 0x8b4   :  { %v2287_v30 = vpop.eup %2286  ;;  %2288 = vtanh.f32 %v1504_v45  ;;  %v3851_v45 = vld [vmem:[#allocation21_spill] sm:$0xff] }
 0x8b5   :  { %v1398_v58 = vsub.f32 %v3468_v34, %v2287_v30  ;;  %1434 = vmatpush.msra.mxu2 %v1410_v61 }
 0x8b7   :  { %1400 = vrot.lane.b32.xlu0 %v1398_v58, %s2488_s8  ;;  %1435 = vmatpush.msra.mxu2 %v1409_v60 }
 0x8b9   :  { %1548 = vmatpush.msrb.mxu2 %v3231_v18 }
 0x8ba   :  { %v2289_v46 = vpop.eup %2288 }
 0x8bb   :  { %v1506_v50 = vsub.f32 %v3489_v55, %v2289_v46  ;;  %1549 = vmatpush.msrb.mxu2 %v3237_v14 }
 0x8bd   :  { %1508 = vrot.lane.b32.xlu1 %v1506_v50, %s2488_s8  ;;  %1550 = vmatpush.msrb.mxu2 %v3243_v53 }
 0x8bf   :  { %1551 = vmatpush.msrb.mxu2 %v3249_v54 }
 0x8c1   :  { %1552 = vmatpush.msrb.mxu2 %v3255_v25 }
 0x8c3   :  { %1553 = vmatpush.msrb.mxu2 %v3261_v6 }
 0x8c5   :  { %1554 = vmatpush.msrb.mxu2 %v3267_v24 }
 0x8c7   :  { %1555 = vmatpush.msrb.mxu2 %v3273_v59 }
 0x929   :  { %v1401_v34 = vpop.permute.xlu0 %1400 }
 0x92a   :  { %v1403_v1 = vmul.f32 %v1401_v34, %v1373_v28 }
 0x92c   :  { %1405 = vrot.lane.b32.xlu2 %v1403_v1, %s2488_s8 }
 0x92f   :  { %v1509_v55 = vpop.permute.xlu1 %1508 }
 0x930   :  { %v1511_v44 = vmul.f32 %v1509_v55, %v1481_v10  ;;  %v3846_v10 = vld [vmem:[#allocation26_spill] sm:$0xff]  ;;  %v1666_v55 = vld [vmem:[#allocation2 + $0x60] sm:$0xff] }
 0x932   :  { %1513 = vrot.lane.b32.xlu0 %v1511_v44, %s2488_s8 }
 0x986   :  { %v1406_v28 = vpop.permute.xlu2 %1405 }
 0x987   :  { %v3553_v62 = vadd.f32 %v2287_v30, %v1406_v28  ;;  %v3853_v30 = vld [vmem:[#allocation15_spill] sm:$0xff] }
 0x989   :  { %2185 = vmatmul.msk.f32.vlgmr.msra.gmra.mxu2 %vm237_vm1, %v3553_v62  ;;  %2191 = vmatmul.msk.f32.vlgmr.msrb.gmra.mxu3 %vm237_vm1, %v3553_v62 }
 0x98a   :  { %2193 = vmatmul.msk.f32.vlgmr.msrb.gmra.mxu0 %vm237_vm1, %v3553_v62  ;;  %1676 = vmatpush.msra.mxu2 %v3291_v17 }
 0x98b   :  { %1833 = vmatpush.msrb.mxu3 %v3294_v3 }
 0x98c   :  { %1677 = vmatpush.msra.mxu2 %v3300_v15 }
 0x98d   :  { %1834 = vmatpush.msrb.mxu3 %v3303_v7 }
 0x98e   :  { %1678 = vmatpush.msra.mxu2 %v3309_v29 }
 0x98f   :  { %1835 = vmatpush.msrb.mxu3 %v3312_v12 }
 0x990   :  { %1679 = vmatpush.msra.mxu2 %v3318_v20 }
 0x991   :  { %1836 = vmatpush.msrb.mxu3 %v3331_v21 }
 0x992   :  { %1680 = vmatpush.msra.mxu2 %v3328_v0 }
 0x993   :  { %1837 = vmatpush.msrb.mxu3 %v3340_v26 }
 0x994   :  { %1681 = vmatpush.msra.mxu2 %v3337_v32 }
 0x995   :  { %1838 = vmatpush.msrb.mxu3 %v3349_v42 }
 0x996   :  { %1682 = vmatpush.msra.mxu2 %v3346_v56 }
 0x997   :  { %1839 = vmatpush.msrb.mxu3 %v3358_v13 }
 0x998   :  { %1683 = vmatpush.msra.mxu2 %v3355_v52 }
 0x999   :  { %1840 = vmatpush.msrb.mxu3 %v3366_v49 }
 0x9a4   :  { %v1514_v63 = vpop.permute.xlu0 %1513 }
 0x9a5   :  { %v3577_v47 = vadd.f32 %v2289_v46, %v1514_v63  ;;  %v3854_v46 = vld [vmem:[#allocation27_spill] sm:$0xff] }
 0x9a7   :  { %2189 = vmatmul.msk.f32.vlgmr.msra.gmra.mxu1 %vm237_vm1, %v3577_v47  ;;  %2190 = vmatmul.msk.f32.vlgmr.msrb.gmra.mxu2 %vm237_vm1, %v3577_v47 }
 0x9a8   :  { %2197 = vmatmul.msk.f32.vlgmr.msra.gmra.mxu3 %vm237_vm1, %v3577_v47  ;;  %1793 = vmatpush.msrb.mxu2 %v3363_v16 }
 0x9a9   :  { %1978 = vmatpush.msra.mxu3 %v3372_v4  ;;  %v3842_v4 = vld [vmem:[#allocation16_spill] sm:$0xff] }
 0x9aa   :  { %1794 = vmatpush.msrb.mxu2 %v3375_v48 }
 0x9ab   :  { %1979 = vmatpush.msra.mxu3 %v3381_v41  ;;  %v3843_v41 = vld [vmem:[#allocation17_spill] sm:$0xff] }
 0x9ac   :  { %1795 = vmatpush.msrb.mxu2 %v3384_v57 }
 0x9ad   :  { %1980 = vmatpush.msra.mxu3 %v3390_v27  ;;  %v3844_v27 = vld [vmem:[#allocation18_spill] sm:$0xff] }
 0x9ae   :  { %1796 = vmatpush.msrb.mxu2 %v3393_v19 }
 0x9af   :  { %2195 = vmatmul.msk.f32.vlgmr.msra.gmra.mxu2 %vm237_vm1, %v3577_v47  ;;  %1981 = vmatpush.msra.mxu3 %v3399_v31  ;;  %v3848_v31 = vld [vmem:[#allocation20_spill] sm:$0xff] }
 0x9b0   :  { %1797 = vmatpush.msrb.mxu2 %v3402_v33 }
 0x9b1   :  { %1982 = vmatpush.msra.mxu3 %v3408_v35  ;;  %v3850_v35 = vld [vmem:[#allocation14_spill] sm:$0xff] }
 0x9b2   :  { %1798 = vmatpush.msrb.mxu2 %v3411_v36 }
 0x9b3   :  { %1983 = vmatpush.msra.mxu3 %v3417_v37  ;;  %v3852_v37 = vld [vmem:[#allocation24_spill] sm:$0xff] }
 0x9b4   :  { %1799 = vmatpush.msrb.mxu2 %v3842_v4 }
 0x9b5   :  { %1984 = vmatpush.msra.mxu3 %v3843_v41 }
 0x9b6   :  { %1800 = vmatpush.msrb.mxu2 %v3844_v27 }
 0x9b7   :  { %1985 = vmatpush.msra.mxu3 %v3846_v10 }
 0x9b8   :  { %1941 = vmatpush.msra.mxu2 %v3845_v39 }
 0x9ba   :  { %1942 = vmatpush.msra.mxu2 %v3847_v23 }
 0x9bc   :  { %1943 = vmatpush.msra.mxu2 %v3848_v31 }
 0x9be   :  { %1944 = vmatpush.msra.mxu2 %v3849_v43 }
 0x9c0   :  { %1945 = vmatpush.msra.mxu2 %v3850_v35 }
 0x9c2   :  { %1946 = vmatpush.msra.mxu2 %v3851_v45 }
 0x9c4   :  { %1947 = vmatpush.msra.mxu2 %v3852_v37 }
 0x9c6   :  { %1948 = vmatpush.msra.mxu2 %v3853_v30 }
 0xa07   :  { %v1617_v45 = vpop.f32.mrf.mxu0 }
 0xa0c   :  { %v1437_v58 = vpop.f32.mrf.mxu2  ;;  %v1577_v40 = vpop.f32.mrf.mxu3 }
 0xa0d   :  { %v3612_v50 = vadd.f32 %v1437_v58, %v3854_v46  ;;  %v1618_v58 = vadd.f32 %v3534_v8, %v1617_v45  ;;  %v1667_v45 = vld [vmem:[#allocation2 + $0x68] sm:$0xff] }
 0xa24   :  { %v1537_v5 = vpop.f32.mrf.mxu1 }
 0xa25   :  { %v1538_v9 = vadd.f32 %v1537_v5, %v3855_v11 }
 0xa27   :  { %v1580_v38 = vadd.f32 %v1577_v40, %v1538_v9 }
 0xa29   :  { %v2192_v2 = vmul.f32 -1.442695, %v1580_v38 }
 0xa2a   :  { %v1557_v61 = vpop.f32.mrf.mxu2 }
 0xa2b   :  { %2290 = vpow2.f32 %v2192_v2  ;;  %v1558_v9 = vadd.f32 %v1557_v61, %v2969_v22 }
 0xa31   :  { %v2291_v34 = vpop.eup %2290 }
 0xa32   :  { %v1584_v1 = vadd.f32 1.0, %v2291_v34  ;;  %v1685_v44 = vpop.f32.mrf.mxu2 }
 0xa33   :  { %v1688_v60 = vadd.f32 %v1685_v44, %v1666_v55 }
 0xa34   :  { %2292 = vrcp.f32 %v1584_v1  ;;  %v1596_v23 = vand.u32 2147483648, %v1584_v1  ;;  %v1594_v35 = vand.u32 2147483647, %v1584_v1  ;;  %vm1590_vm2 = vweird.f32 %v1584_v1 }
 0xa35   :  { %v2196_v28 = vmul.f32 -1.442695, %v1688_v60 }
 0xa36   :  { %v1597_v30 = vor.u32 1.1754944e-38, %v1596_v23  ;;  %vm1595_vm4 = vcmp.eq.f32.partialorder %v1594_v35, 8.507059e+37 }
 0xa37   :  { %2294 = vpow2.f32 %v2196_v28 }
 0xa3a   :  { %v2293_v63 = vpop.eup %2292 }
 0xa3b   :  { %v1586_v41 = vmul.f32 %v2293_v63, %v1584_v1  ;;  %vm1591_vm0 = vweird.f32 %v2293_v63  ;;  %v1725_v1 = vpop.f32.mrf.mxu3 }
 0xa3c   :  { %vm1592_vm3 = vmor %vm1590_vm2, %vm1591_vm0 }
 0xa3d   :  { %v2295_v39 = vpop.eup %2294  ;;  %v1587_v10 = vsub.f32 1.0, %v1586_v41 }
 0xa3e   :  { %v1692_v31 = vadd.f32 1.0, %v2295_v39 }
 0xa3f   :  { %v1588_v43 = vmul.f32 %v2293_v63, %v1587_v10  ;;  %v1726_v10 = vadd.f32 %v3219_v51, %v1725_v1  ;;  %v1639_v51 = vld [vmem:[#allocation7 + $0x168] sm:$0xff] }
 0xa40   :  { %2296 = vrcp.f32 %v1692_v31  ;;  %v1704_v44 = vand.u32 2147483648, %v1692_v31  ;;  %v1702_v28 = vand.u32 2147483647, %v1692_v31  ;;  %vm1698_vm6 = vweird.f32 %v1692_v31 }
 0xa41   :  { %v1589_v37 = vadd.f32 %v2293_v63, %v1588_v43 }
 0xa42   :  { %v1705_v39 = vor.u32 1.1754944e-38, %v1704_v44  ;;  %vm1703_vm8 = vcmp.eq.f32.partialorder %v1702_v28, 8.507059e+37 }
 0xa43   :  { %v1593_v46 = vsel %vm1592_vm3, %v2293_v63, %v1589_v37 }
 0xa44   :  { %v1598_v5 = vsel %vm1595_vm4, %v1597_v30, %v1593_v46  ;;  %v1640_v46 = vld [vmem:[#allocation7 + $0x170] sm:$0xff] }
 0xa45   :  { %v1620_v40 = vmul.f32 %v1618_v58, %v1598_v5 }
 0xa46   :  { %v2297_v38 = vpop.eup %2296 }
 0xa47   :  { %v1621_v2 = vadd.f32 %v1620_v40, %v1558_v9  ;;  %v1694_v34 = vmul.f32 %v2297_v38, %v1692_v31  ;;  %vm1699_vm5 = vweird.f32 %v2297_v38  ;;  %v1641_v31 = vld [vmem:[#allocation7 + $0x178] sm:$0xff]  ;;  %v1638_v9 = vld [vmem:[#allocation7 + $0x160] sm:$0xff]  ;;  %v1636_v40 = vld [vmem:[#allocation7 + $0x150] sm:$0xff] }
 0xa48   :  { %vm1700_vm7 = vmor %vm1698_vm6, %vm1699_vm5  ;;  %1653 = vmatpush.msrb.mxu1 %v1641_v31 }
 0xa49   :  { %2298 = vtanh.f32 %v1621_v2  ;;  %v1695_v55 = vsub.f32 1.0, %v1694_v34  ;;  %v1634_v2 = vld [vmem:[#allocation7 + $0x140] sm:$0xff] }
 0xa4a   :  { %1654 = vmatpush.msrb.mxu1 %v1640_v46 }
 0xa4b   :  { %v1696_v60 = vmul.f32 %v2297_v38, %v1695_v55 }
 0xa4c   :  { %1655 = vmatpush.msrb.mxu1 %v1639_v51  ;;  %v1892_v51 = vld [vmem:[#allocation2 + $0x78] sm:$0xff] }
 0xa4d   :  { %v1697_v41 = vadd.f32 %v2297_v38, %v1696_v60 }
 0xa4e   :  { %1656 = vmatpush.msrb.mxu1 %v1638_v9 }
 0xa4f   :  { %v2299_v63 = vpop.eup %2298  ;;  %v1701_v61 = vsel %vm1700_vm7, %v2297_v38, %v1697_v41  ;;  %v1635_v38 = vld [vmem:[#allocation7 + $0x148] sm:$0xff] }
 0xa50   :  { %v1623_v23 = vsub.f32 %v3553_v62, %v2299_v63  ;;  %v1706_v43 = vsel %vm1703_vm8, %v1705_v39, %v1701_v61  ;;  %v1637_v62 = vld [vmem:[#allocation7 + $0x158] sm:$0xff] }
 0xa51   :  { %v1728_v35 = vmul.f32 %v1726_v10, %v1706_v43  ;;  %1657 = vmatpush.msrb.mxu1 %v1637_v62 }
 0xa52   :  { %1625 = vrot.lane.b32.xlu1 %v1623_v23, %s2488_s8 }
 0xa53   :  { %v1729_v37 = vadd.f32 %v1728_v35, %v1667_v45  ;;  %1658 = vmatpush.msrb.mxu1 %v1636_v40  ;;  %v2370_v35 = vld [vmem:[%s3737_s5] ss:$0 sm:$0xff] }
 0xa55   :  { %2300 = vtanh.f32 %v1729_v37  ;;  %1659 = vmatpush.msrb.mxu1 %v1635_v38  ;;  %v1866_v38 = vld [vmem:[#allocation7 + $0x1b8] sm:$0xff] }
 0xa56   :  { %1878 = vmatpush.msrb.mxu0 %v1866_v38 }
 0xa57   :  { %1660 = vmatpush.msrb.mxu1 %v1634_v2  ;;  %v1865_v2 = vld [vmem:[#allocation7 + $0x1b0] sm:$0xff] }
 0xa58   :  { %1879 = vmatpush.msrb.mxu0 %v1865_v2 }
 0xa59   :  { %1773 = vmatpush.msra.mxu1 %v3231_v18 }
 0xa5b   :  { %v2301_v30 = vpop.eup %2300  ;;  %1774 = vmatpush.msra.mxu1 %v3237_v14 }
 0xa5c   :  { %v1731_v58 = vsub.f32 %v3577_v47, %v2301_v30 }
 0xa5d   :  { %1775 = vmatpush.msra.mxu1 %v3243_v53 }
 0xa5e   :  { %1733 = vrot.lane.b32.xlu2 %v1731_v58, %s2488_s8 }
 0xa5f   :  { %1776 = vmatpush.msra.mxu1 %v3249_v54 }
 0xa61   :  { %1777 = vmatpush.msra.mxu1 %v3255_v25 }
 0xa63   :  { %1778 = vmatpush.msra.mxu1 %v3261_v6 }
 0xa65   :  { %1779 = vmatpush.msra.mxu1 %v3267_v24 }
 0xa67   :  { %1780 = vmatpush.msra.mxu1 %v3273_v59 }
 0xab8   :  { %v1734_v47 = vpop.permute.xlu2 %1733 }
 0xab9   :  { %v1736_v34 = vmul.f32 %v1734_v47, %v1706_v43  ;;  %v1864_v47 = vld [vmem:[#allocation7 + $0x1a8] sm:$0xff] }
 0xaba   :  { %1880 = vmatpush.msrb.mxu0 %v1864_v47 }
 0xabb   :  { %1738 = vrot.lane.b32.xlu1 %v1736_v34, %s2488_s8  ;;  %v1863_v34 = vld [vmem:[#allocation7 + $0x1a0] sm:$0xff] }
 0xabc   :  { %1881 = vmatpush.msrb.mxu0 %v1863_v34 }
 0xac4   :  { %v1626_v55 = vpop.permute.xlu1 %1625 }
 0xac5   :  { %v1628_v44 = vmul.f32 %v1626_v55, %v1598_v5  ;;  %v1862_v55 = vld [vmem:[#allocation7 + $0x198] sm:$0xff] }
 0xac6   :  { %1882 = vmatpush.msrb.mxu0 %v1862_v55 }
 0xac7   :  { %1630 = vrot.lane.b32.xlu0 %v1628_v44, %s2488_s8  ;;  %v1861_v44 = vld [vmem:[#allocation7 + $0x190] sm:$0xff] }
 0xac8   :  { %1883 = vmatpush.msrb.mxu0 %v1861_v44 }
 0xb2d   :  { %v1739_v18 = vpop.permute.xlu1 %1738 }
 0xb2e   :  { %v3632_v14 = vadd.f32 %v2301_v30, %v1739_v18  ;;  %v1860_v18 = vld [vmem:[#allocation7 + $0x188] sm:$0xff] }
 0xb2f   :  { %1884 = vmatpush.msrb.mxu0 %v1860_v18 }
 0xb30   :  { %2198 = vmatmul.msk.f32.vlgmr.msra.gmra.mxu0 %vm237_vm1, %v3632_v14 }
 0xb39   :  { %v1631_v53 = vpop.permute.xlu0 %1630 }
 0xb3a   :  { %v3636_v54 = vadd.f32 %v2299_v63, %v1631_v53  ;;  %v1859_v53 = vld [vmem:[#allocation7 + $0x180] sm:$0xff] }
 0xb3b   :  { %1885 = vmatpush.msrb.mxu0 %v1859_v53 }
 0xb3c   :  { %2194 = vmatmul.msk.f32.vlgmr.msrb.gmra.mxu1 %vm237_vm1, %v3636_v54  ;;  %2200 = vmatmul.msk.f32.vlgmr.msrb.gmra.mxu2 %vm237_vm1, %v3636_v54 }
 0xb3d   :  { %2202 = vmatmul.msk.f32.vlgmr.msrb.gmra.mxu3 %vm237_vm1, %v3636_v54  ;;  %1901 = vmatpush.msrb.mxu1 %v3291_v17 }
 0xb3e   :  { %2058 = vmatpush.msrb.mxu2 %v3294_v3 }
 0xb3f   :  { %1902 = vmatpush.msrb.mxu1 %v3300_v15 }
 0xb40   :  { %2059 = vmatpush.msrb.mxu2 %v3303_v7 }
 0xb41   :  { %1903 = vmatpush.msrb.mxu1 %v3309_v29  ;;  %v1891_v29 = vld [vmem:[#allocation2 + $0x70] sm:$0xff] }
 0xb42   :  { %2060 = vmatpush.msrb.mxu2 %v3312_v12 }
 0xb43   :  { %1904 = vmatpush.msrb.mxu1 %v3318_v20 }
 0xb44   :  { %2199 = vmatmul.msk.f32.vlgmr.msra.gmra.mxu1 %vm237_vm1, %v3632_v14  ;;  %2206 = vmatmul.msk.f32.vlgmr.msra.gmra.mxu2 %vm237_vm1, %v3632_v14 }
 0xb45   :  { %1905 = vmatpush.msrb.mxu1 %v3328_v0  ;;  %2061 = vmatpush.msrb.mxu2 %v3331_v21 }
 0xb47   :  { %1906 = vmatpush.msrb.mxu1 %v3337_v32  ;;  %2062 = vmatpush.msrb.mxu2 %v3340_v26 }
 0xb49   :  { %1907 = vmatpush.msrb.mxu1 %v3346_v56  ;;  %2063 = vmatpush.msrb.mxu2 %v3349_v42 }
 0xb4b   :  { %1908 = vmatpush.msrb.mxu1 %v3355_v52  ;;  %2064 = vmatpush.msrb.mxu2 %v3358_v13 }
 0xb4c   :  { %2204 = vmatmul.msk.f32.vlgmr.msrb.gmra.mxu1 %vm237_vm1, %v3632_v14 }
 0xb4d   :  { %2018 = vmatpush.msra.mxu1 %v3363_v16  ;;  %2065 = vmatpush.msrb.mxu2 %v3366_v49 }
 0xb4f   :  { %2019 = vmatpush.msra.mxu1 %v3375_v48 }
 0xb51   :  { %2020 = vmatpush.msra.mxu1 %v3384_v57 }
 0xb53   :  { %2021 = vmatpush.msra.mxu1 %v3393_v19 }
 0xb55   :  { %2022 = vmatpush.msra.mxu1 %v3402_v33 }
 0xb57   :  { %2023 = vmatpush.msra.mxu1 %v3411_v36 }
 0xb59   :  { %2024 = vmatpush.msra.mxu1 %v3842_v4 }
 0xb5b   :  { %2025 = vmatpush.msra.mxu1 %v3844_v27 }
 0xbad   :  { %v1762_v24 = vpop.f32.mrf.mxu0 }
 0xbae   :  { %v1763_v59 = vadd.f32 %v1762_v24, %v3855_v11  ;;  %v2372_v24 = vld [vmem:[%s3738_s6 + $0x68] sm:$0xff] }
 0xbb9   :  { %v1662_v25 = vpop.f32.mrf.mxu1 }
 0xbba   :  { %v3675_v6 = vadd.f32 %v1662_v25, %v3612_v50  ;;  %v2371_v25 = vld [vmem:[%s3738_s6 + $0x78] sm:$0xff] }
 0xbbb   :  { %1998 = vmatpush.msra.mxu0 %v2371_v25 }
 0xbbd   :  { %1999 = vmatpush.msra.mxu0 %v2372_v24 }
 0xbbf   :  { %v1802_v17 = vpop.f32.mrf.mxu2 }
 0xbc0   :  { %v1805_v3 = vadd.f32 %v1802_v17, %v1763_v59  ;;  %v1842_v57 = vpop.f32.mrf.mxu3  ;;  %v2373_v59 = vld [vmem:[%s3738_s6 + $0x58] sm:$0xff]  ;;  %v2374_v17 = vld [vmem:[%s3738_s6 + $0x48] sm:$0xff] }
 0xbc1   :  { %v1782_v15 = vpop.f32.mrf.mxu1  ;;  %v1843_v4 = vadd.f32 %v3534_v8, %v1842_v57  ;;  %2000 = vmatpush.msra.mxu0 %v2373_v59 }
 0xbc2   :  { %v2201_v7 = vmul.f32 -1.442695, %v1805_v3  ;;  %v1783_v60 = vadd.f32 %v1782_v15, %v2969_v22  ;;  %v2375_v3 = vld [vmem:[%s3738_s6 + $0x38] sm:$0xff]  ;;  %v2376_v15 = vld [vmem:[%s3738_s6 + $0x28] sm:$0xff] }
 0xbc3   :  { %2001 = vmatpush.msra.mxu0 %v2374_v17 }
 0xbc4   :  { %2302 = vpow2.f32 %v2201_v7  ;;  %v2377_v7 = vld [vmem:[%s3738_s6 + $0x18] sm:$0xff] }
 0xbc5   :  { %2002 = vmatpush.msra.mxu0 %v2375_v3 }
 0xbc7   :  { %v1950_v61 = vpop.f32.mrf.mxu2  ;;  %2003 = vmatpush.msra.mxu0 %v2376_v15 }
 0xbc8   :  { %v1951_v45 = vadd.f32 %v2370_v35, %v1950_v61  ;;  %v2091_v35 = vld [vmem:[#allocation7 + $0x1f8] sm:$0xff] }
 0xbc9   :  { %v1910_v12 = vpop.f32.mrf.mxu1  ;;  %2004 = vmatpush.msra.mxu0 %v2377_v7  ;;  %2103 = vmatpush.msrb.mxu3 %v2091_v35 }
 0xbca   :  { %v2303_v20 = vpop.eup %2302  ;;  %v1913_v0 = vadd.f32 %v1910_v12, %v1891_v29 }
 0xbcb   :  { %v1809_v21 = vadd.f32 1.0, %v2303_v20  ;;  %v2378_v20 = vld [vmem:[%s3738_s6 + $0x8] sm:$0xff] }
 0xbcc   :  { %v2205_v32 = vmul.f32 -1.442695, %v1913_v0  ;;  %2005 = vmatpush.msra.mxu0 %v2378_v20 }
 0xbcd   :  { %2304 = vrcp.f32 %v1809_v21  ;;  %v1821_v16 = vand.u32 2147483648, %v1809_v21  ;;  %v1819_v48 = vand.u32 2147483647, %v1809_v21  ;;  %vm1815_vm10 = vweird.f32 %v1809_v21 }
 0xbce   :  { %2306 = vpow2.f32 %v2205_v32 }
 0xbcf   :  { %v1822_v33 = vor.u32 1.1754944e-38, %v1821_v16  ;;  %vm1820_vm12 = vcmp.eq.f32.partialorder %v1819_v48, 8.507059e+37 }
 0xbd3   :  { %v2305_v26 = vpop.eup %2304 }
 0xbd4   :  { %v2307_v56 = vpop.eup %2306  ;;  %v1811_v42 = vmul.f32 %v2305_v26, %v1809_v21  ;;  %vm1816_vm9 = vweird.f32 %v2305_v26 }
 0xbd5   :  { %v1917_v52 = vadd.f32 1.0, %v2307_v56  ;;  %vm1817_vm11 = vmor %vm1815_vm10, %vm1816_vm9 }
 0xbd6   :  { %v1812_v13 = vsub.f32 1.0, %v1811_v42 }
 0xbd7   :  { %2308 = vrcp.f32 %v1917_v52  ;;  %v1929_v39 = vand.u32 2147483648, %v1917_v52  ;;  %v1927_v10 = vand.u32 2147483647, %v1917_v52  ;;  %vm1923_vm14 = vweird.f32 %v1917_v52 }
 0xbd8   :  { %v1813_v49 = vmul.f32 %v2305_v26, %v1812_v13 }
 0xbd9   :  { %v1930_v43 = vor.u32 1.1754944e-38, %v1929_v39  ;;  %vm1928_vm0 = vcmp.eq.f32.partialorder %v1927_v10, 8.507059e+37 }
 0xbda   :  { %v1814_v19 = vadd.f32 %v2305_v26, %v1813_v49 }
 0xbdc   :  { %v1818_v36 = vsel %vm1817_vm11, %v2305_v26, %v1814_v19 }
 0xbdd   :  { %v2309_v27 = vpop.eup %2308  ;;  %v3679_v50 = vsel %vm1820_vm12, %v1822_v33, %v1818_v36 }
 0xbde   :  { %v1845_v5 = vmul.f32 %v1843_v4, %v3679_v50  ;;  %v1919_v28 = vmul.f32 %v2309_v27, %v1917_v52  ;;  %vm1924_vm13 = vweird.f32 %v2309_v27 }
 0xbdf   :  { %vm1925_vm15 = vmor %vm1923_vm14, %vm1924_vm13 }
 0xbe0   :  { %v1846_v1 = vadd.f32 %v1845_v5, %v1783_v60  ;;  %v1920_v41 = vsub.f32 1.0, %v1919_v28 }
 0xbe2   :  { %2310 = vtanh.f32 %v1846_v1  ;;  %v1921_v63 = vmul.f32 %v2309_v27, %v1920_v41 }
 0xbe4   :  { %v1922_v23 = vadd.f32 %v2309_v27, %v1921_v63 }
 0xbe6   :  { %v1926_v37 = vsel %vm1925_vm15, %v2309_v27, %v1922_v23 }
 0xbe7   :  { %v1931_v30 = vsel %vm1928_vm0, %v1930_v43, %v1926_v37  ;;  %v2089_v37 = vld [vmem:[#allocation7 + $0x1e8] sm:$0xff] }
 0xbe8   :  { %v2311_v58 = vpop.eup %2310  ;;  %v1953_v31 = vmul.f32 %v1951_v45, %v1931_v30  ;;  %v2090_v45 = vld [vmem:[#allocation7 + $0x1f0] sm:$0xff] }
 0xbe9   :  { %v1848_v46 = vsub.f32 %v3636_v54, %v2311_v58  ;;  %2104 = vmatpush.msrb.mxu3 %v2090_v45 }
 0xbea   :  { %v1954_v9 = vadd.f32 %v1953_v31, %v1892_v51  ;;  %v2085_v31 = vld [vmem:[#allocation7 + $0x1c8] sm:$0xff]  ;;  %v2084_v51 = vld [vmem:[#allocation7 + $0x1c0] sm:$0xff] }
 0xbeb   :  { %1850 = vrot.lane.b32.xlu0 %v1848_v46, %s2488_s8  ;;  %2105 = vmatpush.msrb.mxu3 %v2089_v37 }
 0xbec   :  { %2312 = vtanh.f32 %v1954_v9 }
 0xbf2   :  { %v2313_v62 = vpop.eup %2312 }
 0xbf3   :  { %v1956_v40 = vsub.f32 %v3632_v14, %v2313_v62 }
 0xbf5   :  { %1958 = vrot.lane.b32.xlu2 %v1956_v40, %s2488_s8  ;;  %v2223_v40 = vld [vmem:[#allocation8] ss:$0 sm:$0xff] }
 0xc4f   :  { %v1959_v54 = vpop.permute.xlu2 %1958 }
 0xc50   :  { %v1961_v14 = vmul.f32 %v1959_v54, %v1931_v30  ;;  %v2088_v30 = vld [vmem:[#allocation7 + $0x1e0] sm:$0xff] }
 0xc51   :  { %2106 = vmatpush.msrb.mxu3 %v2088_v30 }
 0xc52   :  { %1963 = vrot.lane.b32.xlu1 %v1961_v14, %s2488_s8 }
 0xc5d   :  { %v1851_v29 = vpop.permute.xlu0 %1850 }
 0xc5e   :  { %v1853_v12 = vmul.f32 %v1851_v29, %v3679_v50 }
 0xc60   :  { %1855 = vrot.lane.b32.xlu2 %v1853_v12, %s2488_s8 }
 0xcba   :  { %v1856_v0 = vpop.permute.xlu2 %1855 }
 0xcbb   :  { %v1858_v21 = vadd.f32 %v2311_v58, %v1856_v0  ;;  %v2086_v58 = vld [vmem:[#allocation7 + $0x1d0] sm:$0xff] }
 0xcbd   :  { %2203 = vmatmul.msk.f32.vlgmr.msrb.gmra.mxu0 %vm237_vm1, %v1858_v21  ;;  %2209 = vmatmul.msk.f32.vlgmr.msra.gmra.mxu1 %vm237_vm1, %v1858_v21 }
 0xcbe   :  { %2211 = vmatmul.msk.f32.vlgmr.msrb.gmra.mxu2 %vm237_vm1, %v1858_v21 }
 0xcc4   :  { %v1964_v32 = vpop.permute.xlu1 %1963 }
 0xcc5   :  { %v1966_v26 = vadd.f32 %v2313_v62, %v1964_v32 }
 0xcc7   :  { %2207 = vmatmul.msk.f32.vlgmr.msra.gmra.mxu3 %vm237_vm1, %v1966_v26  ;;  %2208 = vmatmul.msk.f32.vlgmr.msra.gmra.mxu0 %vm237_vm1, %v1966_v26 }
 0xd3a   :  { %v1887_v56 = vpop.f32.mrf.mxu0  ;;  %v2027_v16 = vpop.f32.mrf.mxu1 }
 0xd3b   :  { %v1890_v42 = vadd.f32 %v1887_v56, %v3675_v6 }
 0xd41   :  { %v2067_v60 = vpop.f32.mrf.mxu2 }
 0xd42   :  { %v2068_v1 = vadd.f32 %v3534_v8, %v2067_v60  ;;  %v2087_v8 = vld [vmem:[#allocation7 + $0x1d8] sm:$0xff] }
 0xd43   :  { %2107 = vmatpush.msrb.mxu3 %v2087_v8 }
 0xd44   :  { %v2007_v28 = vpop.f32.mrf.mxu0 }
 0xd45   :  { %v2008_v63 = vadd.f32 %v2007_v28, %v2969_v22  ;;  %2108 = vmatpush.msrb.mxu3 %v2086_v58 }
 0xd47   :  { %2109 = vmatpush.msrb.mxu3 %v2085_v31 }
 0xd49   :  { %2110 = vmatpush.msrb.mxu3 %v2084_v51 }
 0xd4a   :  { %v1987_v52 = vpop.f32.mrf.mxu3 }
 0xd4b   :  { %v1988_v13 = vadd.f32 %v1987_v52, %v3855_v11 }
 0xd4d   :  { %v2030_v49 = vadd.f32 %v2027_v16, %v1988_v13 }
 0xd4f   :  { %v2210_v48 = vmul.f32 -1.442695, %v2030_v49 }
 0xd51   :  { %2314 = vpow2.f32 %v2210_v48 }
 0xd57   :  { %v2315_v57 = vpop.eup %2314 }
 0xd58   :  { %v2034_v19 = vadd.f32 1.0, %v2315_v57 }
 0xd5a   :  { %2316 = vrcp.f32 %v2034_v19  ;;  %v2046_v27 = vand.u32 2147483648, %v2034_v19  ;;  %v2044_v5 = vand.u32 2147483647, %v2034_v19  ;;  %vm2040_vm3 = vweird.f32 %v2034_v19 }
 0xd5c   :  { %v2047_v11 = vor.u32 1.1754944e-38, %v2046_v27  ;;  %vm2045_vm5 = vcmp.eq.f32.partialorder %v2044_v5, 8.507059e+37 }
 0xd60   :  { %v2317_v33 = vpop.eup %2316 }
 0xd61   :  { %v2036_v36 = vmul.f32 %v2317_v33, %v2034_v19  ;;  %vm2041_vm2 = vweird.f32 %v2317_v33 }
 0xd62   :  { %vm2042_vm4 = vmor %vm2040_vm3, %vm2041_vm2 }
 0xd63   :  { %v2037_v4 = vsub.f32 1.0, %v2036_v36 }
 0xd65   :  { %v2038_v50 = vmul.f32 %v2317_v33, %v2037_v4 }
 0xd67   :  { %v2039_v6 = vadd.f32 %v2317_v33, %v2038_v50 }
 0xd69   :  { %v2043_v41 = vsel %vm2042_vm4, %v2317_v33, %v2039_v6 }
 0xd6a   :  { %v2048_v39 = vsel %vm2045_vm5, %v2047_v11, %v2043_v41 }
 0xd6b   :  { %v2070_v10 = vmul.f32 %v2068_v1, %v2048_v39 }
 0xd6d   :  { %v2071_v61 = vadd.f32 %v2070_v10, %v2008_v63 }
 0xd6f   :  { %2318 = vtanh.f32 %v2071_v61 }
 0xd75   :  { %v2319_v23 = vpop.eup %2318 }
 0xd76   :  { %v2073_v43 = vsub.f32 %v1858_v21, %v2319_v23 }
 0xd78   :  { %2075 = vrot.lane.b32.xlu0 %v2073_v43, %s2488_s8 }
 0xdea   :  { %v2076_v22 = vpop.permute.xlu0 %2075 }
 0xdeb   :  { %v2078_v46 = vmul.f32 %v2076_v22, %v2048_v39 }
 0xded   :  { %2080 = vrot.lane.b32.xlu1 %v2078_v46, %s2488_s8 }
 0xe5f   :  { %v2081_v9 = vpop.permute.xlu1 %2080 }
 0xe60   :  { %v2083_v62 = vadd.f32 %v2319_v23, %v2081_v9 }
 0xe62   :  { %2212 = vmatmul.msk.f32.vlgmr.msrb.gmra.mxu3 %vm237_vm1, %v2083_v62 }
 0xee5   :  { %v2112_v38 = vpop.f32.mrf.mxu3 }
 0xee6   :  { %v2115_v2 = vadd.f32 %v2112_v38, %v1890_v42 }
 0xee8   :  { %v2120_v47 = vadd.f32 %v2223_v40, %v2115_v2 }
 0xeea   :  { %2121 = vst [vmem:[%s3745_s13] sm:$0xff] %v2120_v47 }
 0xeeb   :  { %2126 = vsyncpa [#allocation4], 1 }
 0xeec   :  { %2127 = vsyncpa [#allocation6], 1 }
 0xeed   :  { %2128 = vsyncpa [#allocation9], 1 }

</bundles_post_ra>
